<compile_context>
chip_gen: v6e
topology: v6e:2x2x1
jax: 0.10.0
libtpu: 0.0.40
codegen_flags: <defaults>
</compile_context>

<pallas_src>
import math

import jax
import jax.numpy as jnp
from jax.experimental import pallas as pl
from jax.experimental.pallas import tpu as pltpu


# ----------------------------------------------------------------------------
# Pallas kernels
# ----------------------------------------------------------------------------
def make_tower_kernel(num_layers, T, B, H):
    """Whole bidirectional multi-layer GRU tower for ONE sentence per grid point.

    Inputs (refs, in order):
      x, lengths, h0, then per layer (wih, bih, whh, bhn), then w1 (head half).
    Output: per-sentence head partial  s_p @ W1_p   (B, H).
    Scratch: ping-pong y slab (2, 2, T, B, H) bf16 for inter-layer activations.
    """
    def kernel(*refs):
        x_ref, len_ref, h0_ref = refs[:3]
        layer_refs = [refs[3 + 4 * l: 3 + 4 * (l + 1)] for l in range(num_layers)]
        w1_ref = refs[3 + 4 * num_layers]
        out_ref = refs[4 + 4 * num_layers]
        y_scr = refs[5 + 4 * num_layers]

        lengths = len_ref[0]                       # (B, 1) int32
        s = jnp.zeros((B, H), jnp.float32)         # sum over layers & directions

        # TODO(synk): the T loop is statically unrolled (tiny T in this model);
        # switch to lax.fori_loop with pl.ds indexing for long sequences.
        for l in range(num_layers):
            wih_ref, bih_ref, whh_ref, bhn_ref = layer_refs[l]
            # hoist all weight/bias loads out of the time loop
            wih = wih_ref[0]                       # (2, Din, 3H) bf16
            bih = bih_ref[0]                       # (2, 1, 3H)   f32 (b_hr/b_hz folded)
            whh = whh_ref[0]                       # (2, H, 3H)   bf16
            bhn = bhn_ref[0]                       # (2, 1, H)    f32
            h = h0_ref[0, l]                       # (2, B, H)    f32
            src, dst = l % 2, (l + 1) % 2          # ping-pong activation buffers

            for t in range(T):
                jf, jb = t, T - 1 - t              # original time index per direction

                # per-step input, batched over directions: (2, B, Din) bf16
                if l == 0:
                    u = jnp.stack([x_ref[0, jf], x_ref[0, jb]], axis=0)
                else:
                    u = jnp.stack(
                        [jnp.concatenate([y_scr[src, 0, jf], y_scr[src, 1, jf]], -1),
                         jnp.concatenate([y_scr[src, 0, jb], y_scr[src, 1, jb]], -1)],
                        axis=0)

                # one batched MXU call for the input projection, one for hidden
                gi = jnp.einsum("dbk,dkn->dbn", u, wih,
                                preferred_element_type=jnp.float32) + bih    # (2,B,3H)
                gh = jnp.einsum("dbk,dkn->dbn", h.astype(jnp.bfloat16), whh,
                                preferred_element_type=jnp.float32)          # (2,B,3H)

                r = jax.nn.sigmoid(gi[..., :H] + gh[..., :H])
                z = jax.nn.sigmoid(gi[..., H:2 * H] + gh[..., H:2 * H])
                n = jnp.tanh(gi[..., 2 * H:] + r * (gh[..., 2 * H:] + bhn))
                h_new = (1.0 - z) * n + z * h

                # pack_padded_sequence semantics: only original indices j < length
                # update the hidden state (single vsel).
                valid = jnp.stack([lengths > jf, lengths > jb], axis=0)      # (2,B,1)
                h = jnp.where(valid, h_new, h)

                if l + 1 < num_layers:             # last layer's y is never consumed
                    y_scr[dst, 0, jf] = h[0].astype(y_scr.dtype)
                    y_scr[dst, 1, jb] = h[1].astype(y_scr.dtype)

            s = s + h[0] + h[1]                    # final hiddens, both directions

        # per-sentence half of linear_1 (bias / relu / linear_2 in the head kernel)
        out_ref[0] = jnp.dot(s, w1_ref[0], preferred_element_type=jnp.float32)

    return kernel


def head_kernel(part_ref, b1_ref, w2_ref, b2_ref, o_ref):
    """Cross-sentence sum -> +b1 -> (dropout=id) -> relu -> linear_2."""
    # TODO(synk): dropout is applied as identity (eval mode); training-mode
    # dropout would use pltpu.prng_seed / pltpu.prng_random_bits.
    h = jnp.maximum(part_ref[0] + part_ref[1] + b1_ref[...], 0.0)
    o_ref[...] = jnp.dot(h, w2_ref[...],
                         preferred_element_type=jnp.float32) + b2_ref[...]


# ----------------------------------------------------------------------------
# Wrappers
# ----------------------------------------------------------------------------
def rnn_forward(params, sentence_1, length_1, sentence_2, length_2, h0_1, h0_2):
    emb = params["embedding"]
    layers = params["layers"]
    L = len(layers)
    H = layers[0]["whh"].shape[-2]

    # NOTE: the PyTorch length-sort exists only to satisfy pack_padded_sequence;
    # the length-gated recurrence reproduces packed-GRU final hiddens directly
    # in original batch order, so the sort/unsort round trip is dropped
    # (h0 is iid randn -> distribution-equivalent association).
    x = jnp.stack([jnp.take(emb, sentence_1, axis=0),
                   jnp.take(emb, sentence_2, axis=0)], axis=0)     # (2, B, T, E)
    x = jnp.transpose(x, (0, 2, 1, 3)).astype(jnp.bfloat16)        # (2, T, B, E)
    _, T, B, E = x.shape
    lengths = jnp.stack([length_1, length_2], 0).astype(jnp.int32)[:, :, None]  # (2,B,1)
    h0 = jnp.stack([h0_1, h0_2], 0).reshape(2, L, 2, B, H)         # (2, L, 2, B, H)

    in_specs = [
        pl.BlockSpec((1, T, B, E), lambda p: (p, 0, 0, 0)),
        pl.BlockSpec((1, B, 1), lambda p: (p, 0, 0)),
        pl.BlockSpec((1, L, 2, B, H), lambda p: (p, 0, 0, 0, 0)),
    ]
    args = [x, lengths, h0]
    for lp in layers:
        din = lp["wih"].shape[-2]
        in_specs += [
            pl.BlockSpec((1, 2, din, 3 * H), lambda p: (p, 0, 0, 0)),
            pl.BlockSpec((1, 2, 1, 3 * H), lambda p: (p, 0, 0, 0)),
            pl.BlockSpec((1, 2, H, 3 * H), lambda p: (p, 0, 0, 0)),
            pl.BlockSpec((1, 2, 1, H), lambda p: (p, 0, 0, 0)),
        ]
        args += [lp["wih"], lp["bih"], lp["whh"], lp["bhn"]]
    in_specs += [pl.BlockSpec((1, H, H), lambda p: (p, 0, 0))]
    args += [params["w1p"]]

    partial = pl.pallas_call(
        make_tower_kernel(L, T, B, H),
        grid_spec=pltpu.PrefetchScalarGridSpec(
            num_scalar_prefetch=0,
            grid=(2,),                                   # one sentence tower per point
            in_specs=in_specs,
            out_specs=pl.BlockSpec((1, B, H), lambda p: (p, 0, 0)),
            scratch_shapes=[pltpu.VMEM((2, 2, T, B, H), jnp.bfloat16)],
        ),
        out_shape=jax.ShapeDtypeStruct((2, B, H), jnp.float32),
        compiler_params=pltpu.CompilerParams(
            dimension_semantics=("parallel",),           # 2 TCs on v7x, free elsewhere
        ),
    )(*args)

    vmem = pl.BlockSpec(memory_space=pltpu.MemorySpace.VMEM)
    num_classes = params["b2"].shape[-1]
    return pl.pallas_call(
        head_kernel,
        in_specs=[vmem] * 4,
        out_specs=vmem,
        out_shape=jax.ShapeDtypeStruct((B, num_classes), jnp.float32),
    )(partial, params["b1"], params["w2t"], params["b2"])


# ----------------------------------------------------------------------------
# Deterministic parameter init (shapes per nn.GRU / nn.Linear), packed layout
# ----------------------------------------------------------------------------
def init_params(key, vocab, emb_size, hidden_size, num_layers, num_classes):
    H = hidden_size
    key, ke = jax.random.split(key)
    embedding = jax.random.normal(ke, (vocab, emb_size), jnp.float32)

    bound = 1.0 / math.sqrt(H)
    layers = []
    for l in range(num_layers):
        d_in = emb_size if l == 0 else 2 * H
        wih_p, bih_p, whh_p, bhn_p = [], [], [], []
        for _p in range(2):                    # sentence tower (rnn_1, rnn_2)
            wih_q, bih_q, whh_q, bhn_q = [], [], [], []
            for _q in range(2):                # direction (forward, backward)
                key, k1, k2, k3, k4 = jax.random.split(key, 5)
                w_ih = jax.random.uniform(k1, (3 * H, d_in), jnp.float32, -bound, bound)
                w_hh = jax.random.uniform(k2, (3 * H, H), jnp.float32, -bound, bound)
                b_ih = jax.random.uniform(k3, (3 * H,), jnp.float32, -bound, bound)
                b_hh = jax.random.uniform(k4, (3 * H,), jnp.float32, -bound, bound)
                # fold b_hr, b_hz into the input bias; only b_hn stays in r*(.)
                bih_fold = b_ih + jnp.concatenate(
                    [b_hh[:2 * H], jnp.zeros((H,), jnp.float32)])
                wih_q.append(w_ih.T)                           # (d_in, 3H), gates r,z,n
                whh_q.append(w_hh.T)                           # (H, 3H)
                bih_q.append(bih_fold.reshape(1, 3 * H))
                bhn_q.append(b_hh[2 * H:].reshape(1, H))
            wih_p.append(jnp.stack(wih_q, 0))
            whh_p.append(jnp.stack(whh_q, 0))
            bih_p.append(jnp.stack(bih_q, 0))
            bhn_p.append(jnp.stack(bhn_q, 0))
        layers.append(dict(
            wih=jnp.stack(wih_p, 0).astype(jnp.bfloat16),      # (2,2,d_in,3H)
            whh=jnp.stack(whh_p, 0).astype(jnp.bfloat16),      # (2,2,H,3H)
            bih=jnp.stack(bih_p, 0),                           # (2,2,1,3H) f32
            bhn=jnp.stack(bhn_p, 0),                           # (2,2,1,H)  f32
        ))

    key, k1, k2, k3, k4 = jax.random.split(key, 5)
    b1lim = 1.0 / math.sqrt(2 * H)
    b2lim = 1.0 / math.sqrt(H)
    w1 = jax.random.uniform(k1, (H, 2 * H), jnp.float32, -b1lim, b1lim)
    b1 = jax.random.uniform(k2, (H,), jnp.float32, -b1lim, b1lim)
    w2 = jax.random.uniform(k3, (num_classes, H), jnp.float32, -b2lim, b2lim)
    b2 = jax.random.uniform(k4, (num_classes,), jnp.float32, -b2lim, b2lim)
    params = dict(
        embedding=embedding, layers=layers,
        # per-sentence halves of linear_1 (applied inside the tower kernel)
        w1p=jnp.stack([w1[:, :H].T, w1[:, H:].T], axis=0),     # (2, H, H)
        b1=b1.reshape(1, H),
        w2t=w2.T, b2=b2.reshape(1, num_classes),
    )
    return params, key


# ----------------------------------------------------------------------------
if __name__ == "__main__":
    VOCAB, EMB, HID, LAYERS, CLASSES = 50, 32, 32, 2, 3
    B, T = 4, 8

    key = jax.random.PRNGKey(0)
    params, key = init_params(key, VOCAB, EMB, HID, LAYERS, CLASSES)

    key, ks1, ks2, kl1, kl2, kh1, kh2 = jax.random.split(key, 7)
    sentence_1 = jax.random.randint(ks1, (B, T), 0, VOCAB, dtype=jnp.int32)
    sentence_2 = jax.random.randint(ks2, (B, T), 0, VOCAB, dtype=jnp.int32)
    length_1 = jax.random.randint(kl1, (B,), 1, T + 1, dtype=jnp.int32)
    length_2 = jax.random.randint(kl2, (B,), 1, T + 1, dtype=jnp.int32)
    # init_hidden uses torch.randn; generated deterministically here instead.
    h0_1 = jax.random.normal(kh1, (2 * LAYERS, B, HID), jnp.float32)
    h0_2 = jax.random.normal(kh2, (2 * LAYERS, B, HID), jnp.float32)

    fwd = jax.jit(rnn_forward)
    logits = fwd(params, sentence_1, length_1, sentence_2, length_2, h0_1, h0_2)
    logits = jax.block_until_ready(logits)
    assert logits.shape == (B, CLASSES) and logits.dtype == jnp.float32
    print("KERNEL_OK")
</pallas_src>

<mosaic_0001>
module attributes {stable_mosaic.version = 11 : i64} {
  func.func @head_kernel(%arg0: memref<2x4x32xf32, #tpu.memory_space<vmem>>, %arg1: memref<1x32xf32, #tpu.memory_space<vmem>>, %arg2: memref<32x3xf32, #tpu.memory_space<vmem>>, %arg3: memref<1x3xf32, #tpu.memory_space<vmem>>, %arg4: memref<4x3xf32, #tpu.memory_space<vmem>>) attributes {dimension_semantics = [], scalar_prefetch = 0 : i64, scratch_operands = 0 : i64, tpu.core_type = #tpu.core_type<tc>} {
    %c0 = arith.constant 0 : index
    %c0_0 = arith.constant 0 : index
    %c0_1 = arith.constant 0 : index
    %0 = vector.load %arg0[%c0, %c0_0, %c0_1] : memref<2x4x32xf32, #tpu.memory_space<vmem>>, vector<1x4x32xf32>
    %1 = vector.shape_cast %0 : vector<1x4x32xf32> to vector<4x32xf32>
    %c1 = arith.constant 1 : index
    %c0_2 = arith.constant 0 : index
    %c0_3 = arith.constant 0 : index
    %2 = vector.load %arg0[%c1, %c0_2, %c0_3] : memref<2x4x32xf32, #tpu.memory_space<vmem>>, vector<1x4x32xf32>
    %3 = vector.shape_cast %2 : vector<1x4x32xf32> to vector<4x32xf32>
    %4 = arith.addf %1, %3 : vector<4x32xf32>
    %c0_4 = arith.constant 0 : index
    %c0_5 = arith.constant 0 : index
    %5 = vector.load %arg1[%c0_4, %c0_5] : memref<1x32xf32, #tpu.memory_space<vmem>>, vector<1x32xf32>
    %6 = vector.broadcast %5 : vector<1x32xf32> to vector<4x32xf32>
    %7 = arith.addf %4, %6 : vector<4x32xf32>
    %cst = arith.constant 0.000000e+00 : f32
    %8 = vector.broadcast %cst : f32 to vector<4x32xf32>
    %9 = arith.maximumf %7, %8 : vector<4x32xf32>
    %c0_6 = arith.constant 0 : index
    %c0_7 = arith.constant 0 : index
    %10 = vector.load %arg2[%c0_6, %c0_7] : memref<32x3xf32, #tpu.memory_space<vmem>>, vector<32x3xf32>
    %cst_8 = arith.constant dense<0.000000e+00> : vector<4x3xf32>
    %11 = tpu.matmul %9, %10, %cst_8 {dimension_numbers = #tpu.dot_dimension_numbers<[1], [0], [0], [1], [0, 0, 1, 1], [], []>} : vector<4x32xf32>, vector<32x3xf32>, vector<4x3xf32> -> vector<4x3xf32>
    %c0_9 = arith.constant 0 : index
    %c0_10 = arith.constant 0 : index
    %12 = vector.load %arg3[%c0_9, %c0_10] : memref<1x3xf32, #tpu.memory_space<vmem>>, vector<1x3xf32>
    %13 = vector.broadcast %12 : vector<1x3xf32> to vector<4x3xf32>
    %14 = arith.addf %11, %13 : vector<4x3xf32>
    %c0_11 = arith.constant 0 : index
    %c0_12 = arith.constant 0 : index
    %15 = vector.load %arg4[%c0_11, %c0_12] : memref<4x3xf32, #tpu.memory_space<vmem>>, vector<4x3xf32>
    tpu.vector_store %arg4[%c0_11, %c0_12], %14 {strides = array<i32>} : memref<4x3xf32, #tpu.memory_space<vmem>>, vector<4x3xf32>,
    return
  }
}

module attributes {stable_mosaic.version = 11 : i64} {
  func.func @kernel(%arg0: i32, %arg1: memref<1x8x4x32xbf16, #tpu.memory_space<vmem>>, %arg2: memref<1x4x1xi32, #tpu.memory_space<vmem>>, %arg3: memref<1x2x2x4x32xf32, #tpu.memory_space<vmem>>, %arg4: memref<1x2x32x96xbf16, #tpu.memory_space<vmem>>, %arg5: memref<1x2x1x96xf32, #tpu.memory_space<vmem>>, %arg6: memref<1x2x32x96xbf16, #tpu.memory_space<vmem>>, %arg7: memref<1x2x1x32xf32, #tpu.memory_space<vmem>>, %arg8: memref<1x2x64x96xbf16, #tpu.memory_space<vmem>>, %arg9: memref<1x2x1x96xf32, #tpu.memory_space<vmem>>, %arg10: memref<1x2x32x96xbf16, #tpu.memory_space<vmem>>, %arg11: memref<1x2x1x32xf32, #tpu.memory_space<vmem>>, %arg12: memref<1x32x32xf32, #tpu.memory_space<vmem>>, %arg13: memref<1x4x32xf32, #tpu.memory_space<vmem>>, %arg14: memref<2x2x8x4x32xbf16, #tpu.memory_space<vmem>>) attributes {dimension_semantics = [#tpu.dimension_semantics<parallel>], iteration_bounds = array<i64: 2>, scalar_prefetch = 0 : i64, scratch_operands = 1 : i64, tpu.core_type = #tpu.core_type<tc>, window_params = [{transform_indices = @transform_0, window_bounds = array<i64: 1, 8, 4, 32>}, {transform_indices = @transform_1, window_bounds = array<i64: 1, 4, 1>}, {transform_indices = @transform_2, window_bounds = array<i64: 1, 2, 2, 4, 32>}, {transform_indices = @transform_3, window_bounds = array<i64: 1, 2, 32, 96>}, {transform_indices = @transform_4, window_bounds = array<i64: 1, 2, 1, 96>}, {transform_indices = @transform_5, window_bounds = array<i64: 1, 2, 32, 96>}, {transform_indices = @transform_6, window_bounds = array<i64: 1, 2, 1, 32>}, {transform_indices = @transform_7, window_bounds = array<i64: 1, 2, 64, 96>}, {transform_indices = @transform_8, window_bounds = array<i64: 1, 2, 1, 96>}, {transform_indices = @transform_9, window_bounds = array<i64: 1, 2, 32, 96>}, {transform_indices = @transform_10, window_bounds = array<i64: 1, 2, 1, 32>}, {transform_indices = @transform_11, window_bounds = array<i64: 1, 32, 32>}, {transform_indices = @transform_12, window_bounds = array<i64: 1, 4, 32>}]} {
    %c0 = arith.constant 0 : index
    %c0_0 = arith.constant 0 : index
    %c0_1 = arith.constant 0 : index
    %0 = vector.load %arg2[%c0, %c0_0, %c0_1] : memref<1x4x1xi32, #tpu.memory_space<vmem>>, vector<1x4x1xi32>
    %1 = vector.shape_cast %0 : vector<1x4x1xi32> to vector<4x1xi32>
    %cst = arith.constant 0.000000e+00 : f32
    %2 = vector.broadcast %cst : f32 to vector<4x32xf32>
    %c0_2 = arith.constant 0 : index
    %c0_3 = arith.constant 0 : index
    %c0_4 = arith.constant 0 : index
    %c0_5 = arith.constant 0 : index
    %3 = vector.load %arg4[%c0_2, %c0_3, %c0_4, %c0_5] : memref<1x2x32x96xbf16, #tpu.memory_space<vmem>>, vector<1x2x32x96xbf16>
    %4 = vector.shape_cast %3 : vector<1x2x32x96xbf16> to vector<2x32x96xbf16>
    %c0_6 = arith.constant 0 : index
    %c0_7 = arith.constant 0 : index
    %c0_8 = arith.constant 0 : index
    %c0_9 = arith.constant 0 : index
    %5 = vector.load %arg5[%c0_6, %c0_7, %c0_8, %c0_9] : memref<1x2x1x96xf32, #tpu.memory_space<vmem>>, vector<1x2x1x96xf32>
    %6 = vector.shape_cast %5 : vector<1x2x1x96xf32> to vector<2x1x96xf32>
    %c0_10 = arith.constant 0 : index
    %c0_11 = arith.constant 0 : index
    %c0_12 = arith.constant 0 : index
    %c0_13 = arith.constant 0 : index
    %7 = vector.load %arg6[%c0_10, %c0_11, %c0_12, %c0_13] : memref<1x2x32x96xbf16, #tpu.memory_space<vmem>>, vector<1x2x32x96xbf16>
    %8 = vector.shape_cast %7 : vector<1x2x32x96xbf16> to vector<2x32x96xbf16>
    %c0_14 = arith.constant 0 : index
    %c0_15 = arith.constant 0 : index
    %c0_16 = arith.constant 0 : index
    %c0_17 = arith.constant 0 : index
    %9 = vector.load %arg7[%c0_14, %c0_15, %c0_16, %c0_17] : memref<1x2x1x32xf32, #tpu.memory_space<vmem>>, vector<1x2x1x32xf32>
    %10 = vector.shape_cast %9 : vector<1x2x1x32xf32> to vector<2x1x32xf32>
    %c0_18 = arith.constant 0 : index
    %c0_19 = arith.constant 0 : index
    %c0_20 = arith.constant 0 : index
    %c0_21 = arith.constant 0 : index
    %c0_22 = arith.constant 0 : index
    %11 = vector.load %arg3[%c0_18, %c0_19, %c0_20, %c0_21, %c0_22] : memref<1x2x2x4x32xf32, #tpu.memory_space<vmem>>, vector<1x1x2x4x32xf32>
    %12 = vector.shape_cast %11 : vector<1x1x2x4x32xf32> to vector<2x4x32xf32>
    %c0_23 = arith.constant 0 : index
    %c0_24 = arith.constant 0 : index
    %c0_25 = arith.constant 0 : index
    %c0_26 = arith.constant 0 : index
    %13 = vector.load %arg1[%c0_23, %c0_24, %c0_25, %c0_26] : memref<1x8x4x32xbf16, #tpu.memory_space<vmem>>, vector<1x1x4x32xbf16>
    %14 = vector.shape_cast %13 : vector<1x1x4x32xbf16> to vector<4x32xbf16>
    %c0_27 = arith.constant 0 : index
    %c7 = arith.constant 7 : index
    %c0_28 = arith.constant 0 : index
    %c0_29 = arith.constant 0 : index
    %15 = vector.load %arg1[%c0_27, %c7, %c0_28, %c0_29] : memref<1x8x4x32xbf16, #tpu.memory_space<vmem>>, vector<1x1x4x32xbf16>
    %16 = vector.shape_cast %15 : vector<1x1x4x32xbf16> to vector<4x32xbf16>
    %17 = vector.shape_cast %14 : vector<4x32xbf16> to vector<1x4x32xbf16>
    %18 = vector.shape_cast %16 : vector<4x32xbf16> to vector<1x4x32xbf16>
    %19 = tpu.concatenate %17, %18 in 0 : vector<1x4x32xbf16>, vector<1x4x32xbf16> -> vector<2x4x32xbf16>
    "tpu.trace_start"() <{level = 10 : i32, message = "dbk,dkn->dbn"}> : () -> ()
    %cst_30 = arith.constant dense<0.000000e+00> : vector<2x4x96xf32>
    %20 = tpu.matmul %19, %4, %cst_30 {dimension_numbers = #tpu.dot_dimension_numbers<[2], [1], [1], [2], [0, 0, 0, 1, 1, 2], [0], [0]>} : vector<2x4x32xbf16>, vector<2x32x96xbf16>, vector<2x4x96xf32> -> vector<2x4x96xf32>
    "tpu.trace_stop"() : () -> ()
    %21 = vector.broadcast %6 : vector<2x1x96xf32> to vector<2x4x96xf32>
    %22 = arith.addf %20, %21 : vector<2x4x96xf32>
    %23 = arith.truncf %12 : vector<2x4x32xf32> to vector<2x4x32xbf16>
    "tpu.trace_start"() <{level = 10 : i32, message = "dbk,dkn->dbn"}> : () -> ()
    %cst_31 = arith.constant dense<0.000000e+00> : vector<2x4x96xf32>
    %24 = tpu.matmul %23, %8, %cst_31 {dimension_numbers = #tpu.dot_dimension_numbers<[2], [1], [1], [2], [0, 0, 0, 1, 1, 2], [0], [0]>} : vector<2x4x32xbf16>, vector<2x32x96xbf16>, vector<2x4x96xf32> -> vector<2x4x96xf32>
    "tpu.trace_stop"() : () -> ()
    %25 = vector.extract_strided_slice %22 {offsets = [0, 0, 0], sizes = [2, 4, 32], strides = [1, 1, 1]} : vector<2x4x96xf32> to vector<2x4x32xf32>
    %26 = vector.extract_strided_slice %24 {offsets = [0, 0, 0], sizes = [2, 4, 32], strides = [1, 1, 1]} : vector<2x4x96xf32> to vector<2x4x32xf32>
    %27 = arith.addf %25, %26 : vector<2x4x32xf32>
    %28 = arith.negf %27 : vector<2x4x32xf32>
    %29 = math.exp %28 : vector<2x4x32xf32>
    %cst_32 = arith.constant 1.000000e+00 : f32
    %30 = vector.broadcast %cst_32 : f32 to vector<2x4x32xf32>
    %31 = arith.addf %30, %29 : vector<2x4x32xf32>
    %32 = arith.divf %30, %31 : vector<2x4x32xf32>
    %33 = vector.extract_strided_slice %22 {offsets = [0, 0, 32], sizes = [2, 4, 32], strides = [1, 1, 1]} : vector<2x4x96xf32> to vector<2x4x32xf32>
    %34 = vector.extract_strided_slice %24 {offsets = [0, 0, 32], sizes = [2, 4, 32], strides = [1, 1, 1]} : vector<2x4x96xf32> to vector<2x4x32xf32>
    %35 = arith.addf %33, %34 : vector<2x4x32xf32>
    %36 = arith.negf %35 : vector<2x4x32xf32>
    %37 = math.exp %36 : vector<2x4x32xf32>
    %cst_33 = arith.constant 1.000000e+00 : f32
    %38 = vector.broadcast %cst_33 : f32 to vector<2x4x32xf32>
    %39 = arith.addf %38, %37 : vector<2x4x32xf32>
    %40 = arith.divf %38, %39 : vector<2x4x32xf32>
    %41 = vector.extract_strided_slice %22 {offsets = [0, 0, 64], sizes = [2, 4, 32], strides = [1, 1, 1]} : vector<2x4x96xf32> to vector<2x4x32xf32>
    %42 = vector.extract_strided_slice %24 {offsets = [0, 0, 64], sizes = [2, 4, 32], strides = [1, 1, 1]} : vector<2x4x96xf32> to vector<2x4x32xf32>
    %43 = vector.broadcast %10 : vector<2x1x32xf32> to vector<2x4x32xf32>
    %44 = arith.addf %42, %43 : vector<2x4x32xf32>
    %45 = arith.mulf %32, %44 : vector<2x4x32xf32>
    %46 = arith.addf %41, %45 : vector<2x4x32xf32>
    %47 = math.tanh %46 : vector<2x4x32xf32>
    %cst_34 = arith.constant 1.000000e+00 : f32
    %48 = vector.broadcast %cst_34 : f32 to vector<2x4x32xf32>
    %49 = arith.subf %48, %40 : vector<2x4x32xf32>
    %50 = arith.mulf %49, %47 : vector<2x4x32xf32>
    %51 = arith.mulf %40, %12 : vector<2x4x32xf32>
    %52 = arith.addf %50, %51 : vector<2x4x32xf32>
    %c0_i32 = arith.constant 0 : i32
    %53 = vector.broadcast %c0_i32 : i32 to vector<4x1xi32>
    %54 = arith.cmpi sgt, %1, %53 : vector<4x1xi32>
    %c7_i32 = arith.constant 7 : i32
    %55 = vector.broadcast %c7_i32 : i32 to vector<4x1xi32>
    %56 = arith.cmpi sgt, %1, %55 : vector<4x1xi32>
    %57 = vector.shape_cast %54 : vector<4x1xi1> to vector<1x4x1xi1>
    %58 = vector.shape_cast %56 : vector<4x1xi1> to vector<1x4x1xi1>
    %59 = tpu.concatenate %57, %58 in 0 : vector<1x4x1xi1>, vector<1x4x1xi1> -> vector<2x4x1xi1>
    %60 = vector.shape_cast %59 : vector<2x4x1xi1> to vector<2x4x1xi1>
    %61 = vector.broadcast %60 : vector<2x4x1xi1> to vector<2x4x32xi1>
    %62 = arith.select %61, %52, %12 : vector<2x4x32xi1>, vector<2x4x32xf32>
    %63 = vector.extract_strided_slice %62 {offsets = [0, 0, 0], sizes = [1, 4, 32], strides = [1, 1, 1]} : vector<2x4x32xf32> to vector<1x4x32xf32>
    %64 = vector.shape_cast %63 : vector<1x4x32xf32> to vector<4x32xf32>
    %65 = arith.truncf %64 : vector<4x32xf32> to vector<4x32xbf16>
    %c1 = arith.constant 1 : index
    %c0_35 = arith.constant 0 : index
    %c0_36 = arith.constant 0 : index
    %c0_37 = arith.constant 0 : index
    %c0_38 = arith.constant 0 : index
    %66 = vector.load %arg14[%c1, %c0_35, %c0_36, %c0_37, %c0_38] : memref<2x2x8x4x32xbf16, #tpu.memory_space<vmem>>, vector<1x1x1x4x32xbf16>
    %67 = vector.shape_cast %66 : vector<1x1x1x4x32xbf16> to vector<4x32xbf16>
    %68 = vector.shape_cast %65 : vector<4x32xbf16> to vector<1x1x1x4x32xbf16>
    tpu.vector_store %arg14[%c1, %c0_35, %c0_36, %c0_37, %c0_38], %68 {strides = array<i32>} : memref<2x2x8x4x32xbf16, #tpu.memory_space<vmem>>, vector<1x1x1x4x32xbf16>,
    %69 = vector.extract_strided_slice %62 {offsets = [1, 0, 0], sizes = [1, 4, 32], strides = [1, 1, 1]} : vector<2x4x32xf32> to vector<1x4x32xf32>
    %70 = vector.shape_cast %69 : vector<1x4x32xf32> to vector<4x32xf32>
    %71 = arith.truncf %70 : vector<4x32xf32> to vector<4x32xbf16>
    %c1_39 = arith.constant 1 : index
    %c1_40 = arith.constant 1 : index
    %c7_41 = arith.constant 7 : index
    %c0_42 = arith.constant 0 : index
    %c0_43 = arith.constant 0 : index
    %72 = vector.load %arg14[%c1_39, %c1_40, %c7_41, %c0_42, %c0_43] : memref<2x2x8x4x32xbf16, #tpu.memory_space<vmem>>, vector<1x1x1x4x32xbf16>
    %73 = vector.shape_cast %72 : vector<1x1x1x4x32xbf16> to vector<4x32xbf16>
    %74 = vector.shape_cast %71 : vector<4x32xbf16> to vector<1x1x1x4x32xbf16>
    tpu.vector_store %arg14[%c1_39, %c1_40, %c7_41, %c0_42, %c0_43], %74 {strides = array<i32>} : memref<2x2x8x4x32xbf16, #tpu.memory_space<vmem>>, vector<1x1x1x4x32xbf16>,
    %c0_44 = arith.constant 0 : index
    %c1_45 = arith.constant 1 : index
    %c0_46 = arith.constant 0 : index
    %c0_47 = arith.constant 0 : index
    %75 = vector.load %arg1[%c0_44, %c1_45, %c0_46, %c0_47] : memref<1x8x4x32xbf16, #tpu.memory_space<vmem>>, vector<1x1x4x32xbf16>
    %76 = vector.shape_cast %75 : vector<1x1x4x32xbf16> to vector<4x32xbf16>
    %c0_48 = arith.constant 0 : index
    %c6 = arith.constant 6 : index
    %c0_49 = arith.constant 0 : index
    %c0_50 = arith.constant 0 : index
    %77 = vector.load %arg1[%c0_48, %c6, %c0_49, %c0_50] : memref<1x8x4x32xbf16, #tpu.memory_space<vmem>>, vector<1x1x4x32xbf16>
    %78 = vector.shape_cast %77 : vector<1x1x4x32xbf16> to vector<4x32xbf16>
    %79 = vector.shape_cast %76 : vector<4x32xbf16> to vector<1x4x32xbf16>
    %80 = vector.shape_cast %78 : vector<4x32xbf16> to vector<1x4x32xbf16>
    %81 = tpu.concatenate %79, %80 in 0 : vector<1x4x32xbf16>, vector<1x4x32xbf16> -> vector<2x4x32xbf16>
    "tpu.trace_start"() <{level = 10 : i32, message = "dbk,dkn->dbn"}> : () -> ()
    %cst_51 = arith.constant dense<0.000000e+00> : vector<2x4x96xf32>
    %82 = tpu.matmul %81, %4, %cst_51 {dimension_numbers = #tpu.dot_dimension_numbers<[2], [1], [1], [2], [0, 0, 0, 1, 1, 2], [0], [0]>} : vector<2x4x32xbf16>, vector<2x32x96xbf16>, vector<2x4x96xf32> -> vector<2x4x96xf32>
    "tpu.trace_stop"() : () -> ()
    %83 = vector.broadcast %6 : vector<2x1x96xf32> to vector<2x4x96xf32>
    %84 = arith.addf %82, %83 : vector<2x4x96xf32>
    %85 = arith.truncf %62 : vector<2x4x32xf32> to vector<2x4x32xbf16>
    "tpu.trace_start"() <{level = 10 : i32, message = "dbk,dkn->dbn"}> : () -> ()
    %cst_52 = arith.constant dense<0.000000e+00> : vector<2x4x96xf32>
    %86 = tpu.matmul %85, %8, %cst_52 {dimension_numbers = #tpu.dot_dimension_numbers<[2], [1], [1], [2], [0, 0, 0, 1, 1, 2], [0], [0]>} : vector<2x4x32xbf16>, vector<2x32x96xbf16>, vector<2x4x96xf32> -> vector<2x4x96xf32>
    "tpu.trace_stop"() : () -> ()
    %87 = vector.extract_strided_slice %84 {offsets = [0, 0, 0], sizes = [2, 4, 32], strides = [1, 1, 1]} : vector<2x4x96xf32> to vector<2x4x32xf32>
    %88 = vector.extract_strided_slice %86 {offsets = [0, 0, 0], sizes = [2, 4, 32], strides = [1, 1, 1]} : vector<2x4x96xf32> to vector<2x4x32xf32>
    %89 = arith.addf %87, %88 : vector<2x4x32xf32>
    %90 = arith.negf %89 : vector<2x4x32xf32>
    %91 = math.exp %90 : vector<2x4x32xf32>
    %cst_53 = arith.constant 1.000000e+00 : f32
    %92 = vector.broadcast %cst_53 : f32 to vector<2x4x32xf32>
    %93 = arith.addf %92, %91 : vector<2x4x32xf32>
    %94 = arith.divf %92, %93 : vector<2x4x32xf32>
    %95 = vector.extract_strided_slice %84 {offsets = [0, 0, 32], sizes = [2, 4, 32], strides = [1, 1, 1]} : vector<2x4x96xf32> to vector<2x4x32xf32>
    %96 = vector.extract_strided_slice %86 {offsets = [0, 0, 32], sizes = [2, 4, 32], strides = [1, 1, 1]} : vector<2x4x96xf32> to vector<2x4x32xf32>
    %97 = arith.addf %95, %96 : vector<2x4x32xf32>
    %98 = arith.negf %97 : vector<2x4x32xf32>
    %99 = math.exp %98 : vector<2x4x32xf32>
    %cst_54 = arith.constant 1.000000e+00 : f32
    %100 = vector.broadcast %cst_54 : f32 to vector<2x4x32xf32>
    %101 = arith.addf %100, %99 : vector<2x4x32xf32>
    %102 = arith.divf %100, %101 : vector<2x4x32xf32>
    %103 = vector.extract_strided_slice %84 {offsets = [0, 0, 64], sizes = [2, 4, 32], strides = [1, 1, 1]} : vector<2x4x96xf32> to vector<2x4x32xf32>
    %104 = vector.extract_strided_slice %86 {offsets = [0, 0, 64], sizes = [2, 4, 32], strides = [1, 1, 1]} : vector<2x4x96xf32> to vector<2x4x32xf32>
    %105 = vector.broadcast %10 : vector<2x1x32xf32> to vector<2x4x32xf32>
    %106 = arith.addf %104, %105 : vector<2x4x32xf32>
    %107 = arith.mulf %94, %106 : vector<2x4x32xf32>
    %108 = arith.addf %103, %107 : vector<2x4x32xf32>
    %109 = math.tanh %108 : vector<2x4x32xf32>
    %cst_55 = arith.constant 1.000000e+00 : f32
    %110 = vector.broadcast %cst_55 : f32 to vector<2x4x32xf32>
    %111 = arith.subf %110, %102 : vector<2x4x32xf32>
    %112 = arith.mulf %111, %109 : vector<2x4x32xf32>
    %113 = arith.mulf %102, %62 : vector<2x4x32xf32>
    %114 = arith.addf %112, %113 : vector<2x4x32xf32>
    %c1_i32 = arith.constant 1 : i32
    %115 = vector.broadcast %c1_i32 : i32 to vector<4x1xi32>
    %116 = arith.cmpi sgt, %1, %115 : vector<4x1xi32>
    %c6_i32 = arith.constant 6 : i32
    %117 = vector.broadcast %c6_i32 : i32 to vector<4x1xi32>
    %118 = arith.cmpi sgt, %1, %117 : vector<4x1xi32>
    %119 = vector.shape_cast %116 : vector<4x1xi1> to vector<1x4x1xi1>
    %120 = vector.shape_cast %118 : vector<4x1xi1> to vector<1x4x1xi1>
    %121 = tpu.concatenate %119, %120 in 0 : vector<1x4x1xi1>, vector<1x4x1xi1> -> vector<2x4x1xi1>
    %122 = vector.shape_cast %121 : vector<2x4x1xi1> to vector<2x4x1xi1>
    %123 = vector.broadcast %122 : vector<2x4x1xi1> to vector<2x4x32xi1>
    %124 = arith.select %123, %114, %62 : vector<2x4x32xi1>, vector<2x4x32xf32>
    %125 = vector.extract_strided_slice %124 {offsets = [0, 0, 0], sizes = [1, 4, 32], strides = [1, 1, 1]} : vector<2x4x32xf32> to vector<1x4x32xf32>
    %126 = vector.shape_cast %125 : vector<1x4x32xf32> to vector<4x32xf32>
    %127 = arith.truncf %126 : vector<4x32xf32> to vector<4x32xbf16>
    %c1_56 = arith.constant 1 : index
    %c0_57 = arith.constant 0 : index
    %c1_58 = arith.constant 1 : index
    %c0_59 = arith.constant 0 : index
    %c0_60 = arith.constant 0 : index
    %128 = vector.load %arg14[%c1_56, %c0_57, %c1_58, %c0_59, %c0_60] : memref<2x2x8x4x32xbf16, #tpu.memory_space<vmem>>, vector<1x1x1x4x32xbf16>
    %129 = vector.shape_cast %128 : vector<1x1x1x4x32xbf16> to vector<4x32xbf16>
    %130 = vector.shape_cast %127 : vector<4x32xbf16> to vector<1x1x1x4x32xbf16>
    tpu.vector_store %arg14[%c1_56, %c0_57, %c1_58, %c0_59, %c0_60], %130 {strides = array<i32>} : memref<2x2x8x4x32xbf16, #tpu.memory_space<vmem>>, vector<1x1x1x4x32xbf16>,
    %131 = vector.extract_strided_slice %124 {offsets = [1, 0, 0], sizes = [1, 4, 32], strides = [1, 1, 1]} : vector<2x4x32xf32> to vector<1x4x32xf32>
    %132 = vector.shape_cast %131 : vector<1x4x32xf32> to vector<4x32xf32>
    %133 = arith.truncf %132 : vector<4x32xf32> to vector<4x32xbf16>
    %c1_61 = arith.constant 1 : index
    %c1_62 = arith.constant 1 : index
    %c6_63 = arith.constant 6 : index
    %c0_64 = arith.constant 0 : index
    %c0_65 = arith.constant 0 : index
    %134 = vector.load %arg14[%c1_61, %c1_62, %c6_63, %c0_64, %c0_65] : memref<2x2x8x4x32xbf16, #tpu.memory_space<vmem>>, vector<1x1x1x4x32xbf16>
    %135 = vector.shape_cast %134 : vector<1x1x1x4x32xbf16> to vector<4x32xbf16>
    %136 = vector.shape_cast %133 : vector<4x32xbf16> to vector<1x1x1x4x32xbf16>
    tpu.vector_store %arg14[%c1_61, %c1_62, %c6_63, %c0_64, %c0_65], %136 {strides = array<i32>} : memref<2x2x8x4x32xbf16, #tpu.memory_space<vmem>>, vector<1x1x1x4x32xbf16>,
    %c0_66 = arith.constant 0 : index
    %c2 = arith.constant 2 : index
    %c0_67 = arith.constant 0 : index
    %c0_68 = arith.constant 0 : index
    %137 = vector.load %arg1[%c0_66, %c2, %c0_67, %c0_68] : memref<1x8x4x32xbf16, #tpu.memory_space<vmem>>, vector<1x1x4x32xbf16>
    %138 = vector.shape_cast %137 : vector<1x1x4x32xbf16> to vector<4x32xbf16>
    %c0_69 = arith.constant 0 : index
    %c5 = arith.constant 5 : index
    %c0_70 = arith.constant 0 : index
    %c0_71 = arith.constant 0 : index
    %139 = vector.load %arg1[%c0_69, %c5, %c0_70, %c0_71] : memref<1x8x4x32xbf16, #tpu.memory_space<vmem>>, vector<1x1x4x32xbf16>
    %140 = vector.shape_cast %139 : vector<1x1x4x32xbf16> to vector<4x32xbf16>
    %141 = vector.shape_cast %138 : vector<4x32xbf16> to vector<1x4x32xbf16>
    %142 = vector.shape_cast %140 : vector<4x32xbf16> to vector<1x4x32xbf16>
    %143 = tpu.concatenate %141, %142 in 0 : vector<1x4x32xbf16>, vector<1x4x32xbf16> -> vector<2x4x32xbf16>
    "tpu.trace_start"() <{level = 10 : i32, message = "dbk,dkn->dbn"}> : () -> ()
    %cst_72 = arith.constant dense<0.000000e+00> : vector<2x4x96xf32>
    %144 = tpu.matmul %143, %4, %cst_72 {dimension_numbers = #tpu.dot_dimension_numbers<[2], [1], [1], [2], [0, 0, 0, 1, 1, 2], [0], [0]>} : vector<2x4x32xbf16>, vector<2x32x96xbf16>, vector<2x4x96xf32> -> vector<2x4x96xf32>
    "tpu.trace_stop"() : () -> ()
    %145 = vector.broadcast %6 : vector<2x1x96xf32> to vector<2x4x96xf32>
    %146 = arith.addf %144, %145 : vector<2x4x96xf32>
    %147 = arith.truncf %124 : vector<2x4x32xf32> to vector<2x4x32xbf16>
    "tpu.trace_start"() <{level = 10 : i32, message = "dbk,dkn->dbn"}> : () -> ()
    %cst_73 = arith.constant dense<0.000000e+00> : vector<2x4x96xf32>
    %148 = tpu.matmul %147, %8, %cst_73 {dimension_numbers = #tpu.dot_dimension_numbers<[2], [1], [1], [2], [0, 0, 0, 1, 1, 2], [0], [0]>} : vector<2x4x32xbf16>, vector<2x32x96xbf16>, vector<2x4x96xf32> -> vector<2x4x96xf32>
    "tpu.trace_stop"() : () -> ()
    %149 = vector.extract_strided_slice %146 {offsets = [0, 0, 0], sizes = [2, 4, 32], strides = [1, 1, 1]} : vector<2x4x96xf32> to vector<2x4x32xf32>
    %150 = vector.extract_strided_slice %148 {offsets = [0, 0, 0], sizes = [2, 4, 32], strides = [1, 1, 1]} : vector<2x4x96xf32> to vector<2x4x32xf32>
    %151 = arith.addf %149, %150 : vector<2x4x32xf32>
    %152 = arith.negf %151 : vector<2x4x32xf32>
    %153 = math.exp %152 : vector<2x4x32xf32>
    %cst_74 = arith.constant 1.000000e+00 : f32
    %154 = vector.broadcast %cst_74 : f32 to vector<2x4x32xf32>
    %155 = arith.addf %154, %153 : vector<2x4x32xf32>
    %156 = arith.divf %154, %155 : vector<2x4x32xf32>
    %157 = vector.extract_strided_slice %146 {offsets = [0, 0, 32], sizes = [2, 4, 32], strides = [1, 1, 1]} : vector<2x4x96xf32> to vector<2x4x32xf32>
    %158 = vector.extract_strided_slice %148 {offsets = [0, 0, 32], sizes = [2, 4, 32], strides = [1, 1, 1]} : vector<2x4x96xf32> to vector<2x4x32xf32>
    %159 = arith.addf %157, %158 : vector<2x4x32xf32>
    %160 = arith.negf %159 : vector<2x4x32xf32>
    %161 = math.exp %160 : vector<2x4x32xf32>
    %cst_75 = arith.constant 1.000000e+00 : f32
    %162 = vector.broadcast %cst_75 : f32 to vector<2x4x32xf32>
    %163 = arith.addf %162, %161 : vector<2x4x32xf32>
    %164 = arith.divf %162, %163 : vector<2x4x32xf32>
    %165 = vector.extract_strided_slice %146 {offsets = [0, 0, 64], sizes = [2, 4, 32], strides = [1, 1, 1]} : vector<2x4x96xf32> to vector<2x4x32xf32>
    %166 = vector.extract_strided_slice %148 {offsets = [0, 0, 64], sizes = [2, 4, 32], strides = [1, 1, 1]} : vector<2x4x96xf32> to vector<2x4x32xf32>
    %167 = vector.broadcast %10 : vector<2x1x32xf32> to vector<2x4x32xf32>
    %168 = arith.addf %166, %167 : vector<2x4x32xf32>
    %169 = arith.mulf %156, %168 : vector<2x4x32xf32>
    %170 = arith.addf %165, %169 : vector<2x4x32xf32>
    %171 = math.tanh %170 : vector<2x4x32xf32>
    %cst_76 = arith.constant 1.000000e+00 : f32
    %172 = vector.broadcast %cst_76 : f32 to vector<2x4x32xf32>
    %173 = arith.subf %172, %164 : vector<2x4x32xf32>
    %174 = arith.mulf %173, %171 : vector<2x4x32xf32>
    %175 = arith.mulf %164, %124 : vector<2x4x32xf32>
    %176 = arith.addf %174, %175 : vector<2x4x32xf32>
    %c2_i32 = arith.constant 2 : i32
    %177 = vector.broadcast %c2_i32 : i32 to vector<4x1xi32>
    %178 = arith.cmpi sgt, %1, %177 : vector<4x1xi32>
    %c5_i32 = arith.constant 5 : i32
    %179 = vector.broadcast %c5_i32 : i32 to vector<4x1xi32>
    %180 = arith.cmpi sgt, %1, %179 : vector<4x1xi32>
    %181 = vector.shape_cast %178 : vector<4x1xi1> to vector<1x4x1xi1>
    %182 = vector.shape_cast %180 : vector<4x1xi1> to vector<1x4x1xi1>
    %183 = tpu.concatenate %181, %182 in 0 : vector<1x4x1xi1>, vector<1x4x1xi1> -> vector<2x4x1xi1>
    %184 = vector.shape_cast %183 : vector<2x4x1xi1> to vector<2x4x1xi1>
    %185 = vector.broadcast %184 : vector<2x4x1xi1> to vector<2x4x32xi1>
    %186 = arith.select %185, %176, %124 : vector<2x4x32xi1>, vector<2x4x32xf32>
    %187 = vector.extract_strided_slice %186 {offsets = [0, 0, 0], sizes = [1, 4, 32], strides = [1, 1, 1]} : vector<2x4x32xf32> to vector<1x4x32xf32>
    %188 = vector.shape_cast %187 : vector<1x4x32xf32> to vector<4x32xf32>
    %189 = arith.truncf %188 : vector<4x32xf32> to vector<4x32xbf16>
    %c1_77 = arith.constant 1 : index
    %c0_78 = arith.constant 0 : index
    %c2_79 = arith.constant 2 : index
    %c0_80 = arith.constant 0 : index
    %c0_81 = arith.constant 0 : index
    %190 = vector.load %arg14[%c1_77, %c0_78, %c2_79, %c0_80, %c0_81] : memref<2x2x8x4x32xbf16, #tpu.memory_space<vmem>>, vector<1x1x1x4x32xbf16>
    %191 = vector.shape_cast %190 : vector<1x1x1x4x32xbf16> to vector<4x32xbf16>
    %192 = vector.shape_cast %189 : vector<4x32xbf16> to vector<1x1x1x4x32xbf16>
    tpu.vector_store %arg14[%c1_77, %c0_78, %c2_79, %c0_80, %c0_81], %192 {strides = array<i32>} : memref<2x2x8x4x32xbf16, #tpu.memory_space<vmem>>, vector<1x1x1x4x32xbf16>,
    %193 = vector.extract_strided_slice %186 {offsets = [1, 0, 0], sizes = [1, 4, 32], strides = [1, 1, 1]} : vector<2x4x32xf32> to vector<1x4x32xf32>
    %194 = vector.shape_cast %193 : vector<1x4x32xf32> to vector<4x32xf32>
    %195 = arith.truncf %194 : vector<4x32xf32> to vector<4x32xbf16>
    %c1_82 = arith.constant 1 : index
    %c1_83 = arith.constant 1 : index
    %c5_84 = arith.constant 5 : index
    %c0_85 = arith.constant 0 : index
    %c0_86 = arith.constant 0 : index
    %196 = vector.load %arg14[%c1_82, %c1_83, %c5_84, %c0_85, %c0_86] : memref<2x2x8x4x32xbf16, #tpu.memory_space<vmem>>, vector<1x1x1x4x32xbf16>
    %197 = vector.shape_cast %196 : vector<1x1x1x4x32xbf16> to vector<4x32xbf16>
    %198 = vector.shape_cast %195 : vector<4x32xbf16> to vector<1x1x1x4x32xbf16>
    tpu.vector_store %arg14[%c1_82, %c1_83, %c5_84, %c0_85, %c0_86], %198 {strides = array<i32>} : memref<2x2x8x4x32xbf16, #tpu.memory_space<vmem>>, vector<1x1x1x4x32xbf16>,
    %c0_87 = arith.constant 0 : index
    %c3 = arith.constant 3 : index
    %c0_88 = arith.constant 0 : index
    %c0_89 = arith.constant 0 : index
    %199 = vector.load %arg1[%c0_87, %c3, %c0_88, %c0_89] : memref<1x8x4x32xbf16, #tpu.memory_space<vmem>>, vector<1x1x4x32xbf16>
    %200 = vector.shape_cast %199 : vector<1x1x4x32xbf16> to vector<4x32xbf16>
    %c0_90 = arith.constant 0 : index
    %c4 = arith.constant 4 : index
    %c0_91 = arith.constant 0 : index
    %c0_92 = arith.constant 0 : index
    %201 = vector.load %arg1[%c0_90, %c4, %c0_91, %c0_92] : memref<1x8x4x32xbf16, #tpu.memory_space<vmem>>, vector<1x1x4x32xbf16>
    %202 = vector.shape_cast %201 : vector<1x1x4x32xbf16> to vector<4x32xbf16>
    %203 = vector.shape_cast %200 : vector<4x32xbf16> to vector<1x4x32xbf16>
    %204 = vector.shape_cast %202 : vector<4x32xbf16> to vector<1x4x32xbf16>
    %205 = tpu.concatenate %203, %204 in 0 : vector<1x4x32xbf16>, vector<1x4x32xbf16> -> vector<2x4x32xbf16>
    "tpu.trace_start"() <{level = 10 : i32, message = "dbk,dkn->dbn"}> : () -> ()
    %cst_93 = arith.constant dense<0.000000e+00> : vector<2x4x96xf32>
    %206 = tpu.matmul %205, %4, %cst_93 {dimension_numbers = #tpu.dot_dimension_numbers<[2], [1], [1], [2], [0, 0, 0, 1, 1, 2], [0], [0]>} : vector<2x4x32xbf16>, vector<2x32x96xbf16>, vector<2x4x96xf32> -> vector<2x4x96xf32>
    "tpu.trace_stop"() : () -> ()
    %207 = vector.broadcast %6 : vector<2x1x96xf32> to vector<2x4x96xf32>
    %208 = arith.addf %206, %207 : vector<2x4x96xf32>
    %209 = arith.truncf %186 : vector<2x4x32xf32> to vector<2x4x32xbf16>
    "tpu.trace_start"() <{level = 10 : i32, message = "dbk,dkn->dbn"}> : () -> ()
    %cst_94 = arith.constant dense<0.000000e+00> : vector<2x4x96xf32>
    %210 = tpu.matmul %209, %8, %cst_94 {dimension_numbers = #tpu.dot_dimension_numbers<[2], [1], [1], [2], [0, 0, 0, 1, 1, 2], [0], [0]>} : vector<2x4x32xbf16>, vector<2x32x96xbf16>, vector<2x4x96xf32> -> vector<2x4x96xf32>
    "tpu.trace_stop"() : () -> ()
    %211 = vector.extract_strided_slice %208 {offsets = [0, 0, 0], sizes = [2, 4, 32], strides = [1, 1, 1]} : vector<2x4x96xf32> to vector<2x4x32xf32>
    %212 = vector.extract_strided_slice %210 {offsets = [0, 0, 0], sizes = [2, 4, 32], strides = [1, 1, 1]} : vector<2x4x96xf32> to vector<2x4x32xf32>
    %213 = arith.addf %211, %212 : vector<2x4x32xf32>
    %214 = arith.negf %213 : vector<2x4x32xf32>
    %215 = math.exp %214 : vector<2x4x32xf32>
    %cst_95 = arith.constant 1.000000e+00 : f32
    %216 = vector.broadcast %cst_95 : f32 to vector<2x4x32xf32>
    %217 = arith.addf %216, %215 : vector<2x4x32xf32>
    %218 = arith.divf %216, %217 : vector<2x4x32xf32>
    %219 = vector.extract_strided_slice %208 {offsets = [0, 0, 32], sizes = [2, 4, 32], strides = [1, 1, 1]} : vector<2x4x96xf32> to vector<2x4x32xf32>
    %220 = vector.extract_strided_slice %210 {offsets = [0, 0, 32], sizes = [2, 4, 32], strides = [1, 1, 1]} : vector<2x4x96xf32> to vector<2x4x32xf32>
    %221 = arith.addf %219, %220 : vector<2x4x32xf32>
    %222 = arith.negf %221 : vector<2x4x32xf32>
    %223 = math.exp %222 : vector<2x4x32xf32>
    %cst_96 = arith.constant 1.000000e+00 : f32
    %224 = vector.broadcast %cst_96 : f32 to vector<2x4x32xf32>
    %225 = arith.addf %224, %223 : vector<2x4x32xf32>
    %226 = arith.divf %224, %225 : vector<2x4x32xf32>
    %227 = vector.extract_strided_slice %208 {offsets = [0, 0, 64], sizes = [2, 4, 32], strides = [1, 1, 1]} : vector<2x4x96xf32> to vector<2x4x32xf32>
    %228 = vector.extract_strided_slice %210 {offsets = [0, 0, 64], sizes = [2, 4, 32], strides = [1, 1, 1]} : vector<2x4x96xf32> to vector<2x4x32xf32>
    %229 = vector.broadcast %10 : vector<2x1x32xf32> to vector<2x4x32xf32>
    %230 = arith.addf %228, %229 : vector<2x4x32xf32>
    %231 = arith.mulf %218, %230 : vector<2x4x32xf32>
    %232 = arith.addf %227, %231 : vector<2x4x32xf32>
    %233 = math.tanh %232 : vector<2x4x32xf32>
    %cst_97 = arith.constant 1.000000e+00 : f32
    %234 = vector.broadcast %cst_97 : f32 to vector<2x4x32xf32>
    %235 = arith.subf %234, %226 : vector<2x4x32xf32>
    %236 = arith.mulf %235, %233 : vector<2x4x32xf32>
    %237 = arith.mulf %226, %186 : vector<2x4x32xf32>
    %238 = arith.addf %236, %237 : vector<2x4x32xf32>
    %c3_i32 = arith.constant 3 : i32
    %239 = vector.broadcast %c3_i32 : i32 to vector<4x1xi32>
    %240 = arith.cmpi sgt, %1, %239 : vector<4x1xi32>
    %c4_i32 = arith.constant 4 : i32
    %241 = vector.broadcast %c4_i32 : i32 to vector<4x1xi32>
    %242 = arith.cmpi sgt, %1, %241 : vector<4x1xi32>
    %243 = vector.shape_cast %240 : vector<4x1xi1> to vector<1x4x1xi1>
    %244 = vector.shape_cast %242 : vector<4x1xi1> to vector<1x4x1xi1>
    %245 = tpu.concatenate %243, %244 in 0 : vector<1x4x1xi1>, vector<1x4x1xi1> -> vector<2x4x1xi1>
    %246 = vector.shape_cast %245 : vector<2x4x1xi1> to vector<2x4x1xi1>
    %247 = vector.broadcast %246 : vector<2x4x1xi1> to vector<2x4x32xi1>
    %248 = arith.select %247, %238, %186 : vector<2x4x32xi1>, vector<2x4x32xf32>
    %249 = vector.extract_strided_slice %248 {offsets = [0, 0, 0], sizes = [1, 4, 32], strides = [1, 1, 1]} : vector<2x4x32xf32> to vector<1x4x32xf32>
    %250 = vector.shape_cast %249 : vector<1x4x32xf32> to vector<4x32xf32>
    %251 = arith.truncf %250 : vector<4x32xf32> to vector<4x32xbf16>
    %c1_98 = arith.constant 1 : index
    %c0_99 = arith.constant 0 : index
    %c3_100 = arith.constant 3 : index
    %c0_101 = arith.constant 0 : index
    %c0_102 = arith.constant 0 : index
    %252 = vector.load %arg14[%c1_98, %c0_99, %c3_100, %c0_101, %c0_102] : memref<2x2x8x4x32xbf16, #tpu.memory_space<vmem>>, vector<1x1x1x4x32xbf16>
    %253 = vector.shape_cast %252 : vector<1x1x1x4x32xbf16> to vector<4x32xbf16>
    %254 = vector.shape_cast %251 : vector<4x32xbf16> to vector<1x1x1x4x32xbf16>
    tpu.vector_store %arg14[%c1_98, %c0_99, %c3_100, %c0_101, %c0_102], %254 {strides = array<i32>} : memref<2x2x8x4x32xbf16, #tpu.memory_space<vmem>>, vector<1x1x1x4x32xbf16>,
    %255 = vector.extract_strided_slice %248 {offsets = [1, 0, 0], sizes = [1, 4, 32], strides = [1, 1, 1]} : vector<2x4x32xf32> to vector<1x4x32xf32>
    %256 = vector.shape_cast %255 : vector<1x4x32xf32> to vector<4x32xf32>
    %257 = arith.truncf %256 : vector<4x32xf32> to vector<4x32xbf16>
    %c1_103 = arith.constant 1 : index
    %c1_104 = arith.constant 1 : index
    %c4_105 = arith.constant 4 : index
    %c0_106 = arith.constant 0 : index
    %c0_107 = arith.constant 0 : index
    %258 = vector.load %arg14[%c1_103, %c1_104, %c4_105, %c0_106, %c0_107] : memref<2x2x8x4x32xbf16, #tpu.memory_space<vmem>>, vector<1x1x1x4x32xbf16>
    %259 = vector.shape_cast %258 : vector<1x1x1x4x32xbf16> to vector<4x32xbf16>
    %260 = vector.shape_cast %257 : vector<4x32xbf16> to vector<1x1x1x4x32xbf16>
    tpu.vector_store %arg14[%c1_103, %c1_104, %c4_105, %c0_106, %c0_107], %260 {strides = array<i32>} : memref<2x2x8x4x32xbf16, #tpu.memory_space<vmem>>, vector<1x1x1x4x32xbf16>,
    %c0_108 = arith.constant 0 : index
    %c4_109 = arith.constant 4 : index
    %c0_110 = arith.constant 0 : index
    %c0_111 = arith.constant 0 : index
    %261 = vector.load %arg1[%c0_108, %c4_109, %c0_110, %c0_111] : memref<1x8x4x32xbf16, #tpu.memory_space<vmem>>, vector<1x1x4x32xbf16>
    %262 = vector.shape_cast %261 : vector<1x1x4x32xbf16> to vector<4x32xbf16>
    %c0_112 = arith.constant 0 : index
    %c3_113 = arith.constant 3 : index
    %c0_114 = arith.constant 0 : index
    %c0_115 = arith.constant 0 : index
    %263 = vector.load %arg1[%c0_112, %c3_113, %c0_114, %c0_115] : memref<1x8x4x32xbf16, #tpu.memory_space<vmem>>, vector<1x1x4x32xbf16>
    %264 = vector.shape_cast %263 : vector<1x1x4x32xbf16> to vector<4x32xbf16>
    %265 = vector.shape_cast %262 : vector<4x32xbf16> to vector<1x4x32xbf16>
    %266 = vector.shape_cast %264 : vector<4x32xbf16> to vector<1x4x32xbf16>
    %267 = tpu.concatenate %265, %266 in 0 : vector<1x4x32xbf16>, vector<1x4x32xbf16> -> vector<2x4x32xbf16>
    "tpu.trace_start"() <{level = 10 : i32, message = "dbk,dkn->dbn"}> : () -> ()
    %cst_116 = arith.constant dense<0.000000e+00> : vector<2x4x96xf32>
    %268 = tpu.matmul %267, %4, %cst_116 {dimension_numbers = #tpu.dot_dimension_numbers<[2], [1], [1], [2], [0, 0, 0, 1, 1, 2], [0], [0]>} : vector<2x4x32xbf16>, vector<2x32x96xbf16>, vector<2x4x96xf32> -> vector<2x4x96xf32>
    "tpu.trace_stop"() : () -> ()
    %269 = vector.broadcast %6 : vector<2x1x96xf32> to vector<2x4x96xf32>
    %270 = arith.addf %268, %269 : vector<2x4x96xf32>
    %271 = arith.truncf %248 : vector<2x4x32xf32> to vector<2x4x32xbf16>
    "tpu.trace_start"() <{level = 10 : i32, message = "dbk,dkn->dbn"}> : () -> ()
    %cst_117 = arith.constant dense<0.000000e+00> : vector<2x4x96xf32>
    %272 = tpu.matmul %271, %8, %cst_117 {dimension_numbers = #tpu.dot_dimension_numbers<[2], [1], [1], [2], [0, 0, 0, 1, 1, 2], [0], [0]>} : vector<2x4x32xbf16>, vector<2x32x96xbf16>, vector<2x4x96xf32> -> vector<2x4x96xf32>
    "tpu.trace_stop"() : () -> ()
    %273 = vector.extract_strided_slice %270 {offsets = [0, 0, 0], sizes = [2, 4, 32], strides = [1, 1, 1]} : vector<2x4x96xf32> to vector<2x4x32xf32>
    %274 = vector.extract_strided_slice %272 {offsets = [0, 0, 0], sizes = [2, 4, 32], strides = [1, 1, 1]} : vector<2x4x96xf32> to vector<2x4x32xf32>
    %275 = arith.addf %273, %274 : vector<2x4x32xf32>
    %276 = arith.negf %275 : vector<2x4x32xf32>
    %277 = math.exp %276 : vector<2x4x32xf32>
    %cst_118 = arith.constant 1.000000e+00 : f32
    %278 = vector.broadcast %cst_118 : f32 to vector<2x4x32xf32>
    %279 = arith.addf %278, %277 : vector<2x4x32xf32>
    %280 = arith.divf %278, %279 : vector<2x4x32xf32>
    %281 = vector.extract_strided_slice %270 {offsets = [0, 0, 32], sizes = [2, 4, 32], strides = [1, 1, 1]} : vector<2x4x96xf32> to vector<2x4x32xf32>
    %282 = vector.extract_strided_slice %272 {offsets = [0, 0, 32], sizes = [2, 4, 32], strides = [1, 1, 1]} : vector<2x4x96xf32> to vector<2x4x32xf32>
    %283 = arith.addf %281, %282 : vector<2x4x32xf32>
    %284 = arith.negf %283 : vector<2x4x32xf32>
    %285 = math.exp %284 : vector<2x4x32xf32>
    %cst_119 = arith.constant 1.000000e+00 : f32
    %286 = vector.broadcast %cst_119 : f32 to vector<2x4x32xf32>
    %287 = arith.addf %286, %285 : vector<2x4x32xf32>
    %288 = arith.divf %286, %287 : vector<2x4x32xf32>
    %289 = vector.extract_strided_slice %270 {offsets = [0, 0, 64], sizes = [2, 4, 32], strides = [1, 1, 1]} : vector<2x4x96xf32> to vector<2x4x32xf32>
    %290 = vector.extract_strided_slice %272 {offsets = [0, 0, 64], sizes = [2, 4, 32], strides = [1, 1, 1]} : vector<2x4x96xf32> to vector<2x4x32xf32>
    %291 = vector.broadcast %10 : vector<2x1x32xf32> to vector<2x4x32xf32>
    %292 = arith.addf %290, %291 : vector<2x4x32xf32>
    %293 = arith.mulf %280, %292 : vector<2x4x32xf32>
    %294 = arith.addf %289, %293 : vector<2x4x32xf32>
    %295 = math.tanh %294 : vector<2x4x32xf32>
    %cst_120 = arith.constant 1.000000e+00 : f32
    %296 = vector.broadcast %cst_120 : f32 to vector<2x4x32xf32>
    %297 = arith.subf %296, %288 : vector<2x4x32xf32>
    %298 = arith.mulf %297, %295 : vector<2x4x32xf32>
    %299 = arith.mulf %288, %248 : vector<2x4x32xf32>
    %300 = arith.addf %298, %299 : vector<2x4x32xf32>
    %c4_i32_121 = arith.constant 4 : i32
    %301 = vector.broadcast %c4_i32_121 : i32 to vector<4x1xi32>
    %302 = arith.cmpi sgt, %1, %301 : vector<4x1xi32>
    %c3_i32_122 = arith.constant 3 : i32
    %303 = vector.broadcast %c3_i32_122 : i32 to vector<4x1xi32>
    %304 = arith.cmpi sgt, %1, %303 : vector<4x1xi32>
    %305 = vector.shape_cast %302 : vector<4x1xi1> to vector<1x4x1xi1>
    %306 = vector.shape_cast %304 : vector<4x1xi1> to vector<1x4x1xi1>
    %307 = tpu.concatenate %305, %306 in 0 : vector<1x4x1xi1>, vector<1x4x1xi1> -> vector<2x4x1xi1>
    %308 = vector.shape_cast %307 : vector<2x4x1xi1> to vector<2x4x1xi1>
    %309 = vector.broadcast %308 : vector<2x4x1xi1> to vector<2x4x32xi1>
    %310 = arith.select %309, %300, %248 : vector<2x4x32xi1>, vector<2x4x32xf32>
    %311 = vector.extract_strided_slice %310 {offsets = [0, 0, 0], sizes = [1, 4, 32], strides = [1, 1, 1]} : vector<2x4x32xf32> to vector<1x4x32xf32>
    %312 = vector.shape_cast %311 : vector<1x4x32xf32> to vector<4x32xf32>
    %313 = arith.truncf %312 : vector<4x32xf32> to vector<4x32xbf16>
    %c1_123 = arith.constant 1 : index
    %c0_124 = arith.constant 0 : index
    %c4_125 = arith.constant 4 : index
    %c0_126 = arith.constant 0 : index
    %c0_127 = arith.constant 0 : index
    %314 = vector.load %arg14[%c1_123, %c0_124, %c4_125, %c0_126, %c0_127] : memref<2x2x8x4x32xbf16, #tpu.memory_space<vmem>>, vector<1x1x1x4x32xbf16>
    %315 = vector.shape_cast %314 : vector<1x1x1x4x32xbf16> to vector<4x32xbf16>
    %316 = vector.shape_cast %313 : vector<4x32xbf16> to vector<1x1x1x4x32xbf16>
    tpu.vector_store %arg14[%c1_123, %c0_124, %c4_125, %c0_126, %c0_127], %316 {strides = array<i32>} : memref<2x2x8x4x32xbf16, #tpu.memory_space<vmem>>, vector<1x1x1x4x32xbf16>,
    %317 = vector.extract_strided_slice %310 {offsets = [1, 0, 0], sizes = [1, 4, 32], strides = [1, 1, 1]} : vector<2x4x32xf32> to vector<1x4x32xf32>
    %318 = vector.shape_cast %317 : vector<1x4x32xf32> to vector<4x32xf32>
    %319 = arith.truncf %318 : vector<4x32xf32> to vector<4x32xbf16>
    %c1_128 = arith.constant 1 : index
    %c1_129 = arith.constant 1 : index
    %c3_130 = arith.constant 3 : index
    %c0_131 = arith.constant 0 : index
    %c0_132 = arith.constant 0 : index
    %320 = vector.load %arg14[%c1_128, %c1_129, %c3_130, %c0_131, %c0_132] : memref<2x2x8x4x32xbf16, #tpu.memory_space<vmem>>, vector<1x1x1x4x32xbf16>
    %321 = vector.shape_cast %320 : vector<1x1x1x4x32xbf16> to vector<4x32xbf16>
    %322 = vector.shape_cast %319 : vector<4x32xbf16> to vector<1x1x1x4x32xbf16>
    tpu.vector_store %arg14[%c1_128, %c1_129, %c3_130, %c0_131, %c0_132], %322 {strides = array<i32>} : memref<2x2x8x4x32xbf16, #tpu.memory_space<vmem>>, vector<1x1x1x4x32xbf16>,
    %c0_133 = arith.constant 0 : index
    %c5_134 = arith.constant 5 : index
    %c0_135 = arith.constant 0 : index
    %c0_136 = arith.constant 0 : index
    %323 = vector.load %arg1[%c0_133, %c5_134, %c0_135, %c0_136] : memref<1x8x4x32xbf16, #tpu.memory_space<vmem>>, vector<1x1x4x32xbf16>
    %324 = vector.shape_cast %323 : vector<1x1x4x32xbf16> to vector<4x32xbf16>
    %c0_137 = arith.constant 0 : index
    %c2_138 = arith.constant 2 : index
    %c0_139 = arith.constant 0 : index
    %c0_140 = arith.constant 0 : index
    %325 = vector.load %arg1[%c0_137, %c2_138, %c0_139, %c0_140] : memref<1x8x4x32xbf16, #tpu.memory_space<vmem>>, vector<1x1x4x32xbf16>
    %326 = vector.shape_cast %325 : vector<1x1x4x32xbf16> to vector<4x32xbf16>
    %327 = vector.shape_cast %324 : vector<4x32xbf16> to vector<1x4x32xbf16>
    %328 = vector.shape_cast %326 : vector<4x32xbf16> to vector<1x4x32xbf16>
    %329 = tpu.concatenate %327, %328 in 0 : vector<1x4x32xbf16>, vector<1x4x32xbf16> -> vector<2x4x32xbf16>
    "tpu.trace_start"() <{level = 10 : i32, message = "dbk,dkn->dbn"}> : () -> ()
    %cst_141 = arith.constant dense<0.000000e+00> : vector<2x4x96xf32>
    %330 = tpu.matmul %329, %4, %cst_141 {dimension_numbers = #tpu.dot_dimension_numbers<[2], [1], [1], [2], [0, 0, 0, 1, 1, 2], [0], [0]>} : vector<2x4x32xbf16>, vector<2x32x96xbf16>, vector<2x4x96xf32> -> vector<2x4x96xf32>
    "tpu.trace_stop"() : () -> ()
    %331 = vector.broadcast %6 : vector<2x1x96xf32> to vector<2x4x96xf32>
    %332 = arith.addf %330, %331 : vector<2x4x96xf32>
    %333 = arith.truncf %310 : vector<2x4x32xf32> to vector<2x4x32xbf16>
    "tpu.trace_start"() <{level = 10 : i32, message = "dbk,dkn->dbn"}> : () -> ()
    %cst_142 = arith.constant dense<0.000000e+00> : vector<2x4x96xf32>
    %334 = tpu.matmul %333, %8, %cst_142 {dimension_numbers = #tpu.dot_dimension_numbers<[2], [1], [1], [2], [0, 0, 0, 1, 1, 2], [0], [0]>} : vector<2x4x32xbf16>, vector<2x32x96xbf16>, vector<2x4x96xf32> -> vector<2x4x96xf32>
    "tpu.trace_stop"() : () -> ()
    %335 = vector.extract_strided_slice %332 {offsets = [0, 0, 0], sizes = [2, 4, 32], strides = [1, 1, 1]} : vector<2x4x96xf32> to vector<2x4x32xf32>
    %336 = vector.extract_strided_slice %334 {offsets = [0, 0, 0], sizes = [2, 4, 32], strides = [1, 1, 1]} : vector<2x4x96xf32> to vector<2x4x32xf32>
    %337 = arith.addf %335, %336 : vector<2x4x32xf32>
    %338 = arith.negf %337 : vector<2x4x32xf32>
    %339 = math.exp %338 : vector<2x4x32xf32>
    %cst_143 = arith.constant 1.000000e+00 : f32
    %340 = vector.broadcast %cst_143 : f32 to vector<2x4x32xf32>
    %341 = arith.addf %340, %339 : vector<2x4x32xf32>
    %342 = arith.divf %340, %341 : vector<2x4x32xf32>
    %343 = vector.extract_strided_slice %332 {offsets = [0, 0, 32], sizes = [2, 4, 32], strides = [1, 1, 1]} : vector<2x4x96xf32> to vector<2x4x32xf32>
    %344 = vector.extract_strided_slice %334 {offsets = [0, 0, 32], sizes = [2, 4, 32], strides = [1, 1, 1]} : vector<2x4x96xf32> to vector<2x4x32xf32>
    %345 = arith.addf %343, %344 : vector<2x4x32xf32>
    %346 = arith.negf %345 : vector<2x4x32xf32>
    %347 = math.exp %346 : vector<2x4x32xf32>
    %cst_144 = arith.constant 1.000000e+00 : f32
    %348 = vector.broadcast %cst_144 : f32 to vector<2x4x32xf32>
    %349 = arith.addf %348, %347 : vector<2x4x32xf32>
    %350 = arith.divf %348, %349 : vector<2x4x32xf32>
    %351 = vector.extract_strided_slice %332 {offsets = [0, 0, 64], sizes = [2, 4, 32], strides = [1, 1, 1]} : vector<2x4x96xf32> to vector<2x4x32xf32>
    %352 = vector.extract_strided_slice %334 {offsets = [0, 0, 64], sizes = [2, 4, 32], strides = [1, 1, 1]} : vector<2x4x96xf32> to vector<2x4x32xf32>
    %353 = vector.broadcast %10 : vector<2x1x32xf32> to vector<2x4x32xf32>
    %354 = arith.addf %352, %353 : vector<2x4x32xf32>
    %355 = arith.mulf %342, %354 : vector<2x4x32xf32>
    %356 = arith.addf %351, %355 : vector<2x4x32xf32>
    %357 = math.tanh %356 : vector<2x4x32xf32>
    %cst_145 = arith.constant 1.000000e+00 : f32
    %358 = vector.broadcast %cst_145 : f32 to vector<2x4x32xf32>
    %359 = arith.subf %358, %350 : vector<2x4x32xf32>
    %360 = arith.mulf %359, %357 : vector<2x4x32xf32>
    %361 = arith.mulf %350, %310 : vector<2x4x32xf32>
    %362 = arith.addf %360, %361 : vector<2x4x32xf32>
    %c5_i32_146 = arith.constant 5 : i32
    %363 = vector.broadcast %c5_i32_146 : i32 to vector<4x1xi32>
    %364 = arith.cmpi sgt, %1, %363 : vector<4x1xi32>
    %c2_i32_147 = arith.constant 2 : i32
    %365 = vector.broadcast %c2_i32_147 : i32 to vector<4x1xi32>
    %366 = arith.cmpi sgt, %1, %365 : vector<4x1xi32>
    %367 = vector.shape_cast %364 : vector<4x1xi1> to vector<1x4x1xi1>
    %368 = vector.shape_cast %366 : vector<4x1xi1> to vector<1x4x1xi1>
    %369 = tpu.concatenate %367, %368 in 0 : vector<1x4x1xi1>, vector<1x4x1xi1> -> vector<2x4x1xi1>
    %370 = vector.shape_cast %369 : vector<2x4x1xi1> to vector<2x4x1xi1>
    %371 = vector.broadcast %370 : vector<2x4x1xi1> to vector<2x4x32xi1>
    %372 = arith.select %371, %362, %310 : vector<2x4x32xi1>, vector<2x4x32xf32>
    %373 = vector.extract_strided_slice %372 {offsets = [0, 0, 0], sizes = [1, 4, 32], strides = [1, 1, 1]} : vector<2x4x32xf32> to vector<1x4x32xf32>
    %374 = vector.shape_cast %373 : vector<1x4x32xf32> to vector<4x32xf32>
    %375 = arith.truncf %374 : vector<4x32xf32> to vector<4x32xbf16>
    %c1_148 = arith.constant 1 : index
    %c0_149 = arith.constant 0 : index
    %c5_150 = arith.constant 5 : index
    %c0_151 = arith.constant 0 : index
    %c0_152 = arith.constant 0 : index
    %376 = vector.load %arg14[%c1_148, %c0_149, %c5_150, %c0_151, %c0_152] : memref<2x2x8x4x32xbf16, #tpu.memory_space<vmem>>, vector<1x1x1x4x32xbf16>
    %377 = vector.shape_cast %376 : vector<1x1x1x4x32xbf16> to vector<4x32xbf16>
    %378 = vector.shape_cast %375 : vector<4x32xbf16> to vector<1x1x1x4x32xbf16>
    tpu.vector_store %arg14[%c1_148, %c0_149, %c5_150, %c0_151, %c0_152], %378 {strides = array<i32>} : memref<2x2x8x4x32xbf16, #tpu.memory_space<vmem>>, vector<1x1x1x4x32xbf16>,
    %379 = vector.extract_strided_slice %372 {offsets = [1, 0, 0], sizes = [1, 4, 32], strides = [1, 1, 1]} : vector<2x4x32xf32> to vector<1x4x32xf32>
    %380 = vector.shape_cast %379 : vector<1x4x32xf32> to vector<4x32xf32>
    %381 = arith.truncf %380 : vector<4x32xf32> to vector<4x32xbf16>
    %c1_153 = arith.constant 1 : index
    %c1_154 = arith.constant 1 : index
    %c2_155 = arith.constant 2 : index
    %c0_156 = arith.constant 0 : index
    %c0_157 = arith.constant 0 : index
    %382 = vector.load %arg14[%c1_153, %c1_154, %c2_155, %c0_156, %c0_157] : memref<2x2x8x4x32xbf16, #tpu.memory_space<vmem>>, vector<1x1x1x4x32xbf16>
    %383 = vector.shape_cast %382 : vector<1x1x1x4x32xbf16> to vector<4x32xbf16>
    %384 = vector.shape_cast %381 : vector<4x32xbf16> to vector<1x1x1x4x32xbf16>
    tpu.vector_store %arg14[%c1_153, %c1_154, %c2_155, %c0_156, %c0_157], %384 {strides = array<i32>} : memref<2x2x8x4x32xbf16, #tpu.memory_space<vmem>>, vector<1x1x1x4x32xbf16>,
    %c0_158 = arith.constant 0 : index
    %c6_159 = arith.constant 6 : index
    %c0_160 = arith.constant 0 : index
    %c0_161 = arith.constant 0 : index
    %385 = vector.load %arg1[%c0_158, %c6_159, %c0_160, %c0_161] : memref<1x8x4x32xbf16, #tpu.memory_space<vmem>>, vector<1x1x4x32xbf16>
    %386 = vector.shape_cast %385 : vector<1x1x4x32xbf16> to vector<4x32xbf16>
    %c0_162 = arith.constant 0 : index
    %c1_163 = arith.constant 1 : index
    %c0_164 = arith.constant 0 : index
    %c0_165 = arith.constant 0 : index
    %387 = vector.load %arg1[%c0_162, %c1_163, %c0_164, %c0_165] : memref<1x8x4x32xbf16, #tpu.memory_space<vmem>>, vector<1x1x4x32xbf16>
    %388 = vector.shape_cast %387 : vector<1x1x4x32xbf16> to vector<4x32xbf16>
    %389 = vector.shape_cast %386 : vector<4x32xbf16> to vector<1x4x32xbf16>
    %390 = vector.shape_cast %388 : vector<4x32xbf16> to vector<1x4x32xbf16>
    %391 = tpu.concatenate %389, %390 in 0 : vector<1x4x32xbf16>, vector<1x4x32xbf16> -> vector<2x4x32xbf16>
    "tpu.trace_start"() <{level = 10 : i32, message = "dbk,dkn->dbn"}> : () -> ()
    %cst_166 = arith.constant dense<0.000000e+00> : vector<2x4x96xf32>
    %392 = tpu.matmul %391, %4, %cst_166 {dimension_numbers = #tpu.dot_dimension_numbers<[2], [1], [1], [2], [0, 0, 0, 1, 1, 2], [0], [0]>} : vector<2x4x32xbf16>, vector<2x32x96xbf16>, vector<2x4x96xf32> -> vector<2x4x96xf32>
    "tpu.trace_stop"() : () -> ()
    %393 = vector.broadcast %6 : vector<2x1x96xf32> to vector<2x4x96xf32>
    %394 = arith.addf %392, %393 : vector<2x4x96xf32>
    %395 = arith.truncf %372 : vector<2x4x32xf32> to vector<2x4x32xbf16>
    "tpu.trace_start"() <{level = 10 : i32, message = "dbk,dkn->dbn"}> : () -> ()
    %cst_167 = arith.constant dense<0.000000e+00> : vector<2x4x96xf32>
    %396 = tpu.matmul %395, %8, %cst_167 {dimension_numbers = #tpu.dot_dimension_numbers<[2], [1], [1], [2], [0, 0, 0, 1, 1, 2], [0], [0]>} : vector<2x4x32xbf16>, vector<2x32x96xbf16>, vector<2x4x96xf32> -> vector<2x4x96xf32>
    "tpu.trace_stop"() : () -> ()
    %397 = vector.extract_strided_slice %394 {offsets = [0, 0, 0], sizes = [2, 4, 32], strides = [1, 1, 1]} : vector<2x4x96xf32> to vector<2x4x32xf32>
    %398 = vector.extract_strided_slice %396 {offsets = [0, 0, 0], sizes = [2, 4, 32], strides = [1, 1, 1]} : vector<2x4x96xf32> to vector<2x4x32xf32>
    %399 = arith.addf %397, %398 : vector<2x4x32xf32>
    %400 = arith.negf %399 : vector<2x4x32xf32>
    %401 = math.exp %400 : vector<2x4x32xf32>
    %cst_168 = arith.constant 1.000000e+00 : f32
    %402 = vector.broadcast %cst_168 : f32 to vector<2x4x32xf32>
    %403 = arith.addf %402, %401 : vector<2x4x32xf32>
    %404 = arith.divf %402, %403 : vector<2x4x32xf32>
    %405 = vector.extract_strided_slice %394 {offsets = [0, 0, 32], sizes = [2, 4, 32], strides = [1, 1, 1]} : vector<2x4x96xf32> to vector<2x4x32xf32>
    %406 = vector.extract_strided_slice %396 {offsets = [0, 0, 32], sizes = [2, 4, 32], strides = [1, 1, 1]} : vector<2x4x96xf32> to vector<2x4x32xf32>
    %407 = arith.addf %405, %406 : vector<2x4x32xf32>
    %408 = arith.negf %407 : vector<2x4x32xf32>
    %409 = math.exp %408 : vector<2x4x32xf32>
    %cst_169 = arith.constant 1.000000e+00 : f32
    %410 = vector.broadcast %cst_169 : f32 to vector<2x4x32xf32>
    %411 = arith.addf %410, %409 : vector<2x4x32xf32>
    %412 = arith.divf %410, %411 : vector<2x4x32xf32>
    %413 = vector.extract_strided_slice %394 {offsets = [0, 0, 64], sizes = [2, 4, 32], strides = [1, 1, 1]} : vector<2x4x96xf32> to vector<2x4x32xf32>
    %414 = vector.extract_strided_slice %396 {offsets = [0, 0, 64], sizes = [2, 4, 32], strides = [1, 1, 1]} : vector<2x4x96xf32> to vector<2x4x32xf32>
    %415 = vector.broadcast %10 : vector<2x1x32xf32> to vector<2x4x32xf32>
    %416 = arith.addf %414, %415 : vector<2x4x32xf32>
    %417 = arith.mulf %404, %416 : vector<2x4x32xf32>
    %418 = arith.addf %413, %417 : vector<2x4x32xf32>
    %419 = math.tanh %418 : vector<2x4x32xf32>
    %cst_170 = arith.constant 1.000000e+00 : f32
    %420 = vector.broadcast %cst_170 : f32 to vector<2x4x32xf32>
    %421 = arith.subf %420, %412 : vector<2x4x32xf32>
    %422 = arith.mulf %421, %419 : vector<2x4x32xf32>
    %423 = arith.mulf %412, %372 : vector<2x4x32xf32>
    %424 = arith.addf %422, %423 : vector<2x4x32xf32>
    %c6_i32_171 = arith.constant 6 : i32
    %425 = vector.broadcast %c6_i32_171 : i32 to vector<4x1xi32>
    %426 = arith.cmpi sgt, %1, %425 : vector<4x1xi32>
    %c1_i32_172 = arith.constant 1 : i32
    %427 = vector.broadcast %c1_i32_172 : i32 to vector<4x1xi32>
    %428 = arith.cmpi sgt, %1, %427 : vector<4x1xi32>
    %429 = vector.shape_cast %426 : vector<4x1xi1> to vector<1x4x1xi1>
    %430 = vector.shape_cast %428 : vector<4x1xi1> to vector<1x4x1xi1>
    %431 = tpu.concatenate %429, %430 in 0 : vector<1x4x1xi1>, vector<1x4x1xi1> -> vector<2x4x1xi1>
    %432 = vector.shape_cast %431 : vector<2x4x1xi1> to vector<2x4x1xi1>
    %433 = vector.broadcast %432 : vector<2x4x1xi1> to vector<2x4x32xi1>
    %434 = arith.select %433, %424, %372 : vector<2x4x32xi1>, vector<2x4x32xf32>
    %435 = vector.extract_strided_slice %434 {offsets = [0, 0, 0], sizes = [1, 4, 32], strides = [1, 1, 1]} : vector<2x4x32xf32> to vector<1x4x32xf32>
    %436 = vector.shape_cast %435 : vector<1x4x32xf32> to vector<4x32xf32>
    %437 = arith.truncf %436 : vector<4x32xf32> to vector<4x32xbf16>
    %c1_173 = arith.constant 1 : index
    %c0_174 = arith.constant 0 : index
    %c6_175 = arith.constant 6 : index
    %c0_176 = arith.constant 0 : index
    %c0_177 = arith.constant 0 : index
    %438 = vector.load %arg14[%c1_173, %c0_174, %c6_175, %c0_176, %c0_177] : memref<2x2x8x4x32xbf16, #tpu.memory_space<vmem>>, vector<1x1x1x4x32xbf16>
    %439 = vector.shape_cast %438 : vector<1x1x1x4x32xbf16> to vector<4x32xbf16>
    %440 = vector.shape_cast %437 : vector<4x32xbf16> to vector<1x1x1x4x32xbf16>
    tpu.vector_store %arg14[%c1_173, %c0_174, %c6_175, %c0_176, %c0_177], %440 {strides = array<i32>} : memref<2x2x8x4x32xbf16, #tpu.memory_space<vmem>>, vector<1x1x1x4x32xbf16>,
    %441 = vector.extract_strided_slice %434 {offsets = [1, 0, 0], sizes = [1, 4, 32], strides = [1, 1, 1]} : vector<2x4x32xf32> to vector<1x4x32xf32>
    %442 = vector.shape_cast %441 : vector<1x4x32xf32> to vector<4x32xf32>
    %443 = arith.truncf %442 : vector<4x32xf32> to vector<4x32xbf16>
    %c1_178 = arith.constant 1 : index
    %c1_179 = arith.constant 1 : index
    %c1_180 = arith.constant 1 : index
    %c0_181 = arith.constant 0 : index
    %c0_182 = arith.constant 0 : index
    %444 = vector.load %arg14[%c1_178, %c1_179, %c1_180, %c0_181, %c0_182] : memref<2x2x8x4x32xbf16, #tpu.memory_space<vmem>>, vector<1x1x1x4x32xbf16>
    %445 = vector.shape_cast %444 : vector<1x1x1x4x32xbf16> to vector<4x32xbf16>
    %446 = vector.shape_cast %443 : vector<4x32xbf16> to vector<1x1x1x4x32xbf16>
    tpu.vector_store %arg14[%c1_178, %c1_179, %c1_180, %c0_181, %c0_182], %446 {strides = array<i32>} : memref<2x2x8x4x32xbf16, #tpu.memory_space<vmem>>, vector<1x1x1x4x32xbf16>,
    %c0_183 = arith.constant 0 : index
    %c7_184 = arith.constant 7 : index
    %c0_185 = arith.constant 0 : index
    %c0_186 = arith.constant 0 : index
    %447 = vector.load %arg1[%c0_183, %c7_184, %c0_185, %c0_186] : memref<1x8x4x32xbf16, #tpu.memory_space<vmem>>, vector<1x1x4x32xbf16>
    %448 = vector.shape_cast %447 : vector<1x1x4x32xbf16> to vector<4x32xbf16>
    %c0_187 = arith.constant 0 : index
    %c0_188 = arith.constant 0 : index
    %c0_189 = arith.constant 0 : index
    %c0_190 = arith.constant 0 : index
    %449 = vector.load %arg1[%c0_187, %c0_188, %c0_189, %c0_190] : memref<1x8x4x32xbf16, #tpu.memory_space<vmem>>, vector<1x1x4x32xbf16>
    %450 = vector.shape_cast %449 : vector<1x1x4x32xbf16> to vector<4x32xbf16>
    %451 = vector.shape_cast %448 : vector<4x32xbf16> to vector<1x4x32xbf16>
    %452 = vector.shape_cast %450 : vector<4x32xbf16> to vector<1x4x32xbf16>
    %453 = tpu.concatenate %451, %452 in 0 : vector<1x4x32xbf16>, vector<1x4x32xbf16> -> vector<2x4x32xbf16>
    "tpu.trace_start"() <{level = 10 : i32, message = "dbk,dkn->dbn"}> : () -> ()
    %cst_191 = arith.constant dense<0.000000e+00> : vector<2x4x96xf32>
    %454 = tpu.matmul %453, %4, %cst_191 {dimension_numbers = #tpu.dot_dimension_numbers<[2], [1], [1], [2], [0, 0, 0, 1, 1, 2], [0], [0]>} : vector<2x4x32xbf16>, vector<2x32x96xbf16>, vector<2x4x96xf32> -> vector<2x4x96xf32>
    "tpu.trace_stop"() : () -> ()
    %455 = vector.broadcast %6 : vector<2x1x96xf32> to vector<2x4x96xf32>
    %456 = arith.addf %454, %455 : vector<2x4x96xf32>
    %457 = arith.truncf %434 : vector<2x4x32xf32> to vector<2x4x32xbf16>
    "tpu.trace_start"() <{level = 10 : i32, message = "dbk,dkn->dbn"}> : () -> ()
    %cst_192 = arith.constant dense<0.000000e+00> : vector<2x4x96xf32>
    %458 = tpu.matmul %457, %8, %cst_192 {dimension_numbers = #tpu.dot_dimension_numbers<[2], [1], [1], [2], [0, 0, 0, 1, 1, 2], [0], [0]>} : vector<2x4x32xbf16>, vector<2x32x96xbf16>, vector<2x4x96xf32> -> vector<2x4x96xf32>
    "tpu.trace_stop"() : () -> ()
    %459 = vector.extract_strided_slice %456 {offsets = [0, 0, 0], sizes = [2, 4, 32], strides = [1, 1, 1]} : vector<2x4x96xf32> to vector<2x4x32xf32>
    %460 = vector.extract_strided_slice %458 {offsets = [0, 0, 0], sizes = [2, 4, 32], strides = [1, 1, 1]} : vector<2x4x96xf32> to vector<2x4x32xf32>
    %461 = arith.addf %459, %460 : vector<2x4x32xf32>
    %462 = arith.negf %461 : vector<2x4x32xf32>
    %463 = math.exp %462 : vector<2x4x32xf32>
    %cst_193 = arith.constant 1.000000e+00 : f32
    %464 = vector.broadcast %cst_193 : f32 to vector<2x4x32xf32>
    %465 = arith.addf %464, %463 : vector<2x4x32xf32>
    %466 = arith.divf %464, %465 : vector<2x4x32xf32>
    %467 = vector.extract_strided_slice %456 {offsets = [0, 0, 32], sizes = [2, 4, 32], strides = [1, 1, 1]} : vector<2x4x96xf32> to vector<2x4x32xf32>
    %468 = vector.extract_strided_slice %458 {offsets = [0, 0, 32], sizes = [2, 4, 32], strides = [1, 1, 1]} : vector<2x4x96xf32> to vector<2x4x32xf32>
    %469 = arith.addf %467, %468 : vector<2x4x32xf32>
    %470 = arith.negf %469 : vector<2x4x32xf32>
    %471 = math.exp %470 : vector<2x4x32xf32>
    %cst_194 = arith.constant 1.000000e+00 : f32
    %472 = vector.broadcast %cst_194 : f32 to vector<2x4x32xf32>
    %473 = arith.addf %472, %471 : vector<2x4x32xf32>
    %474 = arith.divf %472, %473 : vector<2x4x32xf32>
    %475 = vector.extract_strided_slice %456 {offsets = [0, 0, 64], sizes = [2, 4, 32], strides = [1, 1, 1]} : vector<2x4x96xf32> to vector<2x4x32xf32>
    %476 = vector.extract_strided_slice %458 {offsets = [0, 0, 64], sizes = [2, 4, 32], strides = [1, 1, 1]} : vector<2x4x96xf32> to vector<2x4x32xf32>
    %477 = vector.broadcast %10 : vector<2x1x32xf32> to vector<2x4x32xf32>
    %478 = arith.addf %476, %477 : vector<2x4x32xf32>
    %479 = arith.mulf %466, %478 : vector<2x4x32xf32>
    %480 = arith.addf %475, %479 : vector<2x4x32xf32>
    %481 = math.tanh %480 : vector<2x4x32xf32>
    %cst_195 = arith.constant 1.000000e+00 : f32
    %482 = vector.broadcast %cst_195 : f32 to vector<2x4x32xf32>
    %483 = arith.subf %482, %474 : vector<2x4x32xf32>
    %484 = arith.mulf %483, %481 : vector<2x4x32xf32>
    %485 = arith.mulf %474, %434 : vector<2x4x32xf32>
    %486 = arith.addf %484, %485 : vector<2x4x32xf32>
    %c7_i32_196 = arith.constant 7 : i32
    %487 = vector.broadcast %c7_i32_196 : i32 to vector<4x1xi32>
    %488 = arith.cmpi sgt, %1, %487 : vector<4x1xi32>
    %c0_i32_197 = arith.constant 0 : i32
    %489 = vector.broadcast %c0_i32_197 : i32 to vector<4x1xi32>
    %490 = arith.cmpi sgt, %1, %489 : vector<4x1xi32>
    %491 = vector.shape_cast %488 : vector<4x1xi1> to vector<1x4x1xi1>
    %492 = vector.shape_cast %490 : vector<4x1xi1> to vector<1x4x1xi1>
    %493 = tpu.concatenate %491, %492 in 0 : vector<1x4x1xi1>, vector<1x4x1xi1> -> vector<2x4x1xi1>
    %494 = vector.shape_cast %493 : vector<2x4x1xi1> to vector<2x4x1xi1>
    %495 = vector.broadcast %494 : vector<2x4x1xi1> to vector<2x4x32xi1>
    %496 = arith.select %495, %486, %434 : vector<2x4x32xi1>, vector<2x4x32xf32>
    %497 = vector.extract_strided_slice %496 {offsets = [0, 0, 0], sizes = [1, 4, 32], strides = [1, 1, 1]} : vector<2x4x32xf32> to vector<1x4x32xf32>
    %498 = vector.shape_cast %497 : vector<1x4x32xf32> to vector<4x32xf32>
    %499 = arith.truncf %498 : vector<4x32xf32> to vector<4x32xbf16>
    %c1_198 = arith.constant 1 : index
    %c0_199 = arith.constant 0 : index
    %c7_200 = arith.constant 7 : index
    %c0_201 = arith.constant 0 : index
    %c0_202 = arith.constant 0 : index
    %500 = vector.load %arg14[%c1_198, %c0_199, %c7_200, %c0_201, %c0_202] : memref<2x2x8x4x32xbf16, #tpu.memory_space<vmem>>, vector<1x1x1x4x32xbf16>
    %501 = vector.shape_cast %500 : vector<1x1x1x4x32xbf16> to vector<4x32xbf16>
    %502 = vector.shape_cast %499 : vector<4x32xbf16> to vector<1x1x1x4x32xbf16>
    tpu.vector_store %arg14[%c1_198, %c0_199, %c7_200, %c0_201, %c0_202], %502 {strides = array<i32>} : memref<2x2x8x4x32xbf16, #tpu.memory_space<vmem>>, vector<1x1x1x4x32xbf16>,
    %503 = vector.extract_strided_slice %496 {offsets = [1, 0, 0], sizes = [1, 4, 32], strides = [1, 1, 1]} : vector<2x4x32xf32> to vector<1x4x32xf32>
    %504 = vector.shape_cast %503 : vector<1x4x32xf32> to vector<4x32xf32>
    %505 = arith.truncf %504 : vector<4x32xf32> to vector<4x32xbf16>
    %c1_203 = arith.constant 1 : index
    %c1_204 = arith.constant 1 : index
    %c0_205 = arith.constant 0 : index
    %c0_206 = arith.constant 0 : index
    %c0_207 = arith.constant 0 : index
    %506 = vector.load %arg14[%c1_203, %c1_204, %c0_205, %c0_206, %c0_207] : memref<2x2x8x4x32xbf16, #tpu.memory_space<vmem>>, vector<1x1x1x4x32xbf16>
    %507 = vector.shape_cast %506 : vector<1x1x1x4x32xbf16> to vector<4x32xbf16>
    %508 = vector.shape_cast %505 : vector<4x32xbf16> to vector<1x1x1x4x32xbf16>
    tpu.vector_store %arg14[%c1_203, %c1_204, %c0_205, %c0_206, %c0_207], %508 {strides = array<i32>} : memref<2x2x8x4x32xbf16, #tpu.memory_space<vmem>>, vector<1x1x1x4x32xbf16>,
    %509 = vector.extract_strided_slice %496 {offsets = [0, 0, 0], sizes = [1, 4, 32], strides = [1, 1, 1]} : vector<2x4x32xf32> to vector<1x4x32xf32>
    %510 = vector.shape_cast %509 : vector<1x4x32xf32> to vector<4x32xf32>
    %511 = arith.addf %2, %510 : vector<4x32xf32>
    %512 = vector.extract_strided_slice %496 {offsets = [1, 0, 0], sizes = [1, 4, 32], strides = [1, 1, 1]} : vector<2x4x32xf32> to vector<1x4x32xf32>
    %513 = vector.shape_cast %512 : vector<1x4x32xf32> to vector<4x32xf32>
    %514 = arith.addf %511, %513 : vector<4x32xf32>
    %c0_208 = arith.constant 0 : index
    %c0_209 = arith.constant 0 : index
    %c0_210 = arith.constant 0 : index
    %c0_211 = arith.constant 0 : index
    %515 = vector.load %arg8[%c0_208, %c0_209, %c0_210, %c0_211] : memref<1x2x64x96xbf16, #tpu.memory_space<vmem>>, vector<1x2x64x96xbf16>
    %516 = vector.shape_cast %515 : vector<1x2x64x96xbf16> to vector<2x64x96xbf16>
    %c0_212 = arith.constant 0 : index
    %c0_213 = arith.constant 0 : index
    %c0_214 = arith.constant 0 : index
    %c0_215 = arith.constant 0 : index
    %517 = vector.load %arg9[%c0_212, %c0_213, %c0_214, %c0_215] : memref<1x2x1x96xf32, #tpu.memory_space<vmem>>, vector<1x2x1x96xf32>
    %518 = vector.shape_cast %517 : vector<1x2x1x96xf32> to vector<2x1x96xf32>
    %c0_216 = arith.constant 0 : index
    %c0_217 = arith.constant 0 : index
    %c0_218 = arith.constant 0 : index
    %c0_219 = arith.constant 0 : index
    %519 = vector.load %arg10[%c0_216, %c0_217, %c0_218, %c0_219] : memref<1x2x32x96xbf16, #tpu.memory_space<vmem>>, vector<1x2x32x96xbf16>
    %520 = vector.shape_cast %519 : vector<1x2x32x96xbf16> to vector<2x32x96xbf16>
    %c0_220 = arith.constant 0 : index
    %c0_221 = arith.constant 0 : index
    %c0_222 = arith.constant 0 : index
    %c0_223 = arith.constant 0 : index
    %521 = vector.load %arg11[%c0_220, %c0_221, %c0_222, %c0_223] : memref<1x2x1x32xf32, #tpu.memory_space<vmem>>, vector<1x2x1x32xf32>
    %522 = vector.shape_cast %521 : vector<1x2x1x32xf32> to vector<2x1x32xf32>
    %c0_224 = arith.constant 0 : index
    %c1_225 = arith.constant 1 : index
    %c0_226 = arith.constant 0 : index
    %c0_227 = arith.constant 0 : index
    %c0_228 = arith.constant 0 : index
    %523 = vector.load %arg3[%c0_224, %c1_225, %c0_226, %c0_227, %c0_228] : memref<1x2x2x4x32xf32, #tpu.memory_space<vmem>>, vector<1x1x2x4x32xf32>
    %524 = vector.shape_cast %523 : vector<1x1x2x4x32xf32> to vector<2x4x32xf32>
    %c1_229 = arith.constant 1 : index
    %c0_230 = arith.constant 0 : index
    %c0_231 = arith.constant 0 : index
    %c0_232 = arith.constant 0 : index
    %c0_233 = arith.constant 0 : index
    %525 = vector.load %arg14[%c1_229, %c0_230, %c0_231, %c0_232, %c0_233] : memref<2x2x8x4x32xbf16, #tpu.memory_space<vmem>>, vector<1x1x1x4x32xbf16>
    %526 = vector.shape_cast %525 : vector<1x1x1x4x32xbf16> to vector<4x32xbf16>
    %c1_234 = arith.constant 1 : index
    %c1_235 = arith.constant 1 : index
    %c0_236 = arith.constant 0 : index
    %c0_237 = arith.constant 0 : index
    %c0_238 = arith.constant 0 : index
    %527 = vector.load %arg14[%c1_234, %c1_235, %c0_236, %c0_237, %c0_238] : memref<2x2x8x4x32xbf16, #tpu.memory_space<vmem>>, vector<1x1x1x4x32xbf16>
    %528 = vector.shape_cast %527 : vector<1x1x1x4x32xbf16> to vector<4x32xbf16>
    %529 = tpu.concatenate %526, %528 in 1 : vector<4x32xbf16>, vector<4x32xbf16> -> vector<4x64xbf16>
    %c1_239 = arith.constant 1 : index
    %c0_240 = arith.constant 0 : index
    %c7_241 = arith.constant 7 : index
    %c0_242 = arith.constant 0 : index
    %c0_243 = arith.constant 0 : index
    %530 = vector.load %arg14[%c1_239, %c0_240, %c7_241, %c0_242, %c0_243] : memref<2x2x8x4x32xbf16, #tpu.memory_space<vmem>>, vector<1x1x1x4x32xbf16>
    %531 = vector.shape_cast %530 : vector<1x1x1x4x32xbf16> to vector<4x32xbf16>
    %c1_244 = arith.constant 1 : index
    %c1_245 = arith.constant 1 : index
    %c7_246 = arith.constant 7 : index
    %c0_247 = arith.constant 0 : index
    %c0_248 = arith.constant 0 : index
    %532 = vector.load %arg14[%c1_244, %c1_245, %c7_246, %c0_247, %c0_248] : memref<2x2x8x4x32xbf16, #tpu.memory_space<vmem>>, vector<1x1x1x4x32xbf16>
    %533 = vector.shape_cast %532 : vector<1x1x1x4x32xbf16> to vector<4x32xbf16>
    %534 = tpu.concatenate %531, %533 in 1 : vector<4x32xbf16>, vector<4x32xbf16> -> vector<4x64xbf16>
    %535 = vector.shape_cast %529 : vector<4x64xbf16> to vector<1x4x64xbf16>
    %536 = vector.shape_cast %534 : vector<4x64xbf16> to vector<1x4x64xbf16>
    %537 = tpu.concatenate %535, %536 in 0 : vector<1x4x64xbf16>, vector<1x4x64xbf16> -> vector<2x4x64xbf16>
    "tpu.trace_start"() <{level = 10 : i32, message = "dbk,dkn->dbn"}> : () -> ()
    %cst_249 = arith.constant dense<0.000000e+00> : vector<2x4x96xf32>
    %538 = tpu.matmul %537, %516, %cst_249 {dimension_numbers = #tpu.dot_dimension_numbers<[2], [1], [1], [2], [0, 0, 0, 1, 1, 2], [0], [0]>} : vector<2x4x64xbf16>, vector<2x64x96xbf16>, vector<2x4x96xf32> -> vector<2x4x96xf32>
    "tpu.trace_stop"() : () -> ()
    %539 = vector.broadcast %518 : vector<2x1x96xf32> to vector<2x4x96xf32>
    %540 = arith.addf %538, %539 : vector<2x4x96xf32>
    %541 = arith.truncf %524 : vector<2x4x32xf32> to vector<2x4x32xbf16>
    "tpu.trace_start"() <{level = 10 : i32, message = "dbk,dkn->dbn"}> : () -> ()
    %cst_250 = arith.constant dense<0.000000e+00> : vector<2x4x96xf32>
    %542 = tpu.matmul %541, %520, %cst_250 {dimension_numbers = #tpu.dot_dimension_numbers<[2], [1], [1], [2], [0, 0, 0, 1, 1, 2], [0], [0]>} : vector<2x4x32xbf16>, vector<2x32x96xbf16>, vector<2x4x96xf32> -> vector<2x4x96xf32>
    "tpu.trace_stop"() : () -> ()
    %543 = vector.extract_strided_slice %540 {offsets = [0, 0, 0], sizes = [2, 4, 32], strides = [1, 1, 1]} : vector<2x4x96xf32> to vector<2x4x32xf32>
    %544 = vector.extract_strided_slice %542 {offsets = [0, 0, 0], sizes = [2, 4, 32], strides = [1, 1, 1]} : vector<2x4x96xf32> to vector<2x4x32xf32>
    %545 = arith.addf %543, %544 : vector<2x4x32xf32>
    %546 = arith.negf %545 : vector<2x4x32xf32>
    %547 = math.exp %546 : vector<2x4x32xf32>
    %cst_251 = arith.constant 1.000000e+00 : f32
    %548 = vector.broadcast %cst_251 : f32 to vector<2x4x32xf32>
    %549 = arith.addf %548, %547 : vector<2x4x32xf32>
    %550 = arith.divf %548, %549 : vector<2x4x32xf32>
    %551 = vector.extract_strided_slice %540 {offsets = [0, 0, 32], sizes = [2, 4, 32], strides = [1, 1, 1]} : vector<2x4x96xf32> to vector<2x4x32xf32>
    %552 = vector.extract_strided_slice %542 {offsets = [0, 0, 32], sizes = [2, 4, 32], strides = [1, 1, 1]} : vector<2x4x96xf32> to vector<2x4x32xf32>
    %553 = arith.addf %551, %552 : vector<2x4x32xf32>
    %554 = arith.negf %553 : vector<2x4x32xf32>
    %555 = math.exp %554 : vector<2x4x32xf32>
    %cst_252 = arith.constant 1.000000e+00 : f32
    %556 = vector.broadcast %cst_252 : f32 to vector<2x4x32xf32>
    %557 = arith.addf %556, %555 : vector<2x4x32xf32>
    %558 = arith.divf %556, %557 : vector<2x4x32xf32>
    %559 = vector.extract_strided_slice %540 {offsets = [0, 0, 64], sizes = [2, 4, 32], strides = [1, 1, 1]} : vector<2x4x96xf32> to vector<2x4x32xf32>
    %560 = vector.extract_strided_slice %542 {offsets = [0, 0, 64], sizes = [2, 4, 32], strides = [1, 1, 1]} : vector<2x4x96xf32> to vector<2x4x32xf32>
    %561 = vector.broadcast %522 : vector<2x1x32xf32> to vector<2x4x32xf32>
    %562 = arith.addf %560, %561 : vector<2x4x32xf32>
    %563 = arith.mulf %550, %562 : vector<2x4x32xf32>
    %564 = arith.addf %559, %563 : vector<2x4x32xf32>
    %565 = math.tanh %564 : vector<2x4x32xf32>
    %cst_253 = arith.constant 1.000000e+00 : f32
    %566 = vector.broadcast %cst_253 : f32 to vector<2x4x32xf32>
    %567 = arith.subf %566, %558 : vector<2x4x32xf32>
    %568 = arith.mulf %567, %565 : vector<2x4x32xf32>
    %569 = arith.mulf %558, %524 : vector<2x4x32xf32>
    %570 = arith.addf %568, %569 : vector<2x4x32xf32>
    %c0_i32_254 = arith.constant 0 : i32
    %571 = vector.broadcast %c0_i32_254 : i32 to vector<4x1xi32>
    %572 = arith.cmpi sgt, %1, %571 : vector<4x1xi32>
    %c7_i32_255 = arith.constant 7 : i32
    %573 = vector.broadcast %c7_i32_255 : i32 to vector<4x1xi32>
    %574 = arith.cmpi sgt, %1, %573 : vector<4x1xi32>
    %575 = vector.shape_cast %572 : vector<4x1xi1> to vector<1x4x1xi1>
    %576 = vector.shape_cast %574 : vector<4x1xi1> to vector<1x4x1xi1>
    %577 = tpu.concatenate %575, %576 in 0 : vector<1x4x1xi1>, vector<1x4x1xi1> -> vector<2x4x1xi1>
    %578 = vector.shape_cast %577 : vector<2x4x1xi1> to vector<2x4x1xi1>
    %579 = vector.broadcast %578 : vector<2x4x1xi1> to vector<2x4x32xi1>
    %580 = arith.select %579, %570, %524 : vector<2x4x32xi1>, vector<2x4x32xf32>
    %c1_256 = arith.constant 1 : index
    %c0_257 = arith.constant 0 : index
    %c1_258 = arith.constant 1 : index
    %c0_259 = arith.constant 0 : index
    %c0_260 = arith.constant 0 : index
    %581 = vector.load %arg14[%c1_256, %c0_257, %c1_258, %c0_259, %c0_260] : memref<2x2x8x4x32xbf16, #tpu.memory_space<vmem>>, vector<1x1x1x4x32xbf16>
    %582 = vector.shape_cast %581 : vector<1x1x1x4x32xbf16> to vector<4x32xbf16>
    %c1_261 = arith.constant 1 : index
    %c1_262 = arith.constant 1 : index
    %c1_263 = arith.constant 1 : index
    %c0_264 = arith.constant 0 : index
    %c0_265 = arith.constant 0 : index
    %583 = vector.load %arg14[%c1_261, %c1_262, %c1_263, %c0_264, %c0_265] : memref<2x2x8x4x32xbf16, #tpu.memory_space<vmem>>, vector<1x1x1x4x32xbf16>
    %584 = vector.shape_cast %583 : vector<1x1x1x4x32xbf16> to vector<4x32xbf16>
    %585 = tpu.concatenate %582, %584 in 1 : vector<4x32xbf16>, vector<4x32xbf16> -> vector<4x64xbf16>
    %c1_266 = arith.constant 1 : index
    %c0_267 = arith.constant 0 : index
    %c6_268 = arith.constant 6 : index
    %c0_269 = arith.constant 0 : index
    %c0_270 = arith.constant 0 : index
    %586 = vector.load %arg14[%c1_266, %c0_267, %c6_268, %c0_269, %c0_270] : memref<2x2x8x4x32xbf16, #tpu.memory_space<vmem>>, vector<1x1x1x4x32xbf16>
    %587 = vector.shape_cast %586 : vector<1x1x1x4x32xbf16> to vector<4x32xbf16>
    %c1_271 = arith.constant 1 : index
    %c1_272 = arith.constant 1 : index
    %c6_273 = arith.constant 6 : index
    %c0_274 = arith.constant 0 : index
    %c0_275 = arith.constant 0 : index
    %588 = vector.load %arg14[%c1_271, %c1_272, %c6_273, %c0_274, %c0_275] : memref<2x2x8x4x32xbf16, #tpu.memory_space<vmem>>, vector<1x1x1x4x32xbf16>
    %589 = vector.shape_cast %588 : vector<1x1x1x4x32xbf16> to vector<4x32xbf16>
    %590 = tpu.concatenate %587, %589 in 1 : vector<4x32xbf16>, vector<4x32xbf16> -> vector<4x64xbf16>
    %591 = vector.shape_cast %585 : vector<4x64xbf16> to vector<1x4x64xbf16>
    %592 = vector.shape_cast %590 : vector<4x64xbf16> to vector<1x4x64xbf16>
    %593 = tpu.concatenate %591, %592 in 0 : vector<1x4x64xbf16>, vector<1x4x64xbf16> -> vector<2x4x64xbf16>
    "tpu.trace_start"() <{level = 10 : i32, message = "dbk,dkn->dbn"}> : () -> ()
    %cst_276 = arith.constant dense<0.000000e+00> : vector<2x4x96xf32>
    %594 = tpu.matmul %593, %516, %cst_276 {dimension_numbers = #tpu.dot_dimension_numbers<[2], [1], [1], [2], [0, 0, 0, 1, 1, 2], [0], [0]>} : vector<2x4x64xbf16>, vector<2x64x96xbf16>, vector<2x4x96xf32> -> vector<2x4x96xf32>
    "tpu.trace_stop"() : () -> ()
    %595 = vector.broadcast %518 : vector<2x1x96xf32> to vector<2x4x96xf32>
    %596 = arith.addf %594, %595 : vector<2x4x96xf32>
    %597 = arith.truncf %580 : vector<2x4x32xf32> to vector<2x4x32xbf16>
    "tpu.trace_start"() <{level = 10 : i32, message = "dbk,dkn->dbn"}> : () -> ()
    %cst_277 = arith.constant dense<0.000000e+00> : vector<2x4x96xf32>
    %598 = tpu.matmul %597, %520, %cst_277 {dimension_numbers = #tpu.dot_dimension_numbers<[2], [1], [1], [2], [0, 0, 0, 1, 1, 2], [0], [0]>} : vector<2x4x32xbf16>, vector<2x32x96xbf16>, vector<2x4x96xf32> -> vector<2x4x96xf32>
    "tpu.trace_stop"() : () -> ()
    %599 = vector.extract_strided_slice %596 {offsets = [0, 0, 0], sizes = [2, 4, 32], strides = [1, 1, 1]} : vector<2x4x96xf32> to vector<2x4x32xf32>
    %600 = vector.extract_strided_slice %598 {offsets = [0, 0, 0], sizes = [2, 4, 32], strides = [1, 1, 1]} : vector<2x4x96xf32> to vector<2x4x32xf32>
    %601 = arith.addf %599, %600 : vector<2x4x32xf32>
    %602 = arith.negf %601 : vector<2x4x32xf32>
    %603 = math.exp %602 : vector<2x4x32xf32>
    %cst_278 = arith.constant 1.000000e+00 : f32
    %604 = vector.broadcast %cst_278 : f32 to vector<2x4x32xf32>
    %605 = arith.addf %604, %603 : vector<2x4x32xf32>
    %606 = arith.divf %604, %605 : vector<2x4x32xf32>
    %607 = vector.extract_strided_slice %596 {offsets = [0, 0, 32], sizes = [2, 4, 32], strides = [1, 1, 1]} : vector<2x4x96xf32> to vector<2x4x32xf32>
    %608 = vector.extract_strided_slice %598 {offsets = [0, 0, 32], sizes = [2, 4, 32], strides = [1, 1, 1]} : vector<2x4x96xf32> to vector<2x4x32xf32>
    %609 = arith.addf %607, %608 : vector<2x4x32xf32>
    %610 = arith.negf %609 : vector<2x4x32xf32>
    %611 = math.exp %610 : vector<2x4x32xf32>
    %cst_279 = arith.constant 1.000000e+00 : f32
    %612 = vector.broadcast %cst_279 : f32 to vector<2x4x32xf32>
    %613 = arith.addf %612, %611 : vector<2x4x32xf32>
    %614 = arith.divf %612, %613 : vector<2x4x32xf32>
    %615 = vector.extract_strided_slice %596 {offsets = [0, 0, 64], sizes = [2, 4, 32], strides = [1, 1, 1]} : vector<2x4x96xf32> to vector<2x4x32xf32>
    %616 = vector.extract_strided_slice %598 {offsets = [0, 0, 64], sizes = [2, 4, 32], strides = [1, 1, 1]} : vector<2x4x96xf32> to vector<2x4x32xf32>
    %617 = vector.broadcast %522 : vector<2x1x32xf32> to vector<2x4x32xf32>
    %618 = arith.addf %616, %617 : vector<2x4x32xf32>
    %619 = arith.mulf %606, %618 : vector<2x4x32xf32>
    %620 = arith.addf %615, %619 : vector<2x4x32xf32>
    %621 = math.tanh %620 : vector<2x4x32xf32>
    %cst_280 = arith.constant 1.000000e+00 : f32
    %622 = vector.broadcast %cst_280 : f32 to vector<2x4x32xf32>
    %623 = arith.subf %622, %614 : vector<2x4x32xf32>
    %624 = arith.mulf %623, %621 : vector<2x4x32xf32>
    %625 = arith.mulf %614, %580 : vector<2x4x32xf32>
    %626 = arith.addf %624, %625 : vector<2x4x32xf32>
    %c1_i32_281 = arith.constant 1 : i32
    %627 = vector.broadcast %c1_i32_281 : i32 to vector<4x1xi32>
    %628 = arith.cmpi sgt, %1, %627 : vector<4x1xi32>
    %c6_i32_282 = arith.constant 6 : i32
    %629 = vector.broadcast %c6_i32_282 : i32 to vector<4x1xi32>
    %630 = arith.cmpi sgt, %1, %629 : vector<4x1xi32>
    %631 = vector.shape_cast %628 : vector<4x1xi1> to vector<1x4x1xi1>
    %632 = vector.shape_cast %630 : vector<4x1xi1> to vector<1x4x1xi1>
    %633 = tpu.concatenate %631, %632 in 0 : vector<1x4x1xi1>, vector<1x4x1xi1> -> vector<2x4x1xi1>
    %634 = vector.shape_cast %633 : vector<2x4x1xi1> to vector<2x4x1xi1>
    %635 = vector.broadcast %634 : vector<2x4x1xi1> to vector<2x4x32xi1>
    %636 = arith.select %635, %626, %580 : vector<2x4x32xi1>, vector<2x4x32xf32>
    %c1_283 = arith.constant 1 : index
    %c0_284 = arith.constant 0 : index
    %c2_285 = arith.constant 2 : index
    %c0_286 = arith.constant 0 : index
    %c0_287 = arith.constant 0 : index
    %637 = vector.load %arg14[%c1_283, %c0_284, %c2_285, %c0_286, %c0_287] : memref<2x2x8x4x32xbf16, #tpu.memory_space<vmem>>, vector<1x1x1x4x32xbf16>
    %638 = vector.shape_cast %637 : vector<1x1x1x4x32xbf16> to vector<4x32xbf16>
    %c1_288 = arith.constant 1 : index
    %c1_289 = arith.constant 1 : index
    %c2_290 = arith.constant 2 : index
    %c0_291 = arith.constant 0 : index
    %c0_292 = arith.constant 0 : index
    %639 = vector.load %arg14[%c1_288, %c1_289, %c2_290, %c0_291, %c0_292] : memref<2x2x8x4x32xbf16, #tpu.memory_space<vmem>>, vector<1x1x1x4x32xbf16>
    %640 = vector.shape_cast %639 : vector<1x1x1x4x32xbf16> to vector<4x32xbf16>
    %641 = tpu.concatenate %638, %640 in 1 : vector<4x32xbf16>, vector<4x32xbf16> -> vector<4x64xbf16>
    %c1_293 = arith.constant 1 : index
    %c0_294 = arith.constant 0 : index
    %c5_295 = arith.constant 5 : index
    %c0_296 = arith.constant 0 : index
    %c0_297 = arith.constant 0 : index
    %642 = vector.load %arg14[%c1_293, %c0_294, %c5_295, %c0_296, %c0_297] : memref<2x2x8x4x32xbf16, #tpu.memory_space<vmem>>, vector<1x1x1x4x32xbf16>
    %643 = vector.shape_cast %642 : vector<1x1x1x4x32xbf16> to vector<4x32xbf16>
    %c1_298 = arith.constant 1 : index
    %c1_299 = arith.constant 1 : index
    %c5_300 = arith.constant 5 : index
    %c0_301 = arith.constant 0 : index
    %c0_302 = arith.constant 0 : index
    %644 = vector.load %arg14[%c1_298, %c1_299, %c5_300, %c0_301, %c0_302] : memref<2x2x8x4x32xbf16, #tpu.memory_space<vmem>>, vector<1x1x1x4x32xbf16>
    %645 = vector.shape_cast %644 : vector<1x1x1x4x32xbf16> to vector<4x32xbf16>
    %646 = tpu.concatenate %643, %645 in 1 : vector<4x32xbf16>, vector<4x32xbf16> -> vector<4x64xbf16>
    %647 = vector.shape_cast %641 : vector<4x64xbf16> to vector<1x4x64xbf16>
    %648 = vector.shape_cast %646 : vector<4x64xbf16> to vector<1x4x64xbf16>
    %649 = tpu.concatenate %647, %648 in 0 : vector<1x4x64xbf16>, vector<1x4x64xbf16> -> vector<2x4x64xbf16>
    "tpu.trace_start"() <{level = 10 : i32, message = "dbk,dkn->dbn"}> : () -> ()
    %cst_303 = arith.constant dense<0.000000e+00> : vector<2x4x96xf32>
    %650 = tpu.matmul %649, %516, %cst_303 {dimension_numbers = #tpu.dot_dimension_numbers<[2], [1], [1], [2], [0, 0, 0, 1, 1, 2], [0], [0]>} : vector<2x4x64xbf16>, vector<2x64x96xbf16>, vector<2x4x96xf32> -> vector<2x4x96xf32>
    "tpu.trace_stop"() : () -> ()
    %651 = vector.broadcast %518 : vector<2x1x96xf32> to vector<2x4x96xf32>
    %652 = arith.addf %650, %651 : vector<2x4x96xf32>
    %653 = arith.truncf %636 : vector<2x4x32xf32> to vector<2x4x32xbf16>
    "tpu.trace_start"() <{level = 10 : i32, message = "dbk,dkn->dbn"}> : () -> ()
    %cst_304 = arith.constant dense<0.000000e+00> : vector<2x4x96xf32>
    %654 = tpu.matmul %653, %520, %cst_304 {dimension_numbers = #tpu.dot_dimension_numbers<[2], [1], [1], [2], [0, 0, 0, 1, 1, 2], [0], [0]>} : vector<2x4x32xbf16>, vector<2x32x96xbf16>, vector<2x4x96xf32> -> vector<2x4x96xf32>
    "tpu.trace_stop"() : () -> ()
    %655 = vector.extract_strided_slice %652 {offsets = [0, 0, 0], sizes = [2, 4, 32], strides = [1, 1, 1]} : vector<2x4x96xf32> to vector<2x4x32xf32>
    %656 = vector.extract_strided_slice %654 {offsets = [0, 0, 0], sizes = [2, 4, 32], strides = [1, 1, 1]} : vector<2x4x96xf32> to vector<2x4x32xf32>
    %657 = arith.addf %655, %656 : vector<2x4x32xf32>
    %658 = arith.negf %657 : vector<2x4x32xf32>
    %659 = math.exp %658 : vector<2x4x32xf32>
    %cst_305 = arith.constant 1.000000e+00 : f32
    %660 = vector.broadcast %cst_305 : f32 to vector<2x4x32xf32>
    %661 = arith.addf %660, %659 : vector<2x4x32xf32>
    %662 = arith.divf %660, %661 : vector<2x4x32xf32>
    %663 = vector.extract_strided_slice %652 {offsets = [0, 0, 32], sizes = [2, 4, 32], strides = [1, 1, 1]} : vector<2x4x96xf32> to vector<2x4x32xf32>
    %664 = vector.extract_strided_slice %654 {offsets = [0, 0, 32], sizes = [2, 4, 32], strides = [1, 1, 1]} : vector<2x4x96xf32> to vector<2x4x32xf32>
    %665 = arith.addf %663, %664 : vector<2x4x32xf32>
    %666 = arith.negf %665 : vector<2x4x32xf32>
    %667 = math.exp %666 : vector<2x4x32xf32>
    %cst_306 = arith.constant 1.000000e+00 : f32
    %668 = vector.broadcast %cst_306 : f32 to vector<2x4x32xf32>
    %669 = arith.addf %668, %667 : vector<2x4x32xf32>
    %670 = arith.divf %668, %669 : vector<2x4x32xf32>
    %671 = vector.extract_strided_slice %652 {offsets = [0, 0, 64], sizes = [2, 4, 32], strides = [1, 1, 1]} : vector<2x4x96xf32> to vector<2x4x32xf32>
    %672 = vector.extract_strided_slice %654 {offsets = [0, 0, 64], sizes = [2, 4, 32], strides = [1, 1, 1]} : vector<2x4x96xf32> to vector<2x4x32xf32>
    %673 = vector.broadcast %522 : vector<2x1x32xf32> to vector<2x4x32xf32>
    %674 = arith.addf %672, %673 : vector<2x4x32xf32>
    %675 = arith.mulf %662, %674 : vector<2x4x32xf32>
    %676 = arith.addf %671, %675 : vector<2x4x32xf32>
    %677 = math.tanh %676 : vector<2x4x32xf32>
    %cst_307 = arith.constant 1.000000e+00 : f32
    %678 = vector.broadcast %cst_307 : f32 to vector<2x4x32xf32>
    %679 = arith.subf %678, %670 : vector<2x4x32xf32>
    %680 = arith.mulf %679, %677 : vector<2x4x32xf32>
    %681 = arith.mulf %670, %636 : vector<2x4x32xf32>
    %682 = arith.addf %680, %681 : vector<2x4x32xf32>
    %c2_i32_308 = arith.constant 2 : i32
    %683 = vector.broadcast %c2_i32_308 : i32 to vector<4x1xi32>
    %684 = arith.cmpi sgt, %1, %683 : vector<4x1xi32>
    %c5_i32_309 = arith.constant 5 : i32
    %685 = vector.broadcast %c5_i32_309 : i32 to vector<4x1xi32>
    %686 = arith.cmpi sgt, %1, %685 : vector<4x1xi32>
    %687 = vector.shape_cast %684 : vector<4x1xi1> to vector<1x4x1xi1>
    %688 = vector.shape_cast %686 : vector<4x1xi1> to vector<1x4x1xi1>
    %689 = tpu.concatenate %687, %688 in 0 : vector<1x4x1xi1>, vector<1x4x1xi1> -> vector<2x4x1xi1>
    %690 = vector.shape_cast %689 : vector<2x4x1xi1> to vector<2x4x1xi1>
    %691 = vector.broadcast %690 : vector<2x4x1xi1> to vector<2x4x32xi1>
    %692 = arith.select %691, %682, %636 : vector<2x4x32xi1>, vector<2x4x32xf32>
    %c1_310 = arith.constant 1 : index
    %c0_311 = arith.constant 0 : index
    %c3_312 = arith.constant 3 : index
    %c0_313 = arith.constant 0 : index
    %c0_314 = arith.constant 0 : index
    %693 = vector.load %arg14[%c1_310, %c0_311, %c3_312, %c0_313, %c0_314] : memref<2x2x8x4x32xbf16, #tpu.memory_space<vmem>>, vector<1x1x1x4x32xbf16>
    %694 = vector.shape_cast %693 : vector<1x1x1x4x32xbf16> to vector<4x32xbf16>
    %c1_315 = arith.constant 1 : index
    %c1_316 = arith.constant 1 : index
    %c3_317 = arith.constant 3 : index
    %c0_318 = arith.constant 0 : index
    %c0_319 = arith.constant 0 : index
    %695 = vector.load %arg14[%c1_315, %c1_316, %c3_317, %c0_318, %c0_319] : memref<2x2x8x4x32xbf16, #tpu.memory_space<vmem>>, vector<1x1x1x4x32xbf16>
    %696 = vector.shape_cast %695 : vector<1x1x1x4x32xbf16> to vector<4x32xbf16>
    %697 = tpu.concatenate %694, %696 in 1 : vector<4x32xbf16>, vector<4x32xbf16> -> vector<4x64xbf16>
    %c1_320 = arith.constant 1 : index
    %c0_321 = arith.constant 0 : index
    %c4_322 = arith.constant 4 : index
    %c0_323 = arith.constant 0 : index
    %c0_324 = arith.constant 0 : index
    %698 = vector.load %arg14[%c1_320, %c0_321, %c4_322, %c0_323, %c0_324] : memref<2x2x8x4x32xbf16, #tpu.memory_space<vmem>>, vector<1x1x1x4x32xbf16>
    %699 = vector.shape_cast %698 : vector<1x1x1x4x32xbf16> to vector<4x32xbf16>
    %c1_325 = arith.constant 1 : index
    %c1_326 = arith.constant 1 : index
    %c4_327 = arith.constant 4 : index
    %c0_328 = arith.constant 0 : index
    %c0_329 = arith.constant 0 : index
    %700 = vector.load %arg14[%c1_325, %c1_326, %c4_327, %c0_328, %c0_329] : memref<2x2x8x4x32xbf16, #tpu.memory_space<vmem>>, vector<1x1x1x4x32xbf16>
    %701 = vector.shape_cast %700 : vector<1x1x1x4x32xbf16> to vector<4x32xbf16>
    %702 = tpu.concatenate %699, %701 in 1 : vector<4x32xbf16>, vector<4x32xbf16> -> vector<4x64xbf16>
    %703 = vector.shape_cast %697 : vector<4x64xbf16> to vector<1x4x64xbf16>
    %704 = vector.shape_cast %702 : vector<4x64xbf16> to vector<1x4x64xbf16>
    %705 = tpu.concatenate %703, %704 in 0 : vector<1x4x64xbf16>, vector<1x4x64xbf16> -> vector<2x4x64xbf16>
    "tpu.trace_start"() <{level = 10 : i32, message = "dbk,dkn->dbn"}> : () -> ()
    %cst_330 = arith.constant dense<0.000000e+00> : vector<2x4x96xf32>
    %706 = tpu.matmul %705, %516, %cst_330 {dimension_numbers = #tpu.dot_dimension_numbers<[2], [1], [1], [2], [0, 0, 0, 1, 1, 2], [0], [0]>} : vector<2x4x64xbf16>, vector<2x64x96xbf16>, vector<2x4x96xf32> -> vector<2x4x96xf32>
    "tpu.trace_stop"() : () -> ()
    %707 = vector.broadcast %518 : vector<2x1x96xf32> to vector<2x4x96xf32>
    %708 = arith.addf %706, %707 : vector<2x4x96xf32>
    %709 = arith.truncf %692 : vector<2x4x32xf32> to vector<2x4x32xbf16>
    "tpu.trace_start"() <{level = 10 : i32, message = "dbk,dkn->dbn"}> : () -> ()
    %cst_331 = arith.constant dense<0.000000e+00> : vector<2x4x96xf32>
    %710 = tpu.matmul %709, %520, %cst_331 {dimension_numbers = #tpu.dot_dimension_numbers<[2], [1], [1], [2], [0, 0, 0, 1, 1, 2], [0], [0]>} : vector<2x4x32xbf16>, vector<2x32x96xbf16>, vector<2x4x96xf32> -> vector<2x4x96xf32>
    "tpu.trace_stop"() : () -> ()
    %711 = vector.extract_strided_slice %708 {offsets = [0, 0, 0], sizes = [2, 4, 32], strides = [1, 1, 1]} : vector<2x4x96xf32> to vector<2x4x32xf32>
    %712 = vector.extract_strided_slice %710 {offsets = [0, 0, 0], sizes = [2, 4, 32], strides = [1, 1, 1]} : vector<2x4x96xf32> to vector<2x4x32xf32>
    %713 = arith.addf %711, %712 : vector<2x4x32xf32>
    %714 = arith.negf %713 : vector<2x4x32xf32>
    %715 = math.exp %714 : vector<2x4x32xf32>
    %cst_332 = arith.constant 1.000000e+00 : f32
    %716 = vector.broadcast %cst_332 : f32 to vector<2x4x32xf32>
    %717 = arith.addf %716, %715 : vector<2x4x32xf32>
    %718 = arith.divf %716, %717 : vector<2x4x32xf32>
    %719 = vector.extract_strided_slice %708 {offsets = [0, 0, 32], sizes = [2, 4, 32], strides = [1, 1, 1]} : vector<2x4x96xf32> to vector<2x4x32xf32>
    %720 = vector.extract_strided_slice %710 {offsets = [0, 0, 32], sizes = [2, 4, 32], strides = [1, 1, 1]} : vector<2x4x96xf32> to vector<2x4x32xf32>
    %721 = arith.addf %719, %720 : vector<2x4x32xf32>
    %722 = arith.negf %721 : vector<2x4x32xf32>
    %723 = math.exp %722 : vector<2x4x32xf32>
    %cst_333 = arith.constant 1.000000e+00 : f32
    %724 = vector.broadcast %cst_333 : f32 to vector<2x4x32xf32>
    %725 = arith.addf %724, %723 : vector<2x4x32xf32>
    %726 = arith.divf %724, %725 : vector<2x4x32xf32>
    %727 = vector.extract_strided_slice %708 {offsets = [0, 0, 64], sizes = [2, 4, 32], strides = [1, 1, 1]} : vector<2x4x96xf32> to vector<2x4x32xf32>
    %728 = vector.extract_strided_slice %710 {offsets = [0, 0, 64], sizes = [2, 4, 32], strides = [1, 1, 1]} : vector<2x4x96xf32> to vector<2x4x32xf32>
    %729 = vector.broadcast %522 : vector<2x1x32xf32> to vector<2x4x32xf32>
    %730 = arith.addf %728, %729 : vector<2x4x32xf32>
    %731 = arith.mulf %718, %730 : vector<2x4x32xf32>
    %732 = arith.addf %727, %731 : vector<2x4x32xf32>
    %733 = math.tanh %732 : vector<2x4x32xf32>
    %cst_334 = arith.constant 1.000000e+00 : f32
    %734 = vector.broadcast %cst_334 : f32 to vector<2x4x32xf32>
    %735 = arith.subf %734, %726 : vector<2x4x32xf32>
    %736 = arith.mulf %735, %733 : vector<2x4x32xf32>
    %737 = arith.mulf %726, %692 : vector<2x4x32xf32>
    %738 = arith.addf %736, %737 : vector<2x4x32xf32>
    %c3_i32_335 = arith.constant 3 : i32
    %739 = vector.broadcast %c3_i32_335 : i32 to vector<4x1xi32>
    %740 = arith.cmpi sgt, %1, %739 : vector<4x1xi32>
    %c4_i32_336 = arith.constant 4 : i32
    %741 = vector.broadcast %c4_i32_336 : i32 to vector<4x1xi32>
    %742 = arith.cmpi sgt, %1, %741 : vector<4x1xi32>
    %743 = vector.shape_cast %740 : vector<4x1xi1> to vector<1x4x1xi1>
    %744 = vector.shape_cast %742 : vector<4x1xi1> to vector<1x4x1xi1>
    %745 = tpu.concatenate %743, %744 in 0 : vector<1x4x1xi1>, vector<1x4x1xi1> -> vector<2x4x1xi1>
    %746 = vector.shape_cast %745 : vector<2x4x1xi1> to vector<2x4x1xi1>
    %747 = vector.broadcast %746 : vector<2x4x1xi1> to vector<2x4x32xi1>
    %748 = arith.select %747, %738, %692 : vector<2x4x32xi1>, vector<2x4x32xf32>
    %c1_337 = arith.constant 1 : index
    %c0_338 = arith.constant 0 : index
    %c4_339 = arith.constant 4 : index
    %c0_340 = arith.constant 0 : index
    %c0_341 = arith.constant 0 : index
    %749 = vector.load %arg14[%c1_337, %c0_338, %c4_339, %c0_340, %c0_341] : memref<2x2x8x4x32xbf16, #tpu.memory_space<vmem>>, vector<1x1x1x4x32xbf16>
    %750 = vector.shape_cast %749 : vector<1x1x1x4x32xbf16> to vector<4x32xbf16>
    %c1_342 = arith.constant 1 : index
    %c1_343 = arith.constant 1 : index
    %c4_344 = arith.constant 4 : index
    %c0_345 = arith.constant 0 : index
    %c0_346 = arith.constant 0 : index
    %751 = vector.load %arg14[%c1_342, %c1_343, %c4_344, %c0_345, %c0_346] : memref<2x2x8x4x32xbf16, #tpu.memory_space<vmem>>, vector<1x1x1x4x32xbf16>
    %752 = vector.shape_cast %751 : vector<1x1x1x4x32xbf16> to vector<4x32xbf16>
    %753 = tpu.concatenate %750, %752 in 1 : vector<4x32xbf16>, vector<4x32xbf16> -> vector<4x64xbf16>
    %c1_347 = arith.constant 1 : index
    %c0_348 = arith.constant 0 : index
    %c3_349 = arith.constant 3 : index
    %c0_350 = arith.constant 0 : index
    %c0_351 = arith.constant 0 : index
    %754 = vector.load %arg14[%c1_347, %c0_348, %c3_349, %c0_350, %c0_351] : memref<2x2x8x4x32xbf16, #tpu.memory_space<vmem>>, vector<1x1x1x4x32xbf16>
    %755 = vector.shape_cast %754 : vector<1x1x1x4x32xbf16> to vector<4x32xbf16>
    %c1_352 = arith.constant 1 : index
    %c1_353 = arith.constant 1 : index
    %c3_354 = arith.constant 3 : index
    %c0_355 = arith.constant 0 : index
    %c0_356 = arith.constant 0 : index
    %756 = vector.load %arg14[%c1_352, %c1_353, %c3_354, %c0_355, %c0_356] : memref<2x2x8x4x32xbf16, #tpu.memory_space<vmem>>, vector<1x1x1x4x32xbf16>
    %757 = vector.shape_cast %756 : vector<1x1x1x4x32xbf16> to vector<4x32xbf16>
    %758 = tpu.concatenate %755, %757 in 1 : vector<4x32xbf16>, vector<4x32xbf16> -> vector<4x64xbf16>
    %759 = vector.shape_cast %753 : vector<4x64xbf16> to vector<1x4x64xbf16>
    %760 = vector.shape_cast %758 : vector<4x64xbf16> to vector<1x4x64xbf16>
    %761 = tpu.concatenate %759, %760 in 0 : vector<1x4x64xbf16>, vector<1x4x64xbf16> -> vector<2x4x64xbf16>
    "tpu.trace_start"() <{level = 10 : i32, message = "dbk,dkn->dbn"}> : () -> ()
    %cst_357 = arith.constant dense<0.000000e+00> : vector<2x4x96xf32>
    %762 = tpu.matmul %761, %516, %cst_357 {dimension_numbers = #tpu.dot_dimension_numbers<[2], [1], [1], [2], [0, 0, 0, 1, 1, 2], [0], [0]>} : vector<2x4x64xbf16>, vector<2x64x96xbf16>, vector<2x4x96xf32> -> vector<2x4x96xf32>
    "tpu.trace_stop"() : () -> ()
    %763 = vector.broadcast %518 : vector<2x1x96xf32> to vector<2x4x96xf32>
    %764 = arith.addf %762, %763 : vector<2x4x96xf32>
    %765 = arith.truncf %748 : vector<2x4x32xf32> to vector<2x4x32xbf16>
    "tpu.trace_start"() <{level = 10 : i32, message = "dbk,dkn->dbn"}> : () -> ()
    %cst_358 = arith.constant dense<0.000000e+00> : vector<2x4x96xf32>
    %766 = tpu.matmul %765, %520, %cst_358 {dimension_numbers = #tpu.dot_dimension_numbers<[2], [1], [1], [2], [0, 0, 0, 1, 1, 2], [0], [0]>} : vector<2x4x32xbf16>, vector<2x32x96xbf16>, vector<2x4x96xf32> -> vector<2x4x96xf32>
    "tpu.trace_stop"() : () -> ()
    %767 = vector.extract_strided_slice %764 {offsets = [0, 0, 0], sizes = [2, 4, 32], strides = [1, 1, 1]} : vector<2x4x96xf32> to vector<2x4x32xf32>
    %768 = vector.extract_strided_slice %766 {offsets = [0, 0, 0], sizes = [2, 4, 32], strides = [1, 1, 1]} : vector<2x4x96xf32> to vector<2x4x32xf32>
    %769 = arith.addf %767, %768 : vector<2x4x32xf32>
    %770 = arith.negf %769 : vector<2x4x32xf32>
    %771 = math.exp %770 : vector<2x4x32xf32>
    %cst_359 = arith.constant 1.000000e+00 : f32
    %772 = vector.broadcast %cst_359 : f32 to vector<2x4x32xf32>
    %773 = arith.addf %772, %771 : vector<2x4x32xf32>
    %774 = arith.divf %772, %773 : vector<2x4x32xf32>
    %775 = vector.extract_strided_slice %764 {offsets = [0, 0, 32], sizes = [2, 4, 32], strides = [1, 1, 1]} : vector<2x4x96xf32> to vector<2x4x32xf32>
    %776 = vector.extract_strided_slice %766 {offsets = [0, 0, 32], sizes = [2, 4, 32], strides = [1, 1, 1]} : vector<2x4x96xf32> to vector<2x4x32xf32>
    %777 = arith.addf %775, %776 : vector<2x4x32xf32>
    %778 = arith.negf %777 : vector<2x4x32xf32>
    %779 = math.exp %778 : vector<2x4x32xf32>
    %cst_360 = arith.constant 1.000000e+00 : f32
    %780 = vector.broadcast %cst_360 : f32 to vector<2x4x32xf32>
    %781 = arith.addf %780, %779 : vector<2x4x32xf32>
    %782 = arith.divf %780, %781 : vector<2x4x32xf32>
    %783 = vector.extract_strided_slice %764 {offsets = [0, 0, 64], sizes = [2, 4, 32], strides = [1, 1, 1]} : vector<2x4x96xf32> to vector<2x4x32xf32>
    %784 = vector.extract_strided_slice %766 {offsets = [0, 0, 64], sizes = [2, 4, 32], strides = [1, 1, 1]} : vector<2x4x96xf32> to vector<2x4x32xf32>
    %785 = vector.broadcast %522 : vector<2x1x32xf32> to vector<2x4x32xf32>
    %786 = arith.addf %784, %785 : vector<2x4x32xf32>
    %787 = arith.mulf %774, %786 : vector<2x4x32xf32>
    %788 = arith.addf %783, %787 : vector<2x4x32xf32>
    %789 = math.tanh %788 : vector<2x4x32xf32>
    %cst_361 = arith.constant 1.000000e+00 : f32
    %790 = vector.broadcast %cst_361 : f32 to vector<2x4x32xf32>
    %791 = arith.subf %790, %782 : vector<2x4x32xf32>
    %792 = arith.mulf %791, %789 : vector<2x4x32xf32>
    %793 = arith.mulf %782, %748 : vector<2x4x32xf32>
    %794 = arith.addf %792, %793 : vector<2x4x32xf32>
    %c4_i32_362 = arith.constant 4 : i32
    %795 = vector.broadcast %c4_i32_362 : i32 to vector<4x1xi32>
    %796 = arith.cmpi sgt, %1, %795 : vector<4x1xi32>
    %c3_i32_363 = arith.constant 3 : i32
    %797 = vector.broadcast %c3_i32_363 : i32 to vector<4x1xi32>
    %798 = arith.cmpi sgt, %1, %797 : vector<4x1xi32>
    %799 = vector.shape_cast %796 : vector<4x1xi1> to vector<1x4x1xi1>
    %800 = vector.shape_cast %798 : vector<4x1xi1> to vector<1x4x1xi1>
    %801 = tpu.concatenate %799, %800 in 0 : vector<1x4x1xi1>, vector<1x4x1xi1> -> vector<2x4x1xi1>
    %802 = vector.shape_cast %801 : vector<2x4x1xi1> to vector<2x4x1xi1>
    %803 = vector.broadcast %802 : vector<2x4x1xi1> to vector<2x4x32xi1>
    %804 = arith.select %803, %794, %748 : vector<2x4x32xi1>, vector<2x4x32xf32>
    %c1_364 = arith.constant 1 : index
    %c0_365 = arith.constant 0 : index
    %c5_366 = arith.constant 5 : index
    %c0_367 = arith.constant 0 : index
    %c0_368 = arith.constant 0 : index
    %805 = vector.load %arg14[%c1_364, %c0_365, %c5_366, %c0_367, %c0_368] : memref<2x2x8x4x32xbf16, #tpu.memory_space<vmem>>, vector<1x1x1x4x32xbf16>
    %806 = vector.shape_cast %805 : vector<1x1x1x4x32xbf16> to vector<4x32xbf16>
    %c1_369 = arith.constant 1 : index
    %c1_370 = arith.constant 1 : index
    %c5_371 = arith.constant 5 : index
    %c0_372 = arith.constant 0 : index
    %c0_373 = arith.constant 0 : index
    %807 = vector.load %arg14[%c1_369, %c1_370, %c5_371, %c0_372, %c0_373] : memref<2x2x8x4x32xbf16, #tpu.memory_space<vmem>>, vector<1x1x1x4x32xbf16>
    %808 = vector.shape_cast %807 : vector<1x1x1x4x32xbf16> to vector<4x32xbf16>
    %809 = tpu.concatenate %806, %808 in 1 : vector<4x32xbf16>, vector<4x32xbf16> -> vector<4x64xbf16>
    %c1_374 = arith.constant 1 : index
    %c0_375 = arith.constant 0 : index
    %c2_376 = arith.constant 2 : index
    %c0_377 = arith.constant 0 : index
    %c0_378 = arith.constant 0 : index
    %810 = vector.load %arg14[%c1_374, %c0_375, %c2_376, %c0_377, %c0_378] : memref<2x2x8x4x32xbf16, #tpu.memory_space<vmem>>, vector<1x1x1x4x32xbf16>
    %811 = vector.shape_cast %810 : vector<1x1x1x4x32xbf16> to vector<4x32xbf16>
    %c1_379 = arith.constant 1 : index
    %c1_380 = arith.constant 1 : index
    %c2_381 = arith.constant 2 : index
    %c0_382 = arith.constant 0 : index
    %c0_383 = arith.constant 0 : index
    %812 = vector.load %arg14[%c1_379, %c1_380, %c2_381, %c0_382, %c0_383] : memref<2x2x8x4x32xbf16, #tpu.memory_space<vmem>>, vector<1x1x1x4x32xbf16>
    %813 = vector.shape_cast %812 : vector<1x1x1x4x32xbf16> to vector<4x32xbf16>
    %814 = tpu.concatenate %811, %813 in 1 : vector<4x32xbf16>, vector<4x32xbf16> -> vector<4x64xbf16>
    %815 = vector.shape_cast %809 : vector<4x64xbf16> to vector<1x4x64xbf16>
    %816 = vector.shape_cast %814 : vector<4x64xbf16> to vector<1x4x64xbf16>
    %817 = tpu.concatenate %815, %816 in 0 : vector<1x4x64xbf16>, vector<1x4x64xbf16> -> vector<2x4x64xbf16>
    "tpu.trace_start"() <{level = 10 : i32, message = "dbk,dkn->dbn"}> : () -> ()
    %cst_384 = arith.constant dense<0.000000e+00> : vector<2x4x96xf32>
    %818 = tpu.matmul %817, %516, %cst_384 {dimension_numbers = #tpu.dot_dimension_numbers<[2], [1], [1], [2], [0, 0, 0, 1, 1, 2], [0], [0]>} : vector<2x4x64xbf16>, vector<2x64x96xbf16>, vector<2x4x96xf32> -> vector<2x4x96xf32>
    "tpu.trace_stop"() : () -> ()
    %819 = vector.broadcast %518 : vector<2x1x96xf32> to vector<2x4x96xf32>
    %820 = arith.addf %818, %819 : vector<2x4x96xf32>
    %821 = arith.truncf %804 : vector<2x4x32xf32> to vector<2x4x32xbf16>
    "tpu.trace_start"() <{level = 10 : i32, message = "dbk,dkn->dbn"}> : () -> ()
    %cst_385 = arith.constant dense<0.000000e+00> : vector<2x4x96xf32>
    %822 = tpu.matmul %821, %520, %cst_385 {dimension_numbers = #tpu.dot_dimension_numbers<[2], [1], [1], [2], [0, 0, 0, 1, 1, 2], [0], [0]>} : vector<2x4x32xbf16>, vector<2x32x96xbf16>, vector<2x4x96xf32> -> vector<2x4x96xf32>
    "tpu.trace_stop"() : () -> ()
    %823 = vector.extract_strided_slice %820 {offsets = [0, 0, 0], sizes = [2, 4, 32], strides = [1, 1, 1]} : vector<2x4x96xf32> to vector<2x4x32xf32>
    %824 = vector.extract_strided_slice %822 {offsets = [0, 0, 0], sizes = [2, 4, 32], strides = [1, 1, 1]} : vector<2x4x96xf32> to vector<2x4x32xf32>
    %825 = arith.addf %823, %824 : vector<2x4x32xf32>
    %826 = arith.negf %825 : vector<2x4x32xf32>
    %827 = math.exp %826 : vector<2x4x32xf32>
    %cst_386 = arith.constant 1.000000e+00 : f32
    %828 = vector.broadcast %cst_386 : f32 to vector<2x4x32xf32>
    %829 = arith.addf %828, %827 : vector<2x4x32xf32>
    %830 = arith.divf %828, %829 : vector<2x4x32xf32>
    %831 = vector.extract_strided_slice %820 {offsets = [0, 0, 32], sizes = [2, 4, 32], strides = [1, 1, 1]} : vector<2x4x96xf32> to vector<2x4x32xf32>
    %832 = vector.extract_strided_slice %822 {offsets = [0, 0, 32], sizes = [2, 4, 32], strides = [1, 1, 1]} : vector<2x4x96xf32> to vector<2x4x32xf32>
    %833 = arith.addf %831, %832 : vector<2x4x32xf32>
    %834 = arith.negf %833 : vector<2x4x32xf32>
    %835 = math.exp %834 : vector<2x4x32xf32>
    %cst_387 = arith.constant 1.000000e+00 : f32
    %836 = vector.broadcast %cst_387 : f32 to vector<2x4x32xf32>
    %837 = arith.addf %836, %835 : vector<2x4x32xf32>
    %838 = arith.divf %836, %837 : vector<2x4x32xf32>
    %839 = vector.extract_strided_slice %820 {offsets = [0, 0, 64], sizes = [2, 4, 32], strides = [1, 1, 1]} : vector<2x4x96xf32> to vector<2x4x32xf32>
    %840 = vector.extract_strided_slice %822 {offsets = [0, 0, 64], sizes = [2, 4, 32], strides = [1, 1, 1]} : vector<2x4x96xf32> to vector<2x4x32xf32>
    %841 = vector.broadcast %522 : vector<2x1x32xf32> to vector<2x4x32xf32>
    %842 = arith.addf %840, %841 : vector<2x4x32xf32>
    %843 = arith.mulf %830, %842 : vector<2x4x32xf32>
    %844 = arith.addf %839, %843 : vector<2x4x32xf32>
    %845 = math.tanh %844 : vector<2x4x32xf32>
    %cst_388 = arith.constant 1.000000e+00 : f32
    %846 = vector.broadcast %cst_388 : f32 to vector<2x4x32xf32>
    %847 = arith.subf %846, %838 : vector<2x4x32xf32>
    %848 = arith.mulf %847, %845 : vector<2x4x32xf32>
    %849 = arith.mulf %838, %804 : vector<2x4x32xf32>
    %850 = arith.addf %848, %849 : vector<2x4x32xf32>
    %c5_i32_389 = arith.constant 5 : i32
    %851 = vector.broadcast %c5_i32_389 : i32 to vector<4x1xi32>
    %852 = arith.cmpi sgt, %1, %851 : vector<4x1xi32>
    %c2_i32_390 = arith.constant 2 : i32
    %853 = vector.broadcast %c2_i32_390 : i32 to vector<4x1xi32>
    %854 = arith.cmpi sgt, %1, %853 : vector<4x1xi32>
    %855 = vector.shape_cast %852 : vector<4x1xi1> to vector<1x4x1xi1>
    %856 = vector.shape_cast %854 : vector<4x1xi1> to vector<1x4x1xi1>
    %857 = tpu.concatenate %855, %856 in 0 : vector<1x4x1xi1>, vector<1x4x1xi1> -> vector<2x4x1xi1>
    %858 = vector.shape_cast %857 : vector<2x4x1xi1> to vector<2x4x1xi1>
    %859 = vector.broadcast %858 : vector<2x4x1xi1> to vector<2x4x32xi1>
    %860 = arith.select %859, %850, %804 : vector<2x4x32xi1>, vector<2x4x32xf32>
    %c1_391 = arith.constant 1 : index
    %c0_392 = arith.constant 0 : index
    %c6_393 = arith.constant 6 : index
    %c0_394 = arith.constant 0 : index
    %c0_395 = arith.constant 0 : index
    %861 = vector.load %arg14[%c1_391, %c0_392, %c6_393, %c0_394, %c0_395] : memref<2x2x8x4x32xbf16, #tpu.memory_space<vmem>>, vector<1x1x1x4x32xbf16>
    %862 = vector.shape_cast %861 : vector<1x1x1x4x32xbf16> to vector<4x32xbf16>
    %c1_396 = arith.constant 1 : index
    %c1_397 = arith.constant 1 : index
    %c6_398 = arith.constant 6 : index
    %c0_399 = arith.constant 0 : index
    %c0_400 = arith.constant 0 : index
    %863 = vector.load %arg14[%c1_396, %c1_397, %c6_398, %c0_399, %c0_400] : memref<2x2x8x4x32xbf16, #tpu.memory_space<vmem>>, vector<1x1x1x4x32xbf16>
    %864 = vector.shape_cast %863 : vector<1x1x1x4x32xbf16> to vector<4x32xbf16>
    %865 = tpu.concatenate %862, %864 in 1 : vector<4x32xbf16>, vector<4x32xbf16> -> vector<4x64xbf16>
    %c1_401 = arith.constant 1 : index
    %c0_402 = arith.constant 0 : index
    %c1_403 = arith.constant 1 : index
    %c0_404 = arith.constant 0 : index
    %c0_405 = arith.constant 0 : index
    %866 = vector.load %arg14[%c1_401, %c0_402, %c1_403, %c0_404, %c0_405] : memref<2x2x8x4x32xbf16, #tpu.memory_space<vmem>>, vector<1x1x1x4x32xbf16>
    %867 = vector.shape_cast %866 : vector<1x1x1x4x32xbf16> to vector<4x32xbf16>
    %c1_406 = arith.constant 1 : index
    %c1_407 = arith.constant 1 : index
    %c1_408 = arith.constant 1 : index
    %c0_409 = arith.constant 0 : index
    %c0_410 = arith.constant 0 : index
    %868 = vector.load %arg14[%c1_406, %c1_407, %c1_408, %c0_409, %c0_410] : memref<2x2x8x4x32xbf16, #tpu.memory_space<vmem>>, vector<1x1x1x4x32xbf16>
    %869 = vector.shape_cast %868 : vector<1x1x1x4x32xbf16> to vector<4x32xbf16>
    %870 = tpu.concatenate %867, %869 in 1 : vector<4x32xbf16>, vector<4x32xbf16> -> vector<4x64xbf16>
    %871 = vector.shape_cast %865 : vector<4x64xbf16> to vector<1x4x64xbf16>
    %872 = vector.shape_cast %870 : vector<4x64xbf16> to vector<1x4x64xbf16>
    %873 = tpu.concatenate %871, %872 in 0 : vector<1x4x64xbf16>, vector<1x4x64xbf16> -> vector<2x4x64xbf16>
    "tpu.trace_start"() <{level = 10 : i32, message = "dbk,dkn->dbn"}> : () -> ()
    %cst_411 = arith.constant dense<0.000000e+00> : vector<2x4x96xf32>
    %874 = tpu.matmul %873, %516, %cst_411 {dimension_numbers = #tpu.dot_dimension_numbers<[2], [1], [1], [2], [0, 0, 0, 1, 1, 2], [0], [0]>} : vector<2x4x64xbf16>, vector<2x64x96xbf16>, vector<2x4x96xf32> -> vector<2x4x96xf32>
    "tpu.trace_stop"() : () -> ()
    %875 = vector.broadcast %518 : vector<2x1x96xf32> to vector<2x4x96xf32>
    %876 = arith.addf %874, %875 : vector<2x4x96xf32>
    %877 = arith.truncf %860 : vector<2x4x32xf32> to vector<2x4x32xbf16>
    "tpu.trace_start"() <{level = 10 : i32, message = "dbk,dkn->dbn"}> : () -> ()
    %cst_412 = arith.constant dense<0.000000e+00> : vector<2x4x96xf32>
    %878 = tpu.matmul %877, %520, %cst_412 {dimension_numbers = #tpu.dot_dimension_numbers<[2], [1], [1], [2], [0, 0, 0, 1, 1, 2], [0], [0]>} : vector<2x4x32xbf16>, vector<2x32x96xbf16>, vector<2x4x96xf32> -> vector<2x4x96xf32>
    "tpu.trace_stop"() : () -> ()
    %879 = vector.extract_strided_slice %876 {offsets = [0, 0, 0], sizes = [2, 4, 32], strides = [1, 1, 1]} : vector<2x4x96xf32> to vector<2x4x32xf32>
    %880 = vector.extract_strided_slice %878 {offsets = [0, 0, 0], sizes = [2, 4, 32], strides = [1, 1, 1]} : vector<2x4x96xf32> to vector<2x4x32xf32>
    %881 = arith.addf %879, %880 : vector<2x4x32xf32>
    %882 = arith.negf %881 : vector<2x4x32xf32>
    %883 = math.exp %882 : vector<2x4x32xf32>
    %cst_413 = arith.constant 1.000000e+00 : f32
    %884 = vector.broadcast %cst_413 : f32 to vector<2x4x32xf32>
    %885 = arith.addf %884, %883 : vector<2x4x32xf32>
    %886 = arith.divf %884, %885 : vector<2x4x32xf32>
    %887 = vector.extract_strided_slice %876 {offsets = [0, 0, 32], sizes = [2, 4, 32], strides = [1, 1, 1]} : vector<2x4x96xf32> to vector<2x4x32xf32>
    %888 = vector.extract_strided_slice %878 {offsets = [0, 0, 32], sizes = [2, 4, 32], strides = [1, 1, 1]} : vector<2x4x96xf32> to vector<2x4x32xf32>
    %889 = arith.addf %887, %888 : vector<2x4x32xf32>
    %890 = arith.negf %889 : vector<2x4x32xf32>
    %891 = math.exp %890 : vector<2x4x32xf32>
    %cst_414 = arith.constant 1.000000e+00 : f32
    %892 = vector.broadcast %cst_414 : f32 to vector<2x4x32xf32>
    %893 = arith.addf %892, %891 : vector<2x4x32xf32>
    %894 = arith.divf %892, %893 : vector<2x4x32xf32>
    %895 = vector.extract_strided_slice %876 {offsets = [0, 0, 64], sizes = [2, 4, 32], strides = [1, 1, 1]} : vector<2x4x96xf32> to vector<2x4x32xf32>
    %896 = vector.extract_strided_slice %878 {offsets = [0, 0, 64], sizes = [2, 4, 32], strides = [1, 1, 1]} : vector<2x4x96xf32> to vector<2x4x32xf32>
    %897 = vector.broadcast %522 : vector<2x1x32xf32> to vector<2x4x32xf32>
    %898 = arith.addf %896, %897 : vector<2x4x32xf32>
    %899 = arith.mulf %886, %898 : vector<2x4x32xf32>
    %900 = arith.addf %895, %899 : vector<2x4x32xf32>
    %901 = math.tanh %900 : vector<2x4x32xf32>
    %cst_415 = arith.constant 1.000000e+00 : f32
    %902 = vector.broadcast %cst_415 : f32 to vector<2x4x32xf32>
    %903 = arith.subf %902, %894 : vector<2x4x32xf32>
    %904 = arith.mulf %903, %901 : vector<2x4x32xf32>
    %905 = arith.mulf %894, %860 : vector<2x4x32xf32>
    %906 = arith.addf %904, %905 : vector<2x4x32xf32>
    %c6_i32_416 = arith.constant 6 : i32
    %907 = vector.broadcast %c6_i32_416 : i32 to vector<4x1xi32>
    %908 = arith.cmpi sgt, %1, %907 : vector<4x1xi32>
    %c1_i32_417 = arith.constant 1 : i32
    %909 = vector.broadcast %c1_i32_417 : i32 to vector<4x1xi32>
    %910 = arith.cmpi sgt, %1, %909 : vector<4x1xi32>
    %911 = vector.shape_cast %908 : vector<4x1xi1> to vector<1x4x1xi1>
    %912 = vector.shape_cast %910 : vector<4x1xi1> to vector<1x4x1xi1>
    %913 = tpu.concatenate %911, %912 in 0 : vector<1x4x1xi1>, vector<1x4x1xi1> -> vector<2x4x1xi1>
    %914 = vector.shape_cast %913 : vector<2x4x1xi1> to vector<2x4x1xi1>
    %915 = vector.broadcast %914 : vector<2x4x1xi1> to vector<2x4x32xi1>
    %916 = arith.select %915, %906, %860 : vector<2x4x32xi1>, vector<2x4x32xf32>
    %c1_418 = arith.constant 1 : index
    %c0_419 = arith.constant 0 : index
    %c7_420 = arith.constant 7 : index
    %c0_421 = arith.constant 0 : index
    %c0_422 = arith.constant 0 : index
    %917 = vector.load %arg14[%c1_418, %c0_419, %c7_420, %c0_421, %c0_422] : memref<2x2x8x4x32xbf16, #tpu.memory_space<vmem>>, vector<1x1x1x4x32xbf16>
    %918 = vector.shape_cast %917 : vector<1x1x1x4x32xbf16> to vector<4x32xbf16>
    %c1_423 = arith.constant 1 : index
    %c1_424 = arith.constant 1 : index
    %c7_425 = arith.constant 7 : index
    %c0_426 = arith.constant 0 : index
    %c0_427 = arith.constant 0 : index
    %919 = vector.load %arg14[%c1_423, %c1_424, %c7_425, %c0_426, %c0_427] : memref<2x2x8x4x32xbf16, #tpu.memory_space<vmem>>, vector<1x1x1x4x32xbf16>
    %920 = vector.shape_cast %919 : vector<1x1x1x4x32xbf16> to vector<4x32xbf16>
    %921 = tpu.concatenate %918, %920 in 1 : vector<4x32xbf16>, vector<4x32xbf16> -> vector<4x64xbf16>
    %c1_428 = arith.constant 1 : index
    %c0_429 = arith.constant 0 : index
    %c0_430 = arith.constant 0 : index
    %c0_431 = arith.constant 0 : index
    %c0_432 = arith.constant 0 : index
    %922 = vector.load %arg14[%c1_428, %c0_429, %c0_430, %c0_431, %c0_432] : memref<2x2x8x4x32xbf16, #tpu.memory_space<vmem>>, vector<1x1x1x4x32xbf16>
    %923 = vector.shape_cast %922 : vector<1x1x1x4x32xbf16> to vector<4x32xbf16>
    %c1_433 = arith.constant 1 : index
    %c1_434 = arith.constant 1 : index
    %c0_435 = arith.constant 0 : index
    %c0_436 = arith.constant 0 : index
    %c0_437 = arith.constant 0 : index
    %924 = vector.load %arg14[%c1_433, %c1_434, %c0_435, %c0_436, %c0_437] : memref<2x2x8x4x32xbf16, #tpu.memory_space<vmem>>, vector<1x1x1x4x32xbf16>
    %925 = vector.shape_cast %924 : vector<1x1x1x4x32xbf16> to vector<4x32xbf16>
    %926 = tpu.concatenate %923, %925 in 1 : vector<4x32xbf16>, vector<4x32xbf16> -> vector<4x64xbf16>
    %927 = vector.shape_cast %921 : vector<4x64xbf16> to vector<1x4x64xbf16>
    %928 = vector.shape_cast %926 : vector<4x64xbf16> to vector<1x4x64xbf16>
    %929 = tpu.concatenate %927, %928 in 0 : vector<1x4x64xbf16>, vector<1x4x64xbf16> -> vector<2x4x64xbf16>
    "tpu.trace_start"() <{level = 10 : i32, message = "dbk,dkn->dbn"}> : () -> ()
    %cst_438 = arith.constant dense<0.000000e+00> : vector<2x4x96xf32>
    %930 = tpu.matmul %929, %516, %cst_438 {dimension_numbers = #tpu.dot_dimension_numbers<[2], [1], [1], [2], [0, 0, 0, 1, 1, 2], [0], [0]>} : vector<2x4x64xbf16>, vector<2x64x96xbf16>, vector<2x4x96xf32> -> vector<2x4x96xf32>
    "tpu.trace_stop"() : () -> ()
    %931 = vector.broadcast %518 : vector<2x1x96xf32> to vector<2x4x96xf32>
    %932 = arith.addf %930, %931 : vector<2x4x96xf32>
    %933 = arith.truncf %916 : vector<2x4x32xf32> to vector<2x4x32xbf16>
    "tpu.trace_start"() <{level = 10 : i32, message = "dbk,dkn->dbn"}> : () -> ()
    %cst_439 = arith.constant dense<0.000000e+00> : vector<2x4x96xf32>
    %934 = tpu.matmul %933, %520, %cst_439 {dimension_numbers = #tpu.dot_dimension_numbers<[2], [1], [1], [2], [0, 0, 0, 1, 1, 2], [0], [0]>} : vector<2x4x32xbf16>, vector<2x32x96xbf16>, vector<2x4x96xf32> -> vector<2x4x96xf32>
    "tpu.trace_stop"() : () -> ()
    %935 = vector.extract_strided_slice %932 {offsets = [0, 0, 0], sizes = [2, 4, 32], strides = [1, 1, 1]} : vector<2x4x96xf32> to vector<2x4x32xf32>
    %936 = vector.extract_strided_slice %934 {offsets = [0, 0, 0], sizes = [2, 4, 32], strides = [1, 1, 1]} : vector<2x4x96xf32> to vector<2x4x32xf32>
    %937 = arith.addf %935, %936 : vector<2x4x32xf32>
    %938 = arith.negf %937 : vector<2x4x32xf32>
    %939 = math.exp %938 : vector<2x4x32xf32>
    %cst_440 = arith.constant 1.000000e+00 : f32
    %940 = vector.broadcast %cst_440 : f32 to vector<2x4x32xf32>
    %941 = arith.addf %940, %939 : vector<2x4x32xf32>
    %942 = arith.divf %940, %941 : vector<2x4x32xf32>
    %943 = vector.extract_strided_slice %932 {offsets = [0, 0, 32], sizes = [2, 4, 32], strides = [1, 1, 1]} : vector<2x4x96xf32> to vector<2x4x32xf32>
    %944 = vector.extract_strided_slice %934 {offsets = [0, 0, 32], sizes = [2, 4, 32], strides = [1, 1, 1]} : vector<2x4x96xf32> to vector<2x4x32xf32>
    %945 = arith.addf %943, %944 : vector<2x4x32xf32>
    %946 = arith.negf %945 : vector<2x4x32xf32>
    %947 = math.exp %946 : vector<2x4x32xf32>
    %cst_441 = arith.constant 1.000000e+00 : f32
    %948 = vector.broadcast %cst_441 : f32 to vector<2x4x32xf32>
    %949 = arith.addf %948, %947 : vector<2x4x32xf32>
    %950 = arith.divf %948, %949 : vector<2x4x32xf32>
    %951 = vector.extract_strided_slice %932 {offsets = [0, 0, 64], sizes = [2, 4, 32], strides = [1, 1, 1]} : vector<2x4x96xf32> to vector<2x4x32xf32>
    %952 = vector.extract_strided_slice %934 {offsets = [0, 0, 64], sizes = [2, 4, 32], strides = [1, 1, 1]} : vector<2x4x96xf32> to vector<2x4x32xf32>
    %953 = vector.broadcast %522 : vector<2x1x32xf32> to vector<2x4x32xf32>
    %954 = arith.addf %952, %953 : vector<2x4x32xf32>
    %955 = arith.mulf %942, %954 : vector<2x4x32xf32>
    %956 = arith.addf %951, %955 : vector<2x4x32xf32>
    %957 = math.tanh %956 : vector<2x4x32xf32>
    %cst_442 = arith.constant 1.000000e+00 : f32
    %958 = vector.broadcast %cst_442 : f32 to vector<2x4x32xf32>
    %959 = arith.subf %958, %950 : vector<2x4x32xf32>
    %960 = arith.mulf %959, %957 : vector<2x4x32xf32>
    %961 = arith.mulf %950, %916 : vector<2x4x32xf32>
    %962 = arith.addf %960, %961 : vector<2x4x32xf32>
    %c7_i32_443 = arith.constant 7 : i32
    %963 = vector.broadcast %c7_i32_443 : i32 to vector<4x1xi32>
    %964 = arith.cmpi sgt, %1, %963 : vector<4x1xi32>
    %c0_i32_444 = arith.constant 0 : i32
    %965 = vector.broadcast %c0_i32_444 : i32 to vector<4x1xi32>
    %966 = arith.cmpi sgt, %1, %965 : vector<4x1xi32>
    %967 = vector.shape_cast %964 : vector<4x1xi1> to vector<1x4x1xi1>
    %968 = vector.shape_cast %966 : vector<4x1xi1> to vector<1x4x1xi1>
    %969 = tpu.concatenate %967, %968 in 0 : vector<1x4x1xi1>, vector<1x4x1xi1> -> vector<2x4x1xi1>
    %970 = vector.shape_cast %969 : vector<2x4x1xi1> to vector<2x4x1xi1>
    %971 = vector.broadcast %970 : vector<2x4x1xi1> to vector<2x4x32xi1>
    %972 = arith.select %971, %962, %916 : vector<2x4x32xi1>, vector<2x4x32xf32>
    %973 = vector.extract_strided_slice %972 {offsets = [0, 0, 0], sizes = [1, 4, 32], strides = [1, 1, 1]} : vector<2x4x32xf32> to vector<1x4x32xf32>
    %974 = vector.shape_cast %973 : vector<1x4x32xf32> to vector<4x32xf32>
    %975 = arith.addf %514, %974 : vector<4x32xf32>
    %976 = vector.extract_strided_slice %972 {offsets = [1, 0, 0], sizes = [1, 4, 32], strides = [1, 1, 1]} : vector<2x4x32xf32> to vector<1x4x32xf32>
    %977 = vector.shape_cast %976 : vector<1x4x32xf32> to vector<4x32xf32>
    %978 = arith.addf %975, %977 : vector<4x32xf32>
    %c0_445 = arith.constant 0 : index
    %c0_446 = arith.constant 0 : index
    %c0_447 = arith.constant 0 : index
    %979 = vector.load %arg12[%c0_445, %c0_446, %c0_447] : memref<1x32x32xf32, #tpu.memory_space<vmem>>, vector<1x32x32xf32>
    %980 = vector.shape_cast %979 : vector<1x32x32xf32> to vector<32x32xf32>
    %cst_448 = arith.constant dense<0.000000e+00> : vector<4x32xf32>
    %981 = tpu.matmul %978, %980, %cst_448 {dimension_numbers = #tpu.dot_dimension_numbers<[1], [0], [0], [1], [0, 0, 1, 1], [], []>} : vector<4x32xf32>, vector<32x32xf32>, vector<4x32xf32> -> vector<4x32xf32>
    %c0_449 = arith.constant 0 : index
    %c0_450 = arith.constant 0 : index
    %c0_451 = arith.constant 0 : index
    %982 = vector.load %arg13[%c0_449, %c0_450, %c0_451] : memref<1x4x32xf32, #tpu.memory_space<vmem>>, vector<1x4x32xf32>
    %983 = vector.shape_cast %982 : vector<1x4x32xf32> to vector<4x32xf32>
    %984 = vector.shape_cast %981 : vector<4x32xf32> to vector<1x4x32xf32>
    tpu.vector_store %arg13[%c0_449, %c0_450, %c0_451], %984 {strides = array<i32>} : memref<1x4x32xf32, #tpu.memory_space<vmem>>, vector<1x4x32xf32>,
    return
  }
  func.func @transform_0(%arg0: i32) -> (i32, i32, i32, i32) {
    %c0_i32 = arith.constant 0 : i32
    %c0_i32_0 = arith.constant 0 : i32
    %c0_i32_1 = arith.constant 0 : i32
    %c0_i32_2 = arith.constant 0 : i32
    return %arg0, %c0_i32, %c0_i32_0, %c0_i32_1 : i32, i32, i32, i32
  }
  func.func @transform_1(%arg0: i32) -> (i32, i32, i32) {
    %c0_i32 = arith.constant 0 : i32
    %c0_i32_0 = arith.constant 0 : i32
    %c0_i32_1 = arith.constant 0 : i32
    return %arg0, %c0_i32, %c0_i32_0 : i32, i32, i32
  }
  func.func @transform_2(%arg0: i32) -> (i32, i32, i32, i32, i32) {
    %c0_i32 = arith.constant 0 : i32
    %c0_i32_0 = arith.constant 0 : i32
    %c0_i32_1 = arith.constant 0 : i32
    %c0_i32_2 = arith.constant 0 : i32
    %c0_i32_3 = arith.constant 0 : i32
    return %arg0, %c0_i32, %c0_i32_0, %c0_i32_1, %c0_i32_2 : i32, i32, i32, i32, i32
  }
  func.func @transform_3(%arg0: i32) -> (i32, i32, i32, i32) {
    %c0_i32 = arith.constant 0 : i32
    %c0_i32_0 = arith.constant 0 : i32
    %c0_i32_1 = arith.constant 0 : i32
    %c0_i32_2 = arith.constant 0 : i32
    return %arg0, %c0_i32, %c0_i32_0, %c0_i32_1 : i32, i32, i32, i32
  }
  func.func @transform_4(%arg0: i32) -> (i32, i32, i32, i32) {
    %c0_i32 = arith.constant 0 : i32
    %c0_i32_0 = arith.constant 0 : i32
    %c0_i32_1 = arith.constant 0 : i32
    %c0_i32_2 = arith.constant 0 : i32
    return %arg0, %c0_i32, %c0_i32_0, %c0_i32_1 : i32, i32, i32, i32
  }
  func.func @transform_5(%arg0: i32) -> (i32, i32, i32, i32) {
    %c0_i32 = arith.constant 0 : i32
    %c0_i32_0 = arith.constant 0 : i32
    %c0_i32_1 = arith.constant 0 : i32
    %c0_i32_2 = arith.constant 0 : i32
    return %arg0, %c0_i32, %c0_i32_0, %c0_i32_1 : i32, i32, i32, i32
  }
  func.func @transform_6(%arg0: i32) -> (i32, i32, i32, i32) {
    %c0_i32 = arith.constant 0 : i32
    %c0_i32_0 = arith.constant 0 : i32
    %c0_i32_1 = arith.constant 0 : i32
    %c0_i32_2 = arith.constant 0 : i32
    return %arg0, %c0_i32, %c0_i32_0, %c0_i32_1 : i32, i32, i32, i32
  }
  func.func @transform_7(%arg0: i32) -> (i32, i32, i32, i32) {
    %c0_i32 = arith.constant 0 : i32
    %c0_i32_0 = arith.constant 0 : i32
    %c0_i32_1 = arith.constant 0 : i32
    %c0_i32_2 = arith.constant 0 : i32
    return %arg0, %c0_i32, %c0_i32_0, %c0_i32_1 : i32, i32, i32, i32
  }
  func.func @transform_8(%arg0: i32) -> (i32, i32, i32, i32) {
    %c0_i32 = arith.constant 0 : i32
    %c0_i32_0 = arith.constant 0 : i32
    %c0_i32_1 = arith.constant 0 : i32
    %c0_i32_2 = arith.constant 0 : i32
    return %arg0, %c0_i32, %c0_i32_0, %c0_i32_1 : i32, i32, i32, i32
  }
  func.func @transform_9(%arg0: i32) -> (i32, i32, i32, i32) {
    %c0_i32 = arith.constant 0 : i32
    %c0_i32_0 = arith.constant 0 : i32
    %c0_i32_1 = arith.constant 0 : i32
    %c0_i32_2 = arith.constant 0 : i32
    return %arg0, %c0_i32, %c0_i32_0, %c0_i32_1 : i32, i32, i32, i32
  }
  func.func @transform_10(%arg0: i32) -> (i32, i32, i32, i32) {
    %c0_i32 = arith.constant 0 : i32
    %c0_i32_0 = arith.constant 0 : i32
    %c0_i32_1 = arith.constant 0 : i32
    %c0_i32_2 = arith.constant 0 : i32
    return %arg0, %c0_i32, %c0_i32_0, %c0_i32_1 : i32, i32, i32, i32
  }
  func.func @transform_11(%arg0: i32) -> (i32, i32, i32) {
    %c0_i32 = arith.constant 0 : i32
    %c0_i32_0 = arith.constant 0 : i32
    %c0_i32_1 = arith.constant 0 : i32
    return %arg0, %c0_i32, %c0_i32_0 : i32, i32, i32
  }
  func.func @transform_12(%arg0: i32) -> (i32, i32, i32) {
    %c0_i32 = arith.constant 0 : i32
    %c0_i32_0 = arith.constant 0 : i32
    %c0_i32_1 = arith.constant 0 : i32
    return %arg0, %c0_i32, %c0_i32_0 : i32, i32, i32
  }
}

</mosaic_0001>

<bundles_post_ra>
// kernel: rnn_forward.3
= control target key start
LH: loop header
LB: loop body
LE: loop exit
PB: predicated region body
PF: predicated region fallthrough
CT: control target
= control target key end

     0   :  { %v177_v1 = vmov 0.0   ;;  %vm178_vm0 = vmmov 0   ;;  %s232_s0 = inlined_call_operand.vmem [shape: f32[2,4,32], index: 0, kind: input, shape index: {}]   ;;  %s233_s1 = inlined_call_operand.vmem [shape: f32[1,32], index: 1, kind: input, shape index: {}]   ;;  %s234_s2 = inlined_call_operand.vmem [shape: f32[32,3], index: 2, kind: input, shape index: {}]   ;;  %s235_s3 = inlined_call_operand.vmem [shape: f32[1,3], index: 3, kind: input, shape index: {}]   ;;  %s236_s4 = inlined_call_operand.hbm [shape: f32[4,3], index: 4, kind: output, shape index: {}]  }
   0x1   :  { %v34_v0 = vld [vmem:[%s234_s2 + $0x18] sm:$0xff]  ;;  %141 = vmatprep.subr.mxu0 %v177_v1  ;;  %v33_v2 = vld [vmem:[%s234_s2 + $0x10] sm:$0xff]  ;;  %149 = vmatprep.mubr.msk.f32.mxu0 %vm178_vm0, %v177_v1  ;;  %v18_v3 = vld [vmem:[%s232_s0] sm:$0xf] }
   0x2   :  { %v132_v4 = vld [vmem:[%s232_s0 + $0x4] sm:$0xf]  ;;  %142 = vmatpush3.msra.mxu0 %v34_v0  ;;  %v133_v6 = vld [vmem:[%s233_s1] ss:$0 sm:$0xff] }
   0x3   :  { %v21_v5 = vadd.f32 %v132_v4, %v18_v3 }
   0x4   :  { %9 = vsyncpa [#allocation3], 0  ;;  %143 = vmatprep.subr.mxu0 %v177_v1  ;;  %v32_v7 = vld [vmem:[%s234_s2 + $0x8] sm:$0xff]  ;;  %v31_v9 = vld [vmem:[%s234_s2] sm:$0xff]  ;;  %vm42_vm1 = vcmask 261120   ;;  %s179_s29 = smov [#allocation2]  }
   0x5   :  { %144 = vmatpush3.msra.mxu0 %v33_v2  ;;  %v29_v8 = vadd.f32 %v133_v6, %v21_v5  ;;  %v134_v11 = vld [vmem:[%s235_s3] ss:$0 sm:$0xff]  ;;  %s124_s30 = sshll.u32 %s179_s29, 4  ;;  %vm116_vm2 = vcmask 19456   ;;  %s125_s30 = int_to_ptr.vmem [resolvable:$true] %s124_s30 }
   0x6   :  { %145 = vmatprep.subr.mxu0 %v177_v1  ;;  %s155_s5 = scalar_lea.vmem %s125_s30, 64  ;;  %p160_p1 = scmp.lt.s32.totalorder %s125_s30, %s125_s30 }
   0x7   :  { %146 = vmatpush3.msra.mxu0 %v32_v7  ;;  %v30_v10 = vmax.f32 %v29_v8, 0.0  ;;  %p156_p0 = scmp.ne.s32.totalorder %s125_s30, %s155_s5  ;;  %p161_p2 = scmp.lt.s32.totalorder %s155_s5, %s155_s5 }
   0x8   :  { %147 = vmatprep.subr.mxu0 %v177_v1 }
   0x9   :  { %148 = vmatpush3.msra.mxu0 %v31_v9  ;;  %p162_p3 = por %p161_p2, %p160_p1 }
   0xa   :  { %150 = vmatmul.mubr.msk.f32.vlgmr.msra.gmra.mxu0 %vm42_vm1, %v30_v10 }
   0xb   :  { %p163_p4 = pnand %p162_p3, %p156_p0 }
  0xca   :  { %v112_v12 = vpop.f32.mrf.mxu0 }
  0xcb   :  { %v113_v13 = vadd.f32 %v134_v11, %v112_v12 }
  0xcc   :  { %v151_v14 = vpop.f32.mrf.mxu0 }
  0xcd   :  { %117 = vst.msk [vmem:[#allocation2] sm:$0xf] %vm116_vm2, %v113_v13 }
  0xce   :  { %166 = shalt.err (!%p163_p4)
}
  0xcf   :  { %127 = dma.vmem_to_hbm [thread:$0]  %s125_s30, 64, %s236_s4, [#allocation3]  }
  0xd0   :  { %175 = dma.done.wait [#allocation3], 64  }
  0xd1   :  { %176 = vsyncadd [#allocation3], 4294967232 }
  0xd2   :  { %131 = vsyncpa [#allocation3], 1 }

// kernel: rnn_forward.2
= control target key start
LH: loop header
LB: loop body
LE: loop exit
PB: predicated region body
PF: predicated region fallthrough
CT: control target
= control target key end

     0   :  { %s6732_s21 = smov 0   ;;  %s8166_s0 = inlined_call_operand.vmem [shape: bf16[2,8,4,32], index: 0, kind: input, shape index: {}]   ;;  %s8167_s1 = inlined_call_operand.vmem [shape: s32[2,4,1], index: 1, kind: input, shape index: {}]   ;;  %s8168_s2 = inlined_call_operand.vmem [shape: f32[2,2,2,4,32], index: 2, kind: input, shape index: {}]   ;;  %s8169_s3 = inlined_call_operand.vmem [shape: bf16[2,2,32,96], index: 3, kind: input, shape index: {}]   ;;  %s8170_s4 = inlined_call_operand.vmem [shape: f32[2,2,1,96], index: 4, kind: input, shape index: {}]   ;;  %s8171_s5 = inlined_call_operand.vmem [shape: bf16[2,2,32,96], index: 5, kind: input, shape index: {}]   ;;  %s8172_s6 = inlined_call_operand.vmem [shape: f32[2,2,1,32], index: 6, kind: input, shape index: {}]   ;;  %s8173_s7 = inlined_call_operand.vmem [shape: bf16[2,2,64,96], index: 7, kind: input, shape index: {}]   ;;  %s8174_s8 = inlined_call_operand.vmem [shape: f32[2,2,1,96], index: 8, kind: input, shape index: {}]   ;;  %s8175_s9 = inlined_call_operand.vmem [shape: bf16[2,2,32,96], index: 9, kind: input, shape index: {}]   ;;  %s8176_s10 = inlined_call_operand.vmem [shape: f32[2,2,1,32], index: 10, kind: input, shape index: {}]   ;;  %s8177_s11 = inlined_call_operand.vmem [shape: f32[2,32,32], index: 11, kind: input, shape index: {}]   ;;  %s8178_s12 = inlined_call_operand.vmem [shape: f32[2,4,32], index: 12, kind: output, shape index: {}]  }
   0x1 LB: > { %s5392_s22 = sadd.s32 4294967295, %s6658_s21   ;;  %p5396_p0 = scmp.ge.s32.totalorder %s6658_s21, 1  ;;  %s6658_s21 = sphi %s6732_s21, %s22_s21  }
   0x2   : > { %p467_p1 = scmp.lt.s32.totalorder %s6658_s21, 3 }
   0x4   : > { %p468_p2 = pnand %p5396_p0, %p467_p1 }
   0x5   : > { %p558_p3 = scmp.lt.s32.totalorder (!%p468_p2), %s5392_s22, 1  ;;  %s6664_s13 = smov (!%p468_p2), 32  }
   0x6   : > { %471 = sbr.rel (%p468_p2) target bundleno = 11247 (0x2bef), region = 68 }
   0xb   : > { %v6660_v0 = vmov 0.0   ;;  %s8180_s22 = smov (!%p558_p3, %s5392_s22), 1  ;;  %vm6661_vm0 = vmmov 0   ;;  %vm668_vm1 = vcmask 261120   ;;  %v6663_v22 = vmov 0  }
   0xc   : > { %5820 = vmatprep.subr.bf16.mxu1 %v6660_v0  ;;  %5812 = vmatprep.subr.bf16.mxu0 %v6660_v0  ;;  %s6749_s23 = sshll.u32 %s8180_s22, 5  ;;  %s5576_s27 = sshll.u32 %s8180_s22, 4 }
   0xd   : > { %5824 = vmatprep.mubr.msk.bf16.mxu1 %vm6661_vm0, %v6660_v0  ;;  %5816 = vmatprep.mubr.msk.bf16.mxu0 %vm6661_vm0, %v6660_v0  ;;  %s6755_s26 = scalar_lea.vmem %s8169_s3, %s6749_s23  ;;  %s6771_s30 = scalar_lea.vmem %s8166_s0, %s5576_s27 }
   0xe   : > { %v6758_v1 = vld [vmem:[%s6755_s26 + $0x18] sm:$0xff]   ;;  %v6762_v2 = vld [vmem:[%s6755_s26 + $0x8] sm:$0xff]   ;;  %v6766_v3 = vld [vmem:[%s6755_s26 + $0x10] sm:$0xff]   ;;  %s6779_s15 = scalar_lea.vmem %s8171_s5, %s6749_s23  ;;  %s6786_s16 = sshll.u32 %s8180_s22, 1  ;;  %6414 = vset.pattern.permute.xlu0 %v6663_v22  ;;  %6415 = vset.pattern.permute.xlu1 %v6663_v22 }
   0xf   : > { %5821 = vmatpush3.bf16.msra.mxu1 %v6758_v1  ;;  %5813 = vmatpush3.bf16.msra.mxu0 %v6762_v2  ;;  %v6783_v4 = vld [vmem:[%s6755_s26] sm:$0xff]   ;;  %v5417_v5 = vld [vmem:[%s6771_s30 + $0xe] sm:$0x3]  ;;  %s5580_s17 = sshll.u32 %s8180_s22, 6  ;;  %v6792_v6 = vld [vmem:[%s6779_s15 + $0x18] sm:$0xff]   ;;  %s6803_s20 = scalar_lea.vmem %s8168_s2, %s5576_s27 }
  0x10   : > { %5822 = vmatprep.subr.bf16.mxu1 %v6660_v0  ;;  %5814 = vmatprep.subr.bf16.mxu0 %v6660_v0  ;;  %v641_v7 = vld [vmem:[%s6771_s30] sm:$0x3]  ;;  %v6798_v8 = vld [vmem:[%s6779_s15 + $0x8] sm:$0xff]   ;;  %s589_s28 = scalar_lea.vmem %s8172_s6, %s6786_s16  ;;  %v6812_v9 = vld [vmem:[%s6779_s15 + $0x10] sm:$0xff]   ;;  %s6817_s14 = scalar_lea.vmem %s8173_s7, %s5580_s17 }
  0x11   : > { %v6822_v10 = vld [vmem:[%s6803_s20 + $0x4] sm:$0xf]  ;;  %v5435_v12 = vld [vmem:[%s589_s28 + $0x1] ss:$0 sm:$0xff]  ;;  %v5434_v14 = vld [vmem:[%s589_s28] ss:$0 sm:$0xff]  ;;  %s6875_s19 = scalar_lea.vmem %s8170_s4, %s6786_s16  ;;  %s7461_s25 = scalar_lea.vmem %s8176_s10, %s6786_s16 }
  0x12   : > { %v6825_v11 = vld [vmem:[%s6779_s15] sm:$0xff]   ;;  %v768_v15 = vpack.c.bf16 %v6822_v10, %v6822_v10  ;;  %s6662_s27 = smov 64   ;;  %s5399_s24 = sshll.u32 %s8180_s22, 2 }
  0x13   : > { %5823 = vmatpush3.bf16.msra.mxu1 %v6766_v3  ;;  %5815 = vmatpush3.bf16.msra.mxu0 %v6783_v4  ;;  %v6830_v13 = vld [vmem:[%s6803_s20] sm:$0xf]  ;;  %s566_s29 = scalar_lea.vmem %s8167_s1, %s5399_s24  ;;  %s6665_s17 = smov 96  }
  0x14   : > { %5836 = vmatprep.subr.bf16.mxu1 %v6660_v0  ;;  %5828 = vmatprep.subr.bf16.mxu0 %v6660_v0  ;;  %v767_v16 = vpack.c.bf16 %v6830_v13, %v6830_v13  ;;  %v6878_v38 = vld [vmem:[%s6875_s19] ss:$0 sm:$0xff]  ;;  %v6881_v39 = vld [vmem:[%s6875_s19 + $0x1] ss:$0 sm:$0xff] }
  0x15   : > { %905 = vrot.lane.b32.xlu0 %v5435_v12, %s6662_s27  ;;  %v6891_v50 = vld [vmem:[%s566_s29] sm:$0xf]  ;;  %s7555_s29 = scalar_lea.vmem %s8174_s8, %s6786_s16 }
  0x16   : > { %5825 = vmatmul.mubr.msk.bf16.vlgmr.msra.gmra.mxu1 %vm668_vm1, %v5417_v5  ;;  %5817 = vmatmul.mubr.msk.bf16.vlgmr.msra.gmra.mxu0 %vm668_vm1, %v641_v7  ;;  %vm958_vm2 = vcmp.gt.s32.totalorder %v6891_v50, 7  ;;  %vm957_vm3 = vcmp.gt.s32.totalorder %v6891_v50, 0  ;;  %v5437_v5 = vld [vmem:[%s6771_s30 + $0xc] sm:$0x3]  ;;  %v5436_v7 = vld [vmem:[%s6771_s30 + $0x2] sm:$0x3] }
  0x17   : > { %5837 = vmatpush3.bf16.msra.mxu1 %v6792_v6  ;;  %5829 = vmatpush3.bf16.msra.mxu0 %v6798_v8  ;;  %v960_v56 = vsel %vm958_vm2, 1, %v6663_v22  ;;  %v959_v58 = vsel %vm957_vm3, 1, %v6663_v22  ;;  %vm1235_vm6 = vcmp.gt.s32.totalorder %v6891_v50, 6  ;;  %vm1234_vm7 = vcmp.gt.s32.totalorder %v6891_v50, 1 }
  0x18   : > { %5838 = vmatprep.subr.bf16.mxu1 %v6660_v0  ;;  %5840 = vmatprep.mubr.msk.bf16.mxu1 %vm6661_vm0, %v6660_v0  ;;  %vm1511_vm10 = vcmp.gt.s32.totalorder %v6891_v50, 5  ;;  %vm1510_vm11 = vcmp.gt.s32.totalorder %v6891_v50, 2  ;;  %vm1787_vm14 = vcmp.gt.s32.totalorder %v6891_v50, 4  ;;  %vm1786_vm15 = vcmp.gt.s32.totalorder %v6891_v50, 3 }
  0x19   : > { %5830 = vmatprep.subr.bf16.mxu0 %v6660_v0  ;;  %5832 = vmatprep.mubr.msk.bf16.mxu0 %vm6661_vm0, %v6660_v0 }
  0x1a   : > { %903 = vrot.lane.b32.xlu0 %v5434_v14, %s6662_s27 }
  0x1b   : > { %5839 = vmatpush3.bf16.msra.mxu1 %v6812_v9  ;;  %5831 = vmatpush3.bf16.msra.mxu0 %v6825_v11 }
  0x1c   : > { %5852 = vmatprep.subr.bf16.mxu1 %v6660_v0  ;;  %5844 = vmatprep.subr.bf16.mxu0 %v6660_v0 }
  0x1e   : > { %5841 = vmatmul.mubr.msk.bf16.vlgmr.msra.gmra.mxu1 %vm668_vm1, %v768_v15  ;;  %5833 = vmatmul.mubr.msk.bf16.vlgmr.msra.gmra.mxu0 %vm668_vm1, %v767_v16 }
  0x1f   : > { %5853 = vmatpush3.bf16.msra.mxu1 %v6758_v1  ;;  %5856 = vmatprep.mubr.msk.bf16.mxu1 %vm6661_vm0, %v6660_v0 }
  0x20   : > { %5854 = vmatprep.subr.bf16.mxu1 %v6660_v0  ;;  %5845 = vmatpush3.bf16.msra.mxu0 %v6762_v2 }
  0x21   : > { %5848 = vmatprep.mubr.msk.bf16.mxu0 %vm6661_vm0, %v6660_v0  ;;  %5846 = vmatprep.subr.bf16.mxu0 %v6660_v0 }
  0x23   : > { %5855 = vmatpush3.bf16.msra.mxu1 %v6766_v3 }
  0x24   : > { %5868 = vmatprep.subr.bf16.mxu1 %v6660_v0  ;;  %5847 = vmatpush3.bf16.msra.mxu0 %v6783_v4 }
  0x25   : > { %5860 = vmatprep.subr.bf16.mxu0 %v6660_v0 }
  0x26   : > { %5857 = vmatmul.mubr.msk.bf16.vlgmr.msra.gmra.mxu1 %vm668_vm1, %v5437_v5 }
  0x27   : > { %5849 = vmatmul.mubr.msk.bf16.vlgmr.msra.gmra.mxu0 %vm668_vm1, %v5436_v7  ;;  %5869 = vmatpush3.bf16.msra.mxu1 %v6792_v6 }
  0x28   : > { %5870 = vmatprep.subr.bf16.mxu1 %v6660_v0  ;;  %5861 = vmatpush3.bf16.msra.mxu0 %v6798_v8 }
  0x29   : > { %5872 = vmatprep.mubr.msk.bf16.mxu1 %vm6661_vm0, %v6660_v0  ;;  %5862 = vmatprep.subr.bf16.mxu0 %v6660_v0 }
  0x2a   : > { %5864 = vmatprep.mubr.msk.bf16.mxu0 %vm6661_vm0, %v6660_v0 }
  0x2b   : > { %5871 = vmatpush3.bf16.msra.mxu1 %v6812_v9 }
  0x2c   : > { %5863 = vmatpush3.bf16.msra.mxu0 %v6825_v11  ;;  %5884 = vmatprep.subr.bf16.mxu1 %v6660_v0 }
  0x2d   : > { %5876 = vmatprep.subr.bf16.mxu0 %v6660_v0 }
  0x87   : > { %v6861_v20 = vpop.permute.xlu0 %905 }
  0x8c   : > { %v6865_v28 = vpop.permute.xlu0 %903 }
  0xd6   : > { %v761_v17 = vpop.f32.mrf.mxu1  ;;  %v706_v18 = vpop.f32.mrf.mxu0 }
  0xd7   : > { %v762_v40 = vadd.f32 %v6881_v39, %v761_v17  ;;  %v707_v41 = vadd.f32 %v6878_v38, %v706_v18 }
  0xd8   : > { %v5826_v19 = vpop.f32.mrf.mxu1  ;;  %v5818_v21 = vpop.f32.mrf.mxu0 }
  0xda   : > { %v764_v23 = vpop.f32.mrf.mxu1  ;;  %v709_v24 = vpop.f32.mrf.mxu0 }
  0xdc   : > { %v5827_v25 = vpop.f32.mrf.mxu1  ;;  %v5819_v26 = vpop.f32.mrf.mxu0 }
  0xde   : > { %v873_v27 = vpop.f32.mrf.mxu1  ;;  %v818_v30 = vpop.f32.mrf.mxu0 }
  0xdf   : > { %v910_v29 = vadd.f32 %v6861_v20, %v873_v27  ;;  %v909_v32 = vadd.f32 %v6865_v28, %v818_v30  ;;  %v880_v42 = vadd.f32 %v873_v27, %v762_v40  ;;  %v879_v43 = vadd.f32 %v818_v30, %v707_v41 }
  0xe0   : > { %v5842_v31 = vpop.f32.mrf.mxu1  ;;  %v5834_v33 = vpop.f32.mrf.mxu0 }
  0xe1   : > { %915 = vrot.lane.b32.xlu1 %v910_v29, %s6662_s27  ;;  %v5433_v44 = vmul.f32 -1.442695, %v880_v42  ;;  %v5432_v45 = vmul.f32 -1.442695, %v879_v43 }
  0xe2   : > { %v876_v34 = vpop.f32.mrf.mxu1  ;;  %v821_v35 = vpop.f32.mrf.mxu0 }
  0xe3   : > { %6436 = vpow2.f32 %v5433_v44 }
  0xe4   : > { %v5843_v36 = vpop.f32.mrf.mxu1  ;;  %v5835_v37 = vpop.f32.mrf.mxu0  ;;  %6438 = vpow2.f32 %v5432_v45 }
  0xe5   : > { %913 = vrot.lane.b32.xlu1 %v909_v32, %s6662_s27 }
  0xe6   : > { %v1084_v33 = vpop.f32.mrf.mxu1 }
  0xe7   : > { %v1041_v34 = vpop.f32.mrf.mxu0 }
  0xe8   : > { %v5858_v35 = vpop.f32.mrf.mxu1 }
  0xe9   : > { %v5850_v36 = vpop.f32.mrf.mxu0 }
  0xea   : > { %v1087_v37 = vpop.f32.mrf.mxu1 }
  0xf0   : > { %v6437_v46 = vpop.eup %6436 }
  0xf1   : > { %v6439_v47 = vpop.eup %6438  ;;  %v888_v48 = vadd.f32 1.0, %v6437_v46 }
  0xf2   : > { %v887_v49 = vadd.f32 1.0, %v6439_v47 }
  0xf3   : > { %6440 = vrcp.f32 %v888_v48 }
  0xf4   : > { %6442 = vrcp.f32 %v887_v49 }
 0x100   : > { %v6441_v51 = vpop.eup %6440 }
 0x101   : > { %v6443_v54 = vpop.eup %6442  ;;  %v934_v15 = vsub.f32 1.0, %v6441_v51 }
 0x102   : > { %v933_v23 = vsub.f32 1.0, %v6443_v54 }
 0x153   : > { %v916_v52 = vpop.permute.xlu1 %915 }
 0x154   : > { %v920_v53 = vmul.f32 %v6441_v51, %v916_v52 }
 0x156   : > { %925 = vrot.lane.b32.xlu0 %v920_v53, %s6662_s27 }
 0x157   : > { %v914_v55 = vpop.permute.xlu1 %913 }
 0x158   : > { %v919_v57 = vmul.f32 %v6443_v54, %v914_v55 }
 0x15a   : > { %965 = vperm.xlu0 %6414, %v960_v56   ;;  %923 = vrot.lane.b32.xlu1 %v919_v57, %s6662_s27  ;;  %v1085_v56 = vadd.f32 %v6881_v39, %v1084_v33  ;;  %v1042_v57 = vadd.f32 %v6878_v38, %v1041_v34  ;;  %v5444_v33 = vld [vmem:[%s6771_s30 + $0x4] sm:$0x3] }
 0x15e   : > { %962 = vperm.xlu0 %6414, %v959_v58  }
 0x162   : > { %947 = vrot.lane.b32.xlu0 %v6830_v13, %s6664_s13 }
 0x1c8   : > { %v926_v59 = vpop.permute.xlu0 %925 }
 0x1c9   : > { %v930_v60 = vadd.f32 %v926_v59, %v762_v40  ;;  %v1044_v40 = vpop.f32.mrf.mxu0 }
 0x1cb   : > { %6444 = vtanh.f32 %v930_v60  ;;  %v5851_v42 = vpop.f32.mrf.mxu0 }
 0x1cc   : > { %v924_v61 = vpop.permute.xlu1 %923 }
 0x1cd   : > { %v929_v62 = vadd.f32 %v924_v61, %v707_v41  ;;  %v5859_v41 = vpop.f32.mrf.mxu1 }
 0x1cf   : > { %6446 = vtanh.f32 %v929_v62 }
 0x1d8   : > { %v6445_v63 = vpop.eup %6444 }
 0x1d9   : > { %939 = vrot.lane.b32.xlu1 %v6445_v63, %s6665_s17 }
 0x1dc   : > { %v6447_v12 = vpop.eup %6446 }
 0x1dd   : > { %949 = vrot.lane.b32.xlu1 %v6822_v10, %s6664_s13  ;;  %v6921_v10 = vpop.permute.xlu0 %965 }
 0x1de   : > { %vm968_vm4 = vcmp.eq.s32.totalorder %v6921_v10, 1 }
 0x1e1   : > { %937 = vrot.lane.b32.xlu1 %v6447_v12, %s6665_s17  ;;  %v6923_v13 = vpop.permute.xlu0 %962 }
 0x1e2   : > { %vm967_vm5 = vcmp.eq.s32.totalorder %v6923_v13, 1 }
 0x1e5   : > { %v948_v19 = vpop.permute.xlu0 %947 }
 0x1e6   : > { %v953_v25 = vmul.f32 %v6443_v54, %v948_v19 }
 0x24b   : > { %v940_v14 = vpop.permute.xlu1 %939 }
 0x24c   : > { %v944_v17 = vmul.f32 %v940_v14, %v934_v15 }
 0x24f   : > { %v950_v16 = vpop.permute.xlu1 %949 }
 0x250   : > { %v954_v18 = vmul.f32 %v6441_v51, %v950_v16 }
 0x252   : > { %v956_v21 = vadd.f32 %v954_v18, %v944_v17  ;;  %v1237_v18 = vsel %vm1235_vm6, 1, %v6663_v22  ;;  %vm984_vm6 = vcmask 254976  }
 0x253   : > { %v938_v24 = vpop.permute.xlu1 %937 }
 0x254   : > { %v6928_v26 = vsel %vm968_vm4, %v956_v21, %v950_v16  ;;  %v943_v27 = vmul.f32 %v938_v24, %v933_v23  ;;  %v1236_v21 = vsel %vm1234_vm7, 1, %v6663_v22  ;;  %vm2975_vm7 = vcmask 523264  }
 0x255   : > { %v6932_v29 = vpack.c.bf16 %v6928_v26, %v6928_v26 }
 0x256   : > { %v955_v30 = vadd.f32 %v953_v25, %v943_v27 }
 0x257   : > { %1135 = vrot.lane.b32.xlu1 %v6932_v29, %s6665_s17 }
 0x258   : > { %v6939_v31 = vsel %vm967_vm5, %v955_v30, %v948_v19  ;;  %v5445_v30 = vld [vmem:[%s6771_s30 + $0xa] sm:$0x3] }
 0x259   : > { %v6943_v32 = vpack.c.bf16 %v6939_v31, %v6939_v31 }
 0x25b   : > { %1090 = vrot.lane.b32.xlu0 %v6943_v32, %s6665_s17 }
 0x2c9   : > { %v1136_v43 = vpop.permute.xlu1 %1135 }
 0x2ca   : > { %5873 = vmatmul.mubr.msk.bf16.vlgmr.msra.gmra.mxu1 %vm668_vm1, %v1136_v43 }
 0x2cb   : > { %5885 = vmatpush3.bf16.msra.mxu1 %v6758_v1  ;;  %5888 = vmatprep.mubr.msk.bf16.mxu1 %vm6661_vm0, %v6660_v0 }
 0x2cc   : > { %5886 = vmatprep.subr.bf16.mxu1 %v6660_v0 }
 0x2cd   : > { %v1091_v44 = vpop.permute.xlu0 %1090 }
 0x2ce   : > { %5865 = vmatmul.mubr.msk.bf16.vlgmr.msra.gmra.mxu0 %vm668_vm1, %v1091_v44 }
 0x2cf   : > { %5887 = vmatpush3.bf16.msra.mxu1 %v6766_v3  ;;  %5877 = vmatpush3.bf16.msra.mxu0 %v6762_v2 }
 0x2d0   : > { %5878 = vmatprep.subr.bf16.mxu0 %v6660_v0  ;;  %5900 = vmatprep.subr.bf16.mxu1 %v6660_v0 }
 0x2d1   : > { %5880 = vmatprep.mubr.msk.bf16.mxu0 %vm6661_vm0, %v6660_v0 }
 0x2d2   : > { %5889 = vmatmul.mubr.msk.bf16.vlgmr.msra.gmra.mxu1 %vm668_vm1, %v5445_v30 }
 0x2d3   : > { %5879 = vmatpush3.bf16.msra.mxu0 %v6783_v4  ;;  %5901 = vmatpush3.bf16.msra.mxu1 %v6792_v6 }
 0x2d4   : > { %5892 = vmatprep.subr.bf16.mxu0 %v6660_v0  ;;  %5902 = vmatprep.subr.bf16.mxu1 %v6660_v0 }
 0x2d5   : > { %5904 = vmatprep.mubr.msk.bf16.mxu1 %vm6661_vm0, %v6660_v0 }
 0x2d6   : > { %5881 = vmatmul.mubr.msk.bf16.vlgmr.msra.gmra.mxu0 %vm668_vm1, %v5444_v33 }
 0x2d7   : > { %5893 = vmatpush3.bf16.msra.mxu0 %v6798_v8  ;;  %5896 = vmatprep.mubr.msk.bf16.mxu0 %vm6661_vm0, %v6660_v0 }
 0x2d8   : > { %5894 = vmatprep.subr.bf16.mxu0 %v6660_v0  ;;  %5903 = vmatpush3.bf16.msra.mxu1 %v6812_v9 }
 0x2d9   : > { %5916 = vmatprep.subr.bf16.mxu1 %v6660_v0 }
 0x2db   : > { %5895 = vmatpush3.bf16.msra.mxu0 %v6825_v11 }
 0x2dc   : > { %5908 = vmatprep.subr.bf16.mxu0 %v6660_v0 }
 0x38a   : > { %v1174_v45 = vpop.f32.mrf.mxu1 }
 0x38b   : > { %v1195_v46 = vadd.f32 %v1174_v45, %v6861_v20  ;;  %v1181_v58 = vadd.f32 %v1174_v45, %v1085_v56 }
 0x38c   : > { %v5874_v47 = vpop.f32.mrf.mxu1 }
 0x38d   : > { %1200 = vrot.lane.b32.xlu1 %v1195_v46, %s6662_s27  ;;  %v5443_v59 = vmul.f32 -1.442695, %v1181_v58 }
 0x38e   : > { %v1129_v48 = vpop.f32.mrf.mxu0  ;;  %v1177_v49 = vpop.f32.mrf.mxu1 }
 0x38f   : > { %v1194_v51 = vadd.f32 %v1129_v48, %v6865_v28  ;;  %v1180_v60 = vadd.f32 %v1129_v48, %v1042_v57  ;;  %6448 = vpow2.f32 %v5443_v59 }
 0x390   : > { %v5866_v52 = vpop.f32.mrf.mxu0  ;;  %v5875_v53 = vpop.f32.mrf.mxu1 }
 0x391   : > { %1198 = vrot.lane.b32.xlu0 %v1194_v51, %s6662_s27  ;;  %v5442_v61 = vmul.f32 -1.442695, %v1180_v60 }
 0x392   : > { %v1132_v54 = vpop.f32.mrf.mxu0 }
 0x393   : > { %6450 = vpow2.f32 %v5442_v61 }
 0x394   : > { %v5867_v55 = vpop.f32.mrf.mxu0 }
 0x396   : > { %v1317_v55 = vpop.f32.mrf.mxu0 }
 0x39c   : > { %v6449_v62 = vpop.eup %6448 }
 0x39d   : > { %v1189_v63 = vadd.f32 1.0, %v6449_v62 }
 0x39f   : > { %6452 = vrcp.f32 %v1189_v63 }
 0x3a0   : > { %v6451_v5 = vpop.eup %6450 }
 0x3a1   : > { %v1188_v7 = vadd.f32 1.0, %v6451_v5 }
 0x3a3   : > { %6454 = vrcp.f32 %v1188_v7 }
 0x3ac   : > { %v6453_v12 = vpop.eup %6452 }
 0x3ad   : > { %v1219_v37 = vsub.f32 1.0, %v6453_v12  ;;  %v1231_v41 = vmul.f32 %v6453_v12, %v6928_v26 }
 0x3b0   : > { %v6455_v16 = vpop.eup %6454 }
 0x3b1   : > { %v1218_v44 = vsub.f32 1.0, %v6455_v16  ;;  %v1230_v47 = vmul.f32 %v6455_v16, %v6939_v31 }
 0x3ff   : > { %v1201_v14 = vpop.permute.xlu1 %1200 }
 0x400   : > { %v1205_v15 = vmul.f32 %v6453_v12, %v1201_v14 }
 0x402   : > { %1210 = vrot.lane.b32.xlu1 %v1205_v15, %s6662_s27 }
 0x403   : > { %v1199_v17 = vpop.permute.xlu0 %1198 }
 0x404   : > { %v1204_v19 = vmul.f32 %v6455_v16, %v1199_v17 }
 0x406   : > { %1208 = vrot.lane.b32.xlu0 %v1204_v19, %s6662_s27  ;;  %1242 = vperm.xlu1 %6415, %v1237_v18  }
 0x40a   : > { %1239 = vperm.xlu1 %6415, %v1236_v21  }
 0x474   : > { %v1211_v23 = vpop.permute.xlu1 %1210 }
 0x475   : > { %v1215_v24 = vadd.f32 %v1211_v23, %v1085_v56  ;;  %v1318_v23 = vadd.f32 %v6878_v38, %v1317_v55 }
 0x477   : > { %6456 = vtanh.f32 %v1215_v24 }
 0x478   : > { %v1209_v25 = vpop.permute.xlu0 %1208 }
 0x479   : > { %v1214_v27 = vadd.f32 %v1209_v25, %v1042_v57  ;;  %v5882_v57 = vpop.f32.mrf.mxu0 }
 0x47a   : > { %v5453_v57 = vld [vmem:[%s6771_s30 + $0x8] sm:$0x3] }
 0x47b   : > { %6458 = vtanh.f32 %v1214_v27  ;;  %v1320_v59 = vpop.f32.mrf.mxu0 }
 0x47d   : > { %v5883_v61 = vpop.f32.mrf.mxu0 }
 0x481   : > { %v6991_v36 = vpop.permute.xlu1 %1242 }
 0x482   : > { %vm1245_vm8 = vcmp.eq.s32.totalorder %v6991_v36, 1 }
 0x484   : > { %v6457_v34 = vpop.eup %6456 }
 0x485   : > { %1224 = vrot.lane.b32.xlu0 %v6457_v34, %s6665_s17  ;;  %v6995_v46 = vpop.permute.xlu1 %1239 }
 0x486   : > { %vm1244_vm9 = vcmp.eq.s32.totalorder %v6995_v46, 1 }
 0x488   : > { %v6459_v35 = vpop.eup %6458 }
 0x489   : > { %1222 = vrot.lane.b32.xlu0 %v6459_v35, %s6665_s17 }
 0x4f7   : > { %v1225_v40 = vpop.permute.xlu0 %1224 }
 0x4f8   : > { %v1229_v42 = vmul.f32 %v1225_v40, %v1219_v37 }
 0x4fa   : > { %v1233_v43 = vadd.f32 %v1231_v41, %v1229_v42 }
 0x4fb   : > { %v1223_v45 = vpop.permute.xlu0 %1222 }
 0x4fc   : > { %v1228_v48 = vmul.f32 %v1223_v45, %v1218_v44  ;;  %v7001_v49 = vsel %vm1245_vm8, %v1233_v43, %v6928_v26  ;;  %v1360_v26 = vpop.f32.mrf.mxu1  ;;  %v1513_v45 = vsel %vm1511_vm10, 1, %v6663_v22 }
 0x4fd   : > { %v7005_v51 = vpack.c.bf16 %v7001_v49, %v7001_v49  ;;  %v1361_v21 = vadd.f32 %v6881_v39, %v1360_v26 }
 0x4fe   : > { %v1232_v52 = vadd.f32 %v1230_v47, %v1228_v48  ;;  %v5890_v56 = vpop.f32.mrf.mxu1  ;;  %v1512_v48 = vsel %vm1510_vm11, 1, %v6663_v22 }
 0x4ff   : > { %1411 = vrot.lane.b32.xlu1 %v7005_v51, %s6665_s17 }
 0x500   : > { %v7013_v53 = vsel %vm1244_vm9, %v1232_v52, %v6939_v31  ;;  %v1363_v58 = vpop.f32.mrf.mxu1 }
 0x501   : > { %v7017_v54 = vpack.c.bf16 %v7013_v53, %v7013_v53  ;;  %v5452_v58 = vld [vmem:[%s6771_s30 + $0x6] sm:$0x3] }
 0x502   : > { %v5891_v60 = vpop.f32.mrf.mxu1 }
 0x503   : > { %1366 = vrot.lane.b32.xlu0 %v7017_v54, %s6665_s17 }
 0x571   : > { %v1412_v62 = vpop.permute.xlu1 %1411 }
 0x572   : > { %5905 = vmatmul.mubr.msk.bf16.vlgmr.msra.gmra.mxu1 %vm668_vm1, %v1412_v62 }
 0x573   : > { %5917 = vmatpush3.bf16.msra.mxu1 %v6758_v1  ;;  %5920 = vmatprep.mubr.msk.bf16.mxu1 %vm6661_vm0, %v6660_v0 }
 0x574   : > { %5918 = vmatprep.subr.bf16.mxu1 %v6660_v0 }
 0x575   : > { %v1367_v31 = vpop.permute.xlu0 %1366 }
 0x576   : > { %5897 = vmatmul.mubr.msk.bf16.vlgmr.msra.gmra.mxu0 %vm668_vm1, %v1367_v31 }
 0x577   : > { %5919 = vmatpush3.bf16.msra.mxu1 %v6766_v3  ;;  %5909 = vmatpush3.bf16.msra.mxu0 %v6762_v2 }
 0x578   : > { %5910 = vmatprep.subr.bf16.mxu0 %v6660_v0  ;;  %5932 = vmatprep.subr.bf16.mxu1 %v6660_v0 }
 0x579   : > { %5912 = vmatprep.mubr.msk.bf16.mxu0 %vm6661_vm0, %v6660_v0 }
 0x57a   : > { %5921 = vmatmul.mubr.msk.bf16.vlgmr.msra.gmra.mxu1 %vm668_vm1, %v5453_v57 }
 0x57b   : > { %5911 = vmatpush3.bf16.msra.mxu0 %v6783_v4  ;;  %5933 = vmatpush3.bf16.msra.mxu1 %v6792_v6 }
 0x57c   : > { %5924 = vmatprep.subr.bf16.mxu0 %v6660_v0  ;;  %5934 = vmatprep.subr.bf16.mxu1 %v6660_v0 }
 0x57d   : > { %5936 = vmatprep.mubr.msk.bf16.mxu1 %vm6661_vm0, %v6660_v0 }
 0x57e   : > { %5913 = vmatmul.mubr.msk.bf16.vlgmr.msra.gmra.mxu0 %vm668_vm1, %v5452_v58 }
 0x57f   : > { %5925 = vmatpush3.bf16.msra.mxu0 %v6798_v8  ;;  %5928 = vmatprep.mubr.msk.bf16.mxu0 %vm6661_vm0, %v6660_v0 }
 0x580   : > { %5926 = vmatprep.subr.bf16.mxu0 %v6660_v0  ;;  %5935 = vmatpush3.bf16.msra.mxu1 %v6812_v9 }
 0x581   : > { %5948 = vmatprep.subr.bf16.mxu1 %v6660_v0 }
 0x583   : > { %5927 = vmatpush3.bf16.msra.mxu0 %v6825_v11 }
 0x584   : > { %5940 = vmatprep.subr.bf16.mxu0 %v6660_v0 }
 0x632   : > { %v1450_v63 = vpop.f32.mrf.mxu1 }
 0x633   : > { %v1471_v5 = vadd.f32 %v1450_v63, %v6861_v20  ;;  %v1457_v24 = vadd.f32 %v1450_v63, %v1361_v21 }
 0x634   : > { %v5906_v7 = vpop.f32.mrf.mxu1 }
 0x635   : > { %1476 = vrot.lane.b32.xlu1 %v1471_v5, %s6662_s27  ;;  %v5451_v25 = vmul.f32 -1.442695, %v1457_v24 }
 0x636   : > { %v1405_v12 = vpop.f32.mrf.mxu0  ;;  %v1453_v14 = vpop.f32.mrf.mxu1 }
 0x637   : > { %v1470_v15 = vadd.f32 %v1405_v12, %v6865_v28  ;;  %v1456_v27 = vadd.f32 %v1405_v12, %v1318_v23  ;;  %6460 = vpow2.f32 %v5451_v25 }
 0x638   : > { %v5898_v16 = vpop.f32.mrf.mxu0  ;;  %v5907_v17 = vpop.f32.mrf.mxu1 }
 0x639   : > { %1474 = vrot.lane.b32.xlu0 %v1470_v15, %s6662_s27  ;;  %v5450_v30 = vmul.f32 -1.442695, %v1456_v27 }
 0x63a   : > { %v1408_v18 = vpop.f32.mrf.mxu0 }
 0x63b   : > { %6462 = vpow2.f32 %v5450_v30 }
 0x63c   : > { %v5899_v19 = vpop.f32.mrf.mxu0 }
 0x63e   : > { %v1593_v25 = vpop.f32.mrf.mxu0 }
 0x640   : > { %v5914_v30 = vpop.f32.mrf.mxu0 }
 0x641   : > { %v5461_v30 = vld [vmem:[%s6771_s30 + $0x6] sm:$0x3] }
 0x644   : > { %v6461_v33 = vpop.eup %6460 }
 0x645   : > { %v1465_v34 = vadd.f32 1.0, %v6461_v33 }
 0x647   : > { %6464 = vrcp.f32 %v1465_v34  ;;  %v1596_v34 = vpop.f32.mrf.mxu0 }
 0x648   : > { %v6463_v35 = vpop.eup %6462 }
 0x649   : > { %v1464_v37 = vadd.f32 1.0, %v6463_v35 }
 0x64b   : > { %6466 = vrcp.f32 %v1464_v37  ;;  %v5915_v37 = vpop.f32.mrf.mxu0 }
 0x654   : > { %v6465_v40 = vpop.eup %6464 }
 0x655   : > { %v1495_v62 = vsub.f32 1.0, %v6465_v40  ;;  %v1507_v63 = vmul.f32 %v6465_v40, %v7001_v49 }
 0x658   : > { %v6467_v43 = vpop.eup %6466 }
 0x659   : > { %v1494_v12 = vsub.f32 1.0, %v6467_v43  ;;  %v1506_v16 = vmul.f32 %v6467_v43, %v7013_v53 }
 0x6a7   : > { %v1477_v41 = vpop.permute.xlu1 %1476 }
 0x6a8   : > { %v1481_v42 = vmul.f32 %v6465_v40, %v1477_v41 }
 0x6aa   : > { %1486 = vrot.lane.b32.xlu1 %v1481_v42, %s6662_s27 }
 0x6ab   : > { %v1475_v44 = vpop.permute.xlu0 %1474 }
 0x6ac   : > { %v1480_v47 = vmul.f32 %v6467_v43, %v1475_v44 }
 0x6ae   : > { %1518 = vperm.xlu1 %6415, %v1513_v45   ;;  %1484 = vrot.lane.b32.xlu0 %v1480_v47, %s6662_s27 }
 0x6b2   : > { %1515 = vperm.xlu1 %6415, %v1512_v48  }
 0x71c   : > { %v1487_v52 = vpop.permute.xlu1 %1486 }
 0x71d   : > { %v1491_v26 = vadd.f32 %v1487_v52, %v1361_v21  ;;  %v1594_v52 = vadd.f32 %v6878_v38, %v1593_v25 }
 0x71f   : > { %6468 = vtanh.f32 %v1491_v26 }
 0x720   : > { %v1485_v55 = vpop.permute.xlu0 %1484 }
 0x721   : > { %v1490_v56 = vadd.f32 %v1485_v55, %v1318_v23 }
 0x723   : > { %6470 = vtanh.f32 %v1490_v56 }
 0x729   : > { %v7065_v61 = vpop.permute.xlu1 %1518 }
 0x72a   : > { %vm1521_vm12 = vcmp.eq.s32.totalorder %v7065_v61, 1 }
 0x72c   : > { %v6469_v59 = vpop.eup %6468 }
 0x72d   : > { %1500 = vrot.lane.b32.xlu0 %v6469_v59, %s6665_s17  ;;  %v7069_v15 = vpop.permute.xlu1 %1515 }
 0x72e   : > { %vm1520_vm13 = vcmp.eq.s32.totalorder %v7069_v15, 1 }
 0x730   : > { %v6471_v60 = vpop.eup %6470 }
 0x731   : > { %1498 = vrot.lane.b32.xlu0 %v6471_v60, %s6665_s17 }
 0x79f   : > { %v1501_v31 = vpop.permute.xlu0 %1500 }
 0x7a0   : > { %v1505_v5 = vmul.f32 %v1501_v31, %v1495_v62 }
 0x7a2   : > { %v1509_v7 = vadd.f32 %v1507_v63, %v1505_v5 }
 0x7a3   : > { %v1499_v14 = vpop.permute.xlu0 %1498 }
 0x7a4   : > { %v1504_v17 = vmul.f32 %v1499_v14, %v1494_v12  ;;  %v7075_v18 = vsel %vm1521_vm12, %v1509_v7, %v7001_v49  ;;  %v1636_v49 = vpop.f32.mrf.mxu1  ;;  %v1789_v14 = vsel %vm1787_vm14, 1, %v6663_v22 }
 0x7a5   : > { %v7079_v19 = vpack.c.bf16 %v7075_v18, %v7075_v18 }
 0x7a6   : > { %v1508_v21 = vadd.f32 %v1506_v16, %v1504_v17  ;;  %v5922_v27 = vpop.f32.mrf.mxu1  ;;  %v1788_v17 = vsel %vm1786_vm15, 1, %v6663_v22 }
 0x7a7   : > { %1687 = vrot.lane.b32.xlu1 %v7079_v19, %s6665_s17 }
 0x7a8   : > { %v7087_v23 = vsel %vm1520_vm13, %v1508_v21, %v7013_v53  ;;  %v1639_v33 = vpop.f32.mrf.mxu1 }
 0x7a9   : > { %v7091_v24 = vpack.c.bf16 %v7087_v23, %v7087_v23  ;;  %v5460_v33 = vld [vmem:[%s6771_s30 + $0x8] sm:$0x3] }
 0x7aa   : > { %v5923_v35 = vpop.f32.mrf.mxu1 }
 0x7ab   : > { %1642 = vrot.lane.b32.xlu0 %v7091_v24, %s6665_s17 }
 0x819   : > { %v1688_v40 = vpop.permute.xlu1 %1687 }
 0x81a   : > { %5937 = vmatmul.mubr.msk.bf16.vlgmr.msra.gmra.mxu1 %vm668_vm1, %v1688_v40 }
 0x81b   : > { %5949 = vmatpush3.bf16.msra.mxu1 %v6758_v1  ;;  %5952 = vmatprep.mubr.msk.bf16.mxu1 %vm6661_vm0, %v6660_v0 }
 0x81c   : > { %5950 = vmatprep.subr.bf16.mxu1 %v6660_v0 }
 0x81d   : > { %v1643_v53 = vpop.permute.xlu0 %1642 }
 0x81e   : > { %5929 = vmatmul.mubr.msk.bf16.vlgmr.msra.gmra.mxu0 %vm668_vm1, %v1643_v53 }
 0x81f   : > { %5951 = vmatpush3.bf16.msra.mxu1 %v6766_v3  ;;  %5941 = vmatpush3.bf16.msra.mxu0 %v6762_v2 }
 0x820   : > { %5942 = vmatprep.subr.bf16.mxu0 %v6660_v0  ;;  %5964 = vmatprep.subr.bf16.mxu1 %v6660_v0 }
 0x821   : > { %5944 = vmatprep.mubr.msk.bf16.mxu0 %vm6661_vm0, %v6660_v0 }
 0x822   : > { %5953 = vmatmul.mubr.msk.bf16.vlgmr.msra.gmra.mxu1 %vm668_vm1, %v5461_v30 }
 0x823   : > { %5943 = vmatpush3.bf16.msra.mxu0 %v6783_v4  ;;  %v1637_v4 = vadd.f32 %v6881_v39, %v1636_v49  ;;  %5965 = vmatpush3.bf16.msra.mxu1 %v6792_v6 }
 0x824   : > { %5956 = vmatprep.subr.bf16.mxu0 %v6660_v0  ;;  %5966 = vmatprep.subr.bf16.mxu1 %v6660_v0 }
 0x825   : > { %5968 = vmatprep.mubr.msk.bf16.mxu1 %vm6661_vm0, %v6660_v0 }
 0x826   : > { %5945 = vmatmul.mubr.msk.bf16.vlgmr.msra.gmra.mxu0 %vm668_vm1, %v5460_v33 }
 0x827   : > { %5957 = vmatpush3.bf16.msra.mxu0 %v6798_v8  ;;  %5960 = vmatprep.mubr.msk.bf16.mxu0 %vm6661_vm0, %v6660_v0 }
 0x828   : > { %5958 = vmatprep.subr.bf16.mxu0 %v6660_v0  ;;  %5967 = vmatpush3.bf16.msra.mxu1 %v6812_v9 }
 0x829   : > { %5980 = vmatprep.subr.bf16.mxu1 %v6660_v0 }
 0x82b   : > { %5959 = vmatpush3.bf16.msra.mxu0 %v6825_v11 }
 0x82c   : > { %5972 = vmatprep.subr.bf16.mxu0 %v6660_v0 }
 0x8da   : > { %v1726_v1 = vpop.f32.mrf.mxu1 }
 0x8db   : > { %v1747_v41 = vadd.f32 %v1726_v1, %v6861_v20  ;;  %v1733_v26 = vadd.f32 %v1726_v1, %v1637_v4 }
 0x8dc   : > { %v5938_v42 = vpop.f32.mrf.mxu1 }
 0x8dd   : > { %1752 = vrot.lane.b32.xlu1 %v1747_v41, %s6662_s27  ;;  %v5459_v55 = vmul.f32 -1.442695, %v1733_v26 }
 0x8de   : > { %v1681_v3 = vpop.f32.mrf.mxu0  ;;  %v1729_v43 = vpop.f32.mrf.mxu1 }
 0x8df   : > { %v1746_v2 = vadd.f32 %v1681_v3, %v6865_v28  ;;  %v1732_v56 = vadd.f32 %v1681_v3, %v1594_v52  ;;  %6472 = vpow2.f32 %v5459_v55 }
 0x8e0   : > { %v5930_v44 = vpop.f32.mrf.mxu0  ;;  %v5939_v45 = vpop.f32.mrf.mxu1 }
 0x8e1   : > { %1750 = vrot.lane.b32.xlu0 %v1746_v2, %s6662_s27  ;;  %v5458_v57 = vmul.f32 -1.442695, %v1732_v56  ;;  %v7171_v56 = vld [vmem:[%s6755_s26 + $0x18] sm:$0xff]  }
 0x8e2   : > { %v1684_v47 = vpop.f32.mrf.mxu0  ;;  %v1910_v44 = vpop.f32.mrf.mxu1 }
 0x8e3   : > { %6474 = vpow2.f32 %v5458_v57 }
 0x8e4   : > { %v5931_v48 = vpop.f32.mrf.mxu0  ;;  %v5954_v47 = vpop.f32.mrf.mxu1 }
 0x8e5   : > { %v5468_v47 = vld [vmem:[%s6771_s30 + $0xa] sm:$0x3] }
 0x8e6   : > { %v1867_v45 = vpop.f32.mrf.mxu0 }
 0x8e8   : > { %v5946_v48 = vpop.f32.mrf.mxu0 }
 0x8ec   : > { %v6473_v58 = vpop.eup %6472 }
 0x8ed   : > { %v1741_v59 = vadd.f32 1.0, %v6473_v58  ;;  %v7179_v58 = vld [vmem:[%s6755_s26 + $0x10] sm:$0xff]  }
 0x8ef   : > { %6476 = vrcp.f32 %v1741_v59  ;;  %v7183_v59 = vld [vmem:[%s6755_s26 + $0x8] sm:$0xff]  }
 0x8f0   : > { %v6475_v60 = vpop.eup %6474 }
 0x8f1   : > { %v1740_v62 = vadd.f32 1.0, %v6475_v60  ;;  %v7191_v60 = vld [vmem:[%s6755_s26] sm:$0xff]   ;;  %s616_s26 = scalar_lea.vmem %s8178_s12, %s5399_s24 }
 0x8f3   : > { %6478 = vrcp.f32 %v1740_v62 }
 0x8fc   : > { %v6477_v31 = vpop.eup %6476 }
 0x8fd   : > { %v1771_v8 = vsub.f32 1.0, %v6477_v31  ;;  %v1783_v35 = vmul.f32 %v6477_v31, %v7075_v18 }
 0x900   : > { %v6479_v7 = vpop.eup %6478 }
 0x901   : > { %v1770_v53 = vsub.f32 1.0, %v6479_v7  ;;  %v1782_v9 = vmul.f32 %v6479_v7, %v7087_v23 }
 0x94f   : > { %v1753_v63 = vpop.permute.xlu1 %1752 }
 0x950   : > { %v1757_v5 = vmul.f32 %v6477_v31, %v1753_v63 }
 0x952   : > { %1762 = vrot.lane.b32.xlu1 %v1757_v5, %s6662_s27 }
 0x953   : > { %v1751_v12 = vpop.permute.xlu0 %1750 }
 0x954   : > { %v1756_v16 = vmul.f32 %v6479_v7, %v1751_v12 }
 0x956   : > { %1794 = vperm.xlu1 %6415, %v1789_v14   ;;  %1760 = vrot.lane.b32.xlu0 %v1756_v16, %s6662_s27 }
 0x95a   : > { %1791 = vperm.xlu1 %6415, %v1788_v17  }
 0x9c4   : > { %v1763_v21 = vpop.permute.xlu1 %1762 }
 0x9c5   : > { %v1767_v49 = vadd.f32 %v1763_v21, %v1637_v4  ;;  %v1913_v4 = vpop.f32.mrf.mxu1 }
 0x9c6   : > { %v7209_v4 = vld [vmem:[%s6779_s15 + $0x18] sm:$0xff]  }
 0x9c7   : > { %6480 = vtanh.f32 %v1767_v49  ;;  %v5955_v26 = vpop.f32.mrf.mxu1  ;;  %v1911_v49 = vadd.f32 %v6881_v39, %v1910_v44 }
 0x9c8   : > { %v1761_v25 = vpop.permute.xlu0 %1760 }
 0x9c9   : > { %v1766_v27 = vadd.f32 %v1761_v25, %v1594_v52  ;;  %v1870_v52 = vpop.f32.mrf.mxu0  ;;  %v1868_v25 = vadd.f32 %v6878_v38, %v1867_v45  ;;  %v5469_v45 = vld [vmem:[%s6771_s30 + $0x4] sm:$0x3] }
 0x9ca   : > { %v7214_v52 = vld [vmem:[%s6779_s15 + $0x8] sm:$0xff]  }
 0x9cb   : > { %6482 = vtanh.f32 %v1766_v27  ;;  %v5947_v55 = vpop.f32.mrf.mxu0 }
 0x9cc   : > { %v7224_v55 = vld [vmem:[%s6779_s15 + $0x10] sm:$0xff]  }
 0x9d1   : > { %v7139_v6 = vpop.permute.xlu1 %1794 }
 0x9d2   : > { %vm1797_vm2 = vcmp.eq.s32.totalorder %v7139_v6, 1 }
 0x9d4   : > { %v6481_v34 = vpop.eup %6480 }
 0x9d5   : > { %1776 = vrot.lane.b32.xlu0 %v6481_v34, %s6665_s17  ;;  %v7143_v41 = vpop.permute.xlu1 %1791 }
 0x9d6   : > { %vm1796_vm3 = vcmp.eq.s32.totalorder %v7143_v41, 1 }
 0x9d8   : > { %v6483_v22 = vpop.eup %6482 }
 0x9d9   : > { %1774 = vrot.lane.b32.xlu0 %v6483_v22, %s6665_s17 }
 0xa47   : > { %v1777_v50 = vpop.permute.xlu0 %1776 }
 0xa48   : > { %v1781_v37 = vmul.f32 %v1777_v50, %v1771_v8 }
 0xa4a   : > { %v1785_v40 = vadd.f32 %v1783_v35, %v1781_v37 }
 0xa4b   : > { %v1775_v1 = vpop.permute.xlu0 %1774 }
 0xa4c   : > { %v1780_v11 = vmul.f32 %v1775_v1, %v1770_v53  ;;  %v7149_v42 = vsel %vm1797_vm2, %v1785_v40, %v7075_v18 }
 0xa4d   : > { %v7153_v3 = vpack.c.bf16 %v7149_v42, %v7149_v42 }
 0xa4e   : > { %v1784_v43 = vadd.f32 %v1782_v9, %v1780_v11 }
 0xa4f   : > { %1961 = vrot.lane.b32.xlu1 %v7153_v3, %s6665_s17 }
 0xa50   : > { %v7161_v2 = vsel %vm1796_vm3, %v1784_v43, %v7087_v23 }
 0xa51   : > { %v7165_v18 = vpack.c.bf16 %v7161_v2, %v7161_v2 }
 0xa53   : > { %1916 = vrot.lane.b32.xlu0 %v7165_v18, %s6665_s17 }
 0xac1   : > { %v1962_v23 = vpop.permute.xlu1 %1961 }
 0xac2   : > { %5969 = vmatmul.mubr.msk.bf16.vlgmr.msra.gmra.mxu1 %vm668_vm1, %v1962_v23  ;;  %v7228_v23 = vld [vmem:[%s6779_s15] sm:$0xff]   ;;  %s7442_s15 = scalar_lea.vmem %s8175_s9, %s6749_s23 }
 0xac3   : > { %5981 = vmatpush3.bf16.msra.mxu1 %v7171_v56  ;;  %5984 = vmatprep.mubr.msk.bf16.mxu1 %vm6661_vm0, %v6660_v0 }
 0xac4   : > { %5982 = vmatprep.subr.bf16.mxu1 %v6660_v0 }
 0xac5   : > { %v1917_v57 = vpop.permute.xlu0 %1916 }
 0xac6   : > { %5961 = vmatmul.mubr.msk.bf16.vlgmr.msra.gmra.mxu0 %vm668_vm1, %v1917_v57 }
 0xac7   : > { %5983 = vmatpush3.bf16.msra.mxu1 %v7179_v58  ;;  %5973 = vmatpush3.bf16.msra.mxu0 %v7183_v59 }
 0xac8   : > { %5974 = vmatprep.subr.bf16.mxu0 %v6660_v0  ;;  %5996 = vmatprep.subr.bf16.mxu1 %v6660_v0 }
 0xac9   : > { %5976 = vmatprep.mubr.msk.bf16.mxu0 %vm6661_vm0, %v6660_v0 }
 0xaca   : > { %5985 = vmatmul.mubr.msk.bf16.vlgmr.msra.gmra.mxu1 %vm668_vm1, %v5469_v45 }
 0xacb   : > { %5975 = vmatpush3.bf16.msra.mxu0 %v7191_v60  ;;  %5997 = vmatpush3.bf16.msra.mxu1 %v7209_v4 }
 0xacc   : > { %5988 = vmatprep.subr.bf16.mxu0 %v6660_v0  ;;  %5998 = vmatprep.subr.bf16.mxu1 %v6660_v0 }
 0xacd   : > { %6000 = vmatprep.mubr.msk.bf16.mxu1 %vm6661_vm0, %v6660_v0 }
 0xace   : > { %5977 = vmatmul.mubr.msk.bf16.vlgmr.msra.gmra.mxu0 %vm668_vm1, %v5468_v47  ;;  %v7276_v47 = vld [vmem:[%s6875_s19 + $0x1] ss:$0 sm:$0xff] }
 0xacf   : > { %5989 = vmatpush3.bf16.msra.mxu0 %v7214_v52  ;;  %5992 = vmatprep.mubr.msk.bf16.mxu0 %vm6661_vm0, %v6660_v0 }
 0xad0   : > { %5990 = vmatprep.subr.bf16.mxu0 %v6660_v0  ;;  %5999 = vmatpush3.bf16.msra.mxu1 %v7224_v55 }
 0xad1   : > { %6012 = vmatprep.subr.bf16.mxu1 %v6660_v0 }
 0xad3   : > { %5991 = vmatpush3.bf16.msra.mxu0 %v7228_v23 }
 0xad4   : > { %6004 = vmatprep.subr.bf16.mxu0 %v6660_v0 }
 0xb82   : > { %v2000_v62 = vpop.f32.mrf.mxu1 }
 0xb83   : > { %v2021_v31 = vadd.f32 %v2000_v62, %v6861_v20  ;;  %v2007_v27 = vadd.f32 %v2000_v62, %v1911_v49 }
 0xb84   : > { %v5970_v63 = vpop.f32.mrf.mxu1 }
 0xb85   : > { %2026 = vrot.lane.b32.xlu1 %v2021_v31, %s6662_s27  ;;  %v5467_v30 = vmul.f32 -1.442695, %v2007_v27 }
 0xb86   : > { %v1955_v5 = vpop.f32.mrf.mxu0  ;;  %v2003_v7 = vpop.f32.mrf.mxu1 }
 0xb87   : > { %v2020_v12 = vadd.f32 %v1955_v5, %v6865_v28  ;;  %v2006_v33 = vadd.f32 %v1955_v5, %v1868_v25  ;;  %6484 = vpow2.f32 %v5467_v30 }
 0xb88   : > { %v5962_v14 = vpop.f32.mrf.mxu0  ;;  %v5971_v16 = vpop.f32.mrf.mxu1 }
 0xb89   : > { %2024 = vrot.lane.b32.xlu0 %v2020_v12, %s6662_s27  ;;  %v5466_v34 = vmul.f32 -1.442695, %v2006_v33 }
 0xb8a   : > { %v1958_v17 = vpop.f32.mrf.mxu0 }
 0xb8b   : > { %6486 = vpow2.f32 %v5466_v34 }
 0xb8c   : > { %v5963_v21 = vpop.f32.mrf.mxu0 }
 0xb8e   : > { %v2129_v30 = vpop.f32.mrf.mxu0 }
 0xb90   : > { %v5978_v34 = vpop.f32.mrf.mxu0 }
 0xb94   : > { %v6485_v22 = vpop.eup %6484 }
 0xb95   : > { %v2015_v8 = vadd.f32 1.0, %v6485_v22 }
 0xb97   : > { %6488 = vrcp.f32 %v2015_v8  ;;  %v2132_v8 = vpop.f32.mrf.mxu0 }
 0xb98   : > { %v6487_v50 = vpop.eup %6486 }
 0xb99   : > { %v2014_v35 = vadd.f32 1.0, %v6487_v50 }
 0xb9b   : > { %6490 = vrcp.f32 %v2014_v35  ;;  %v5979_v35 = vpop.f32.mrf.mxu0 }
 0xba4   : > { %v6489_v37 = vpop.eup %6488 }
 0xba5   : > { %v2045_v57 = vsub.f32 1.0, %v6489_v37  ;;  %v2057_v31 = vmul.f32 %v6489_v37, %v7149_v42 }
 0xba8   : > { %v6491_v38 = vpop.eup %6490 }
 0xba9   : > { %v2044_v7 = vsub.f32 1.0, %v6491_v38  ;;  %v2056_v14 = vmul.f32 %v6491_v38, %v7161_v2 }
 0xbf7   : > { %v2027_v40 = vpop.permute.xlu1 %2026 }
 0xbf8   : > { %v2031_v53 = vmul.f32 %v6489_v37, %v2027_v40 }
 0xbfa   : > { %2036 = vrot.lane.b32.xlu1 %v2031_v53, %s6662_s27 }
 0xbfb   : > { %v2025_v39 = vpop.permute.xlu0 %2024 }
 0xbfc   : > { %v2030_v1 = vmul.f32 %v6491_v38, %v2025_v39 }
 0xbfe   : > { %2034 = vrot.lane.b32.xlu0 %v2030_v1, %s6662_s27 }
 0xc6c   : > { %v2037_v9 = vpop.permute.xlu1 %2036 }
 0xc6d   : > { %v2041_v11 = vadd.f32 %v2037_v9, %v1911_v49 }
 0xc6f   : > { %6492 = vtanh.f32 %v2041_v11 }
 0xc70   : > { %v2035_v43 = vpop.permute.xlu0 %2034 }
 0xc71   : > { %v2040_v44 = vadd.f32 %v2035_v43, %v1868_v25 }
 0xc73   : > { %6494 = vtanh.f32 %v2040_v44 }
 0xc7c   : > { %v6493_v48 = vpop.eup %6492 }
 0xc7d   : > { %2050 = vrot.lane.b32.xlu1 %v6493_v48, %s6665_s17 }
 0xc80   : > { %v6495_v26 = vpop.eup %6494 }
 0xc81   : > { %2048 = vrot.lane.b32.xlu0 %v6495_v26, %s6665_s17  ;;  %v7280_v26 = vld [vmem:[%s6875_s19] ss:$0 sm:$0xff] }
 0xcef   : > { %v2051_v62 = vpop.permute.xlu1 %2050 }
 0xcf0   : > { %v2055_v63 = vmul.f32 %v2051_v62, %v2045_v57  ;;  %v2130_v57 = vadd.f32 %v7280_v26, %v2129_v30 }
 0xcf2   : > { %v2059_v5 = vadd.f32 %v2057_v31, %v2055_v63 }
 0xcf3   : > { %v2049_v12 = vpop.permute.xlu0 %2048 }
 0xcf4   : > { %v2054_v16 = vmul.f32 %v2049_v12, %v2044_v7  ;;  %v7238_v17 = vsel %vm1796_vm3, %v2059_v5, %v7149_v42  ;;  %v2172_v42 = vpop.f32.mrf.mxu1 }
 0xcf5   : > { %v7242_v21 = vpack.c.bf16 %v7238_v17, %v7238_v17  ;;  %v2173_v48 = vadd.f32 %v7276_v47, %v2172_v42 }
 0xcf6   : > { %v2058_v49 = vadd.f32 %v2056_v14, %v2054_v16  ;;  %v5986_v33 = vpop.f32.mrf.mxu1 }
 0xcf7   : > { %2223 = vrot.lane.b32.xlu1 %v7242_v21, %s6665_s17 }
 0xcf8   : > { %v7249_v25 = vsel %vm1797_vm2, %v2058_v49, %v7161_v2  ;;  %v2175_v22 = vpop.f32.mrf.mxu1 }
 0xcf9   : > { %v7253_v27 = vpack.c.bf16 %v7249_v25, %v7249_v25 }
 0xcfa   : > { %v5987_v50 = vpop.f32.mrf.mxu1 }
 0xcfb   : > { %2178 = vrot.lane.b32.xlu0 %v7253_v27, %s6665_s17 }
 0xd69   : > { %v2224_v37 = vpop.permute.xlu1 %2223 }
 0xd6a   : > { %6001 = vmatmul.mubr.msk.bf16.vlgmr.msra.gmra.mxu1 %vm668_vm1, %v2224_v37 }
 0xd6b   : > { %6013 = vmatpush3.bf16.msra.mxu1 %v7171_v56  ;;  %6016 = vmatprep.mubr.msk.bf16.mxu1 %vm6661_vm0, %v6660_v0 }
 0xd6c   : > { %6014 = vmatprep.subr.bf16.mxu1 %v6660_v0 }
 0xd6d   : > { %v2179_v2 = vpop.permute.xlu0 %2178 }
 0xd6e   : > { %5993 = vmatmul.mubr.msk.bf16.vlgmr.msra.gmra.mxu0 %vm668_vm1, %v2179_v2  ;;  %v5477_v2 = vld [vmem:[%s6771_s30 + $0x2] sm:$0x3] }
 0xd6f   : > { %6015 = vmatpush3.bf16.msra.mxu1 %v7179_v58  ;;  %6005 = vmatpush3.bf16.msra.mxu0 %v7183_v59 }
 0xd70   : > { %6006 = vmatprep.subr.bf16.mxu0 %v6660_v0  ;;  %6028 = vmatprep.subr.bf16.mxu1 %v6660_v0 }
 0xd71   : > { %6008 = vmatprep.mubr.msk.bf16.mxu0 %vm6661_vm0, %v6660_v0 }
 0xd72   : > { %6017 = vmatmul.mubr.msk.bf16.vlgmr.msra.gmra.mxu1 %vm668_vm1, %v5477_v2 }
 0xd73   : > { %6007 = vmatpush3.bf16.msra.mxu0 %v7191_v60  ;;  %6029 = vmatpush3.bf16.msra.mxu1 %v7209_v4 }
 0xd74   : > { %6020 = vmatprep.subr.bf16.mxu0 %v6660_v0  ;;  %6030 = vmatprep.subr.bf16.mxu1 %v6660_v0 }
 0xd75   : > { %6032 = vmatprep.mubr.msk.bf16.mxu1 %vm6661_vm0, %v6660_v0 }
 0xd77   : > { %6031 = vmatpush3.bf16.msra.mxu1 %v7224_v55 }
 0xd78   : > { %6044 = vmatprep.subr.bf16.mxu1 %v6660_v0 }
 0xe2a   : > { %v2262_v40 = vpop.f32.mrf.mxu1 }
 0xe2b   : > { %v2283_v53 = vadd.f32 %v2262_v40, %v6861_v20  ;;  %v2269_v62 = vadd.f32 %v2262_v40, %v2173_v48  ;;  %v5476_v40 = vld [vmem:[%s6771_s30 + $0xc] sm:$0x3] }
 0xe2c   : > { %v6002_v38 = vpop.f32.mrf.mxu1  ;;  %6009 = vmatmul.mubr.msk.bf16.vlgmr.msra.gmra.mxu0 %vm668_vm1, %v5476_v40 }
 0xe2d   : > { %2288 = vrot.lane.b32.xlu1 %v2283_v53, %s6662_s27  ;;  %v5475_v31 = vmul.f32 -1.442695, %v2269_v62  ;;  %6021 = vmatpush3.bf16.msra.mxu0 %v7214_v52 }
 0xe2e   : > { %v2217_v39 = vpop.f32.mrf.mxu0  ;;  %v2265_v1 = vpop.f32.mrf.mxu1  ;;  %6022 = vmatprep.subr.bf16.mxu0 %v6660_v0  ;;  %6024 = vmatprep.mubr.msk.bf16.mxu0 %vm6661_vm0, %v6660_v0 }
 0xe2f   : > { %v2282_v9 = vadd.f32 %v2217_v39, %v6865_v28  ;;  %v2268_v63 = vadd.f32 %v2217_v39, %v2130_v57  ;;  %6496 = vpow2.f32 %v5475_v31 }
 0xe30   : > { %v5994_v11 = vpop.f32.mrf.mxu0  ;;  %v6003_v43 = vpop.f32.mrf.mxu1 }
 0xe31   : > { %2286 = vrot.lane.b32.xlu0 %v2282_v9, %s6662_s27  ;;  %v5474_v5 = vmul.f32 -1.442695, %v2268_v63  ;;  %6023 = vmatpush3.bf16.msra.mxu0 %v7228_v23 }
 0xe32   : > { %v2220_v44 = vpop.f32.mrf.mxu0  ;;  %6036 = vmatprep.subr.bf16.mxu0 %v6660_v0 }
 0xe33   : > { %6498 = vpow2.f32 %v5474_v5 }
 0xe34   : > { %v5995_v45 = vpop.f32.mrf.mxu0 }
 0xe3c   : > { %v6497_v7 = vpop.eup %6496 }
 0xe3d   : > { %v2277_v12 = vadd.f32 1.0, %v6497_v7 }
 0xe3f   : > { %6500 = vrcp.f32 %v2277_v12 }
 0xe40   : > { %v6499_v14 = vpop.eup %6498 }
 0xe41   : > { %v2276_v16 = vadd.f32 1.0, %v6499_v14 }
 0xe43   : > { %6502 = vrcp.f32 %v2276_v16 }
 0xe4c   : > { %v6501_v49 = vpop.eup %6500 }
 0xe4d   : > { %v2307_v39 = vsub.f32 1.0, %v6501_v49  ;;  %v2319_v9 = vmul.f32 %v6501_v49, %v7238_v17 }
 0xe50   : > { %v6503_v30 = vpop.eup %6502 }
 0xe51   : > { %v2306_v44 = vsub.f32 1.0, %v6503_v30 }
 0xe9f   : > { %v2289_v42 = vpop.permute.xlu1 %2288 }
 0xea0   : > { %v2293_v33 = vmul.f32 %v6501_v49, %v2289_v42 }
 0xea2   : > { %2298 = vrot.lane.b32.xlu1 %v2293_v33, %s6662_s27 }
 0xea3   : > { %v2287_v34 = vpop.permute.xlu0 %2286 }
 0xea4   : > { %v2292_v22 = vmul.f32 %v6503_v30, %v2287_v34 }
 0xea6   : > { %2296 = vrot.lane.b32.xlu0 %v2292_v22, %s6662_s27 }
 0xeec   : > { %v2391_v12 = vpop.f32.mrf.mxu0 }
 0xeee   : > { %v6010_v16 = vpop.f32.mrf.mxu0 }
 0xef0   : > { %v2394_v42 = vpop.f32.mrf.mxu0 }
 0xf14   : > { %v2299_v8 = vpop.permute.xlu1 %2298 }
 0xf15   : > { %v2303_v50 = vadd.f32 %v2299_v8, %v2173_v48  ;;  %v2318_v48 = vmul.f32 %v6503_v30, %v7249_v25  ;;  %v6011_v30 = vpop.f32.mrf.mxu0 }
 0xf16   : > { %v2615_v30 = vld [vmem:[%s6771_s30] sm:$0x3] }
 0xf17   : > { %6504 = vtanh.f32 %v2303_v50 }
 0xf18   : > { %v2297_v35 = vpop.permute.xlu0 %2296 }
 0xf19   : > { %v2302_v37 = vadd.f32 %v2297_v35, %v2130_v57 }
 0xf1b   : > { %6506 = vtanh.f32 %v2302_v37 }
 0xf24   : > { %v6505_v53 = vpop.eup %6504 }
 0xf25   : > { %2312 = vrot.lane.b32.xlu1 %v6505_v53, %s6665_s17  ;;  %v2392_v53 = vadd.f32 %v7280_v26, %v2391_v12 }
 0xf28   : > { %v6507_v38 = vpop.eup %6506 }
 0xf29   : > { %2310 = vrot.lane.b32.xlu0 %v6507_v38, %s6665_s17 }
 0xf97   : > { %v2313_v1 = vpop.permute.xlu1 %2312 }
 0xf98   : > { %v2317_v11 = vmul.f32 %v2313_v1, %v2307_v39 }
 0xf9a   : > { %v2321_v43 = vadd.f32 %v2319_v9, %v2317_v11 }
 0xf9b   : > { %v2311_v45 = vpop.permute.xlu0 %2310 }
 0xf9c   : > { %v2316_v57 = vmul.f32 %v2311_v45, %v2306_v44  ;;  %v7308_v62 = vsel %vm1520_vm13, %v2321_v43, %v7238_v17  ;;  %v2434_v17 = vpop.f32.mrf.mxu1 }
 0xf9d   : > { %v7312_v31 = vpack.c.bf16 %v7308_v62, %v7308_v62 }
 0xf9e   : > { %v2320_v63 = vadd.f32 %v2318_v48, %v2316_v57  ;;  %v6018_v14 = vpop.f32.mrf.mxu1 }
 0xf9f   : > { %2485 = vrot.lane.b32.xlu1 %v7312_v31, %s6665_s17 }
 0xfa0   : > { %v7319_v5 = vsel %vm1521_vm12, %v2320_v63, %v7249_v25  ;;  %v2437_v49 = vpop.f32.mrf.mxu1 }
 0xfa1   : > { %v7323_v7 = vpack.c.bf16 %v7319_v5, %v7319_v5 }
 0xfa2   : > { %v6019_v33 = vpop.f32.mrf.mxu1 }
 0xfa3   : > { %2440 = vrot.lane.b32.xlu0 %v7323_v7, %s6665_s17 }
0x1011   : > { %v2486_v34 = vpop.permute.xlu1 %2485 }
0x1012   : > { %6033 = vmatmul.mubr.msk.bf16.vlgmr.msra.gmra.mxu1 %vm668_vm1, %v2486_v34  ;;  %v5484_v34 = vld [vmem:[%s6771_s30 + $0xe] sm:$0x3] }
0x1013   : > { %6045 = vmatpush3.bf16.msra.mxu1 %v7171_v56  ;;  %6048 = vmatprep.mubr.msk.bf16.mxu1 %vm6661_vm0, %v6660_v0 }
0x1014   : > { %6046 = vmatprep.subr.bf16.mxu1 %v6660_v0 }
0x1015   : > { %v2441_v25 = vpop.permute.xlu0 %2440 }
0x1016   : > { %6025 = vmatmul.mubr.msk.bf16.vlgmr.msra.gmra.mxu0 %vm668_vm1, %v2441_v25 }
0x1017   : > { %6047 = vmatpush3.bf16.msra.mxu1 %v7179_v58  ;;  %6037 = vmatpush3.bf16.msra.mxu0 %v7183_v59 }
0x1018   : > { %6038 = vmatprep.subr.bf16.mxu0 %v6660_v0  ;;  %6060 = vmatprep.subr.bf16.mxu1 %v6660_v0 }
0x1019   : > { %6040 = vmatprep.mubr.msk.bf16.mxu0 %vm6661_vm0, %v6660_v0 }
0x101a   : > { %6049 = vmatmul.mubr.msk.bf16.vlgmr.msra.gmra.mxu1 %vm668_vm1, %v2615_v30 }
0x101b   : > { %6039 = vmatpush3.bf16.msra.mxu0 %v7191_v60  ;;  %v2435_v60 = vadd.f32 %v7276_v47, %v2434_v17  ;;  %6061 = vmatpush3.bf16.msra.mxu1 %v7209_v4 }
0x101c   : > { %6052 = vmatprep.subr.bf16.mxu0 %v6660_v0  ;;  %6062 = vmatprep.subr.bf16.mxu1 %v6660_v0 }
0x101d   : > { %6064 = vmatprep.mubr.msk.bf16.mxu1 %vm6661_vm0, %v6660_v0 }
0x101e   : > { %6041 = vmatmul.mubr.msk.bf16.vlgmr.msra.gmra.mxu0 %vm668_vm1, %v5484_v34 }
0x101f   : > { %6053 = vmatpush3.bf16.msra.mxu0 %v7214_v52  ;;  %6056 = vmatprep.mubr.msk.bf16.mxu0 %vm6661_vm0, %v6660_v0 }
0x1020   : > { %6054 = vmatprep.subr.bf16.mxu0 %v6660_v0  ;;  %6063 = vmatpush3.bf16.msra.mxu1 %v7224_v55 }
0x1021   : > { %6080 = vmatprep.subr.bf16.mxu1 %v6660_v0 }
0x1023   : > { %6055 = vmatpush3.bf16.msra.mxu0 %v7228_v23 }
0x1024   : > { %6068 = vmatprep.subr.bf16.mxu0 %v6660_v0 }
0x10d2   : > { %v2524_v56 = vpop.f32.mrf.mxu1 }
0x10d3   : > { %v2545_v22 = vadd.f32 %v2524_v56, %v6861_v20  ;;  %v2531_v38 = vadd.f32 %v2524_v56, %v2435_v60 }
0x10d4   : > { %v6034_v8 = vpop.f32.mrf.mxu1 }
0x10d5   : > { %2550 = vrot.lane.b32.xlu1 %v2545_v22, %s6662_s27  ;;  %v5483_v39 = vmul.f32 -1.442695, %v2531_v38 }
0x10d6   : > { %v2479_v58 = vpop.f32.mrf.mxu0  ;;  %v2527_v50 = vpop.f32.mrf.mxu1 }
0x10d7   : > { %v2544_v59 = vadd.f32 %v2479_v58, %v6865_v28  ;;  %v2530_v1 = vadd.f32 %v2479_v58, %v2392_v53  ;;  %6508 = vpow2.f32 %v5483_v39 }
0x10d8   : > { %v6026_v35 = vpop.f32.mrf.mxu0  ;;  %v6035_v37 = vpop.f32.mrf.mxu1 }
0x10d9   : > { %2548 = vrot.lane.b32.xlu0 %v2544_v59, %s6662_s27  ;;  %v5482_v9 = vmul.f32 -1.442695, %v2530_v1 }
0x10da   : > { %v2482_v2 = vpop.f32.mrf.mxu0 }
0x10db   : > { %6510 = vpow2.f32 %v5482_v9 }
0x10dc   : > { %v6027_v40 = vpop.f32.mrf.mxu0 }
0x10e4   : > { %v6509_v11 = vpop.eup %6508 }
0x10e5   : > { %v2539_v43 = vadd.f32 1.0, %v6509_v11 }
0x10e7   : > { %6512 = vrcp.f32 %v2539_v43 }
0x10e8   : > { %v6511_v44 = vpop.eup %6510 }
0x10e9   : > { %v2538_v45 = vadd.f32 1.0, %v6511_v44 }
0x10eb   : > { %6514 = vrcp.f32 %v2538_v45 }
0x10f4   : > { %v6513_v48 = vpop.eup %6512 }
0x10f5   : > { %v2569_v4 = vsub.f32 1.0, %v6513_v48  ;;  %v2581_v22 = vmul.f32 %v6513_v48, %v7308_v62 }
0x10f8   : > { %v6515_v17 = vpop.eup %6514 }
0x10f9   : > { %v2568_v50 = vsub.f32 1.0, %v6515_v17  ;;  %v2580_v35 = vmul.f32 %v6515_v17, %v7319_v5 }
0x1147   : > { %v2551_v57 = vpop.permute.xlu1 %2550 }
0x1148   : > { %v2555_v63 = vmul.f32 %v6513_v48, %v2551_v57 }
0x114a   : > { %2560 = vrot.lane.b32.xlu1 %v2555_v63, %s6662_s27 }
0x114b   : > { %v2549_v12 = vpop.permute.xlu0 %2548 }
0x114c   : > { %v2554_v14 = vmul.f32 %v6515_v17, %v2549_v12 }
0x114e   : > { %2558 = vrot.lane.b32.xlu0 %v2554_v14, %s6662_s27 }
0x11bc   : > { %v2561_v16 = vpop.permute.xlu1 %2560 }
0x11bd   : > { %v2565_v49 = vadd.f32 %v2561_v16, %v2435_v60 }
0x11bf   : > { %6516 = vtanh.f32 %v2565_v49 }
0x11c0   : > { %v2559_v42 = vpop.permute.xlu0 %2558 }
0x11c1   : > { %v2564_v33 = vadd.f32 %v2559_v42, %v2392_v53  ;;  %v2653_v53 = vpop.f32.mrf.mxu0 }
0x11c2   : > { %v2654_v30 = vadd.f32 %v7280_v26, %v2653_v53  ;;  %v6666_v53 = vmov 1983009808  }
0x11c3   : > { %6518 = vtanh.f32 %v2564_v33  ;;  %v6042_v39 = vpop.f32.mrf.mxu0 }
0x11c4   : > { %v976_v39 = vlaneseq }
0x11c5   : > { %v2656_v9 = vpop.f32.mrf.mxu0 }
0x11c6   : > { %v977_v9 = vshrl.u32 %v976_v39, 7 }
0x11c7   : > { %v6043_v43 = vpop.f32.mrf.mxu0 }
0x11cc   : > { %v6517_v25 = vpop.eup %6516 }
0x11cd   : > { %2574 = vrot.lane.b32.xlu1 %v6517_v25, %s6665_s17 }
0x11d0   : > { %v6519_v56 = vpop.eup %6518 }
0x11d1   : > { %2572 = vrot.lane.b32.xlu0 %v6519_v56, %s6665_s17 }
0x123f   : > { %v2575_v52 = vpop.permute.xlu1 %2574 }
0x1240   : > { %v2579_v8 = vmul.f32 %v2575_v52, %v2569_v4 }
0x1242   : > { %v2583_v58 = vadd.f32 %v2581_v22, %v2579_v8 }
0x1243   : > { %v2573_v59 = vpop.permute.xlu0 %2572 }
0x1244   : > { %v2578_v37 = vmul.f32 %v2573_v59, %v2568_v50  ;;  %v7372_v55 = vsel %vm1244_vm9, %v2583_v58, %v7308_v62  ;;  %v2696_v62 = vpop.f32.mrf.mxu1 }
0x1245   : > { %v7376_v23 = vpack.c.bf16 %v7372_v55, %v7372_v55  ;;  %v2697_v33 = vadd.f32 %v7276_v47, %v2696_v62 }
0x1246   : > { %v2582_v2 = vadd.f32 %v2580_v35, %v2578_v37  ;;  %v6050_v38 = vpop.f32.mrf.mxu1 }
0x1247   : > { %2747 = vrot.lane.b32.xlu1 %v7376_v23, %s6665_s17  ;;  %v974_v38 = vunpack.c.l.s4 %v6666_v53 }
0x1248   : > { %v7383_v40 = vsel %vm1245_vm8, %v2582_v2, %v7319_v5  ;;  %v2699_v1 = vpop.f32.mrf.mxu1 }
0x1249   : > { %v7387_v60 = vpack.c.bf16 %v7383_v40, %v7383_v40  ;;  %v975_v1 = vunpack.c.0.s8 %v974_v38 }
0x124a   : > { %v6051_v11 = vpop.f32.mrf.mxu1 }
0x124b   : > { %2702 = vrot.lane.b32.xlu0 %v7387_v60, %s6665_s17  ;;  %v7406_v43 = vsub.s32 %v975_v1, %v977_v9  ;;  %v7496_v1 = vld [vmem:[%s7442_s15 + $0x10] sm:$0xff]   ;;  %v7501_v9 = vld [vmem:[%s6803_s20 + $0xc] sm:$0xf] }
0x12b9   : > { %v2748_v44 = vpop.permute.xlu1 %2747 }
0x12ba   : > { %6065 = vmatmul.mubr.msk.bf16.vlgmr.msra.gmra.mxu1 %vm668_vm1, %v2748_v44 }
0x12bb   : > { %6088 = vmatprep.mubr.msk.bf16.mxu1 %vm6661_vm0, %v6660_v0 }
0x12bd   : > { %v2703_v5 = vpop.permute.xlu0 %2702 }
0x12be   : > { %6057 = vmatmul.mubr.msk.bf16.vlgmr.msra.gmra.mxu0 %vm668_vm1, %v2703_v5  ;;  %v7410_v5 = vld [vmem:[%s6817_s14 + $0x38] sm:$0xff]  }
0x12bf   : > { %6076 = vmatprep.mubr.msk.bf16.mxu0 %vm6661_vm0, %v6660_v0  ;;  %6081 = vmatpush3.bf16.msra.mxu1 %v7410_v5 }
0x12c0   : > { %6082 = vmatprep.subr.bf16.mxu1 %v6660_v0 }
0x137a   : > { %v2786_v45 = vpop.f32.mrf.mxu1 }
0x137b   : > { %v2807_v48 = vadd.f32 %v2786_v45, %v6861_v20  ;;  %v2793_v34 = vadd.f32 %v2786_v45, %v2697_v33  ;;  %v994_v45 = vrot.slane %v6932_v29, %v7406_v43 }
0x137c   : > { %v6066_v57 = vpop.f32.mrf.mxu1 }
0x137d   : > { %2812 = vrot.lane.b32.xlu1 %v2807_v48, %s6662_s27  ;;  %v5490_v25 = vmul.f32 -1.442695, %v2793_v34  ;;  %v7418_v48 = vld [vmem:[%s6817_s14 + $0x30] sm:$0xff]   ;;  %v7433_v34 = vld [vmem:[%s6817_s14 + $0x20] sm:$0xff]  }
0x137e   : > { %v2741_v63 = vpop.f32.mrf.mxu0  ;;  %v2789_v17 = vpop.f32.mrf.mxu1  ;;  %6083 = vmatpush3.bf16.msra.mxu1 %v7418_v48 }
0x137f   : > { %v2806_v12 = vadd.f32 %v2741_v63, %v6865_v28  ;;  %v2792_v20 = vadd.f32 %v2741_v63, %v2654_v30  ;;  %6520 = vpow2.f32 %v5490_v25  ;;  %6084 = vmatprep.subr.bf16.mxu1 %v6660_v0 }
0x1380   : > { %v6058_v14 = vpop.f32.mrf.mxu0  ;;  %v6067_v16 = vpop.f32.mrf.mxu1 }
0x1381   : > { %2810 = vrot.lane.b32.xlu0 %v2806_v12, %s6662_s27  ;;  %v5489_v56 = vmul.f32 -1.442695, %v2792_v20  ;;  %v7424_v14 = vld [vmem:[%s6817_s14 + $0x28] sm:$0xff]  }
0x1382   : > { %v2744_v49 = vpop.f32.mrf.mxu0  ;;  %6085 = vmatpush3.bf16.msra.mxu1 %v7424_v14 }
0x1383   : > { %6522 = vpow2.f32 %v5489_v56  ;;  %6086 = vmatprep.subr.bf16.mxu1 %v6660_v0 }
0x1384   : > { %v6059_v42 = vpop.f32.mrf.mxu0 }
0x1386   : > { %6087 = vmatpush3.bf16.msra.mxu1 %v7433_v34 }
0x1387   : > { %6100 = vmatprep.subr.bf16.mxu1 %v6660_v0 }
0x138c   : > { %v6521_v4 = vpop.eup %6520 }
0x138d   : > { %v2801_v52 = vadd.f32 1.0, %v6521_v4 }
0x138f   : > { %6524 = vrcp.f32 %v2801_v52 }
0x1390   : > { %v6523_v22 = vpop.eup %6522 }
0x1391   : > { %v2800_v28 = vadd.f32 1.0, %v6523_v22 }
0x1393   : > { %6526 = vrcp.f32 %v2800_v28  ;;  %v979_v28 = vrot.slane %v6943_v32, %v7406_v43  ;;  %v7469_v32 = vld [vmem:[%s6817_s14 + $0x10] sm:$0xff]  }
0x139c   : > { %v6525_v8 = vpop.eup %6524 }
0x139d   : > { %v2831_v57 = vsub.f32 1.0, %v6525_v8  ;;  %v2843_v17 = vmul.f32 %v6525_v8, %v7372_v55 }
0x13a0   : > { %v6527_v47 = vpop.eup %6526 }
0x13a1   : > { %v2830_v16 = vsub.f32 1.0, %v6527_v47  ;;  %v2842_v42 = vmul.f32 %v6527_v47, %v7383_v40 }
0x13ef   : > { %v2813_v58 = vpop.permute.xlu1 %2812 }
0x13f0   : > { %v2817_v50 = vmul.f32 %v6525_v8, %v2813_v58 }
0x13f2   : > { %2822 = vrot.lane.b32.xlu1 %v2817_v50, %s6662_s27  ;;  %v5516_v50 = vld [vmem:[%s7461_s25 + $0x1] ss:$0 sm:$0xff] }
0x13f3   : > { %v2811_v59 = vpop.permute.xlu0 %2810 }
0x13f4   : > { %v2816_v26 = vmul.f32 %v6527_v47, %v2811_v59  ;;  %v7475_v47 = vld [vmem:[%s6817_s14 + $0x8] sm:$0xff]   ;;  %v7480_v59 = vld [vmem:[%s6817_s14] sm:$0xff]  }
0x13f6   : > { %2820 = vrot.lane.b32.xlu0 %v2816_v26, %s6662_s27 }
0x1464   : > { %v2823_v35 = vpop.permute.xlu1 %2822 }
0x1465   : > { %v2827_v37 = vadd.f32 %v2823_v35, %v2697_v33 }
0x1467   : > { %6528 = vtanh.f32 %v2827_v37 }
0x1468   : > { %v2821_v2 = vpop.permute.xlu0 %2820 }
0x1469   : > { %v2826_v62 = vadd.f32 %v2821_v2, %v2654_v30 }
0x146b   : > { %6530 = vtanh.f32 %v2826_v62  ;;  %v7490_v62 = vld [vmem:[%s7442_s15 + $0x18] sm:$0xff]  }
0x1474   : > { %v6529_v11 = vpop.eup %6528 }
0x1475   : > { %2836 = vrot.lane.b32.xlu1 %v6529_v11, %s6665_s17  ;;  %v3085_v11 = vpack.c.bf16 %v7501_v9, %v7501_v9 }
0x1478   : > { %v6531_v44 = vpop.eup %6530 }
0x1479   : > { %2834 = vrot.lane.b32.xlu0 %v6531_v44, %s6665_s17  ;;  %v5515_v44 = vld [vmem:[%s7461_s25] ss:$0 sm:$0xff] }
0x147d   : > { %995 = vrot.lane.b32.xlu0 %v994_v45, %s6665_s17  ;;  %v7522_v45 = vld [vmem:[%s7442_s15 + $0x8] sm:$0xff]  }
0x14e7   : > { %v2837_v63 = vpop.permute.xlu1 %2836 }
0x14e8   : > { %v2841_v12 = vmul.f32 %v2837_v63, %v2831_v57 }
0x14ea   : > { %v2845_v29 = vadd.f32 %v2843_v17, %v2841_v12  ;;  %v7528_v12 = vld [vmem:[%s7442_s15] sm:$0xff]  }
0x14eb   : > { %v2835_v49 = vpop.permute.xlu0 %2834 }
0x14ec   : > { %v2840_v33 = vmul.f32 %v2835_v49, %v2830_v16  ;;  %v2847_v30 = vsel %vm967_vm5, %v2845_v29, %v7372_v55  ;;  %v5491_v29 = vld [vmem:[%s6803_s20 + $0x8] sm:$0xf] }
0x14ed   : > { %v2862_v25 = vpack.c.bf16 %v2847_v30, %v2847_v30  ;;  %v3084_v16 = vpack.c.bf16 %v5491_v29, %v5491_v29 }
0x14ee   : > { %v2844_v20 = vadd.f32 %v2842_v42, %v2840_v33 }
0x14ef   : > { %v996_v56 = vpop.permute.xlu0 %995  ;;  %v2870_v4 = vrot.slane %v2862_v25, %v7406_v43 }
0x14f0   : > { %999 = vst.msk [vmem:[#allocation2 + $0x3e] sm:$0x3] %vm984_vm6, %v996_v56  ;;  %v2846_v55 = vsel %vm968_vm4, %v2844_v20, %v7383_v40  ;;  %v7464_v40 = vld [vmem:[%s6817_s14 + $0x18] sm:$0xff]  }
0x14f1   : > { %2871 = vrot.lane.b32.xlu1 %v2870_v4, %s6665_s17  ;;  %v2848_v52 = vpack.c.bf16 %v2846_v55, %v2846_v55  ;;  %v7449_v22 = vadd.f32 %v2847_v30, %v2846_v55  ;;  %6069 = vmatpush3.bf16.msra.mxu0 %v7464_v40 }
0x14f2   : > { %6070 = vmatprep.subr.bf16.mxu0 %v6660_v0 }
0x14f3   : > { %v2856_v8 = vrot.slane %v2848_v52, %v7406_v43 }
0x14f5   : > { %980 = vrot.lane.b32.xlu1 %v979_v28, %s6665_s17  ;;  %2857 = vrot.lane.b32.xlu0 %v2856_v8, %s6665_s17  ;;  %v7558_v28 = vld [vmem:[%s7555_s29 + $0x1] ss:$0 sm:$0xff] }
0x14f6   : > { %6071 = vmatpush3.bf16.msra.mxu0 %v7469_v32 }
0x14f7   : > { %v5494_v58 = vld.sshfl [vmem:[#allocation2 + $0x3e] sm:$0x3 pattern:$0x76325410]  ;;  %6072 = vmatprep.subr.bf16.mxu0 %v6660_v0 }
0x14f9   : > { %2934 = vrot.lane.b32.xlu0 %v5494_v58, %s6664_s13 }
0x14fa   : > { %6073 = vmatpush3.bf16.msra.mxu0 %v7475_v47 }
0x14fb   : > { %6074 = vmatprep.subr.bf16.mxu0 %v6660_v0 }
0x14fd   : > { %3222 = vrot.lane.b32.xlu0 %v5516_v50, %s6662_s27 }
0x14fe   : > { %6075 = vmatpush3.bf16.msra.mxu0 %v7480_v59 }
0x14ff   : > { %6092 = vmatprep.subr.bf16.mxu0 %v6660_v0 }
0x1563   : > { %v2872_v26 = vpop.permute.xlu1 %2871 }
0x1564   : > { %2875 = vst.msk [vmem:[#allocation2 + $0x30] sm:$0x3] %vm984_vm6, %v2872_v26 }
0x1567   : > { %v981_v35 = vpop.permute.xlu1 %980  ;;  %v2858_v37 = vpop.permute.xlu0 %2857 }
0x1568   : > { %985 = vst.msk [vmem:[#allocation2 + $0x20] sm:$0x3] %vm984_vm6, %v981_v35  ;;  %2861 = vst.msk [vmem:[#allocation2 + $0x2e] sm:$0x3] %vm984_vm6, %v2858_v37 }
0x156b   : > { %v5493_v2 = vld.sshfl [vmem:[#allocation2 + $0x30] sm:$0x3 pattern:$0x76325410]  ;;  %v2935_v38 = vpop.permute.xlu0 %2934 }
0x156c   : > { %2919 = vrot.lane.b32.xlu1 %v5493_v2, %s6664_s13 }
0x156f   : > { %v2924_v53 = vld [vmem:[#allocation2 + $0x2e] sm:$0x3]  ;;  %v2909_v57 = vld [vmem:[#allocation2 + $0x20] sm:$0x3]  ;;  %v7547_v25 = vpop.permute.xlu0 %3222 }
0x1570   : > { %v2938_v39 = vsel %vm668_vm1, %v2924_v53, %v2935_v38  ;;  %3220 = vrot.lane.b32.xlu1 %v5515_v44, %s6662_s27 }
0x1571   : > { %6089 = vmatmul.mubr.msk.bf16.vlgmr.msra.gmra.mxu1 %vm2975_vm7, %v2938_v39 }
0x1572   : > { %6101 = vmatpush3.bf16.msra.mxu1 %v7490_v62  ;;  %6104 = vmatprep.mubr.msk.bf16.mxu1 %vm6661_vm0, %v6660_v0 }
0x1573   : > { %6102 = vmatprep.subr.bf16.mxu1 %v6660_v0 }
0x1576   : > { %6103 = vmatpush3.bf16.msra.mxu1 %v7496_v1 }
0x1577   : > { %6120 = vmatprep.subr.bf16.mxu1 %v6660_v0 }
0x1579   : > { %6105 = vmatmul.mubr.msk.bf16.vlgmr.msra.gmra.mxu1 %vm668_vm1, %v3085_v11 }
0x157a   : > { %6121 = vmatpush3.bf16.msra.mxu1 %v7410_v5  ;;  %6128 = vmatprep.mubr.msk.bf16.mxu1 %vm6661_vm0, %v6660_v0 }
0x157b   : > { %6122 = vmatprep.subr.bf16.mxu1 %v6660_v0 }
0x157e   : > { %6123 = vmatpush3.bf16.msra.mxu1 %v7418_v48 }
0x157f   : > { %6124 = vmatprep.subr.bf16.mxu1 %v6660_v0 }
0x1582   : > { %6125 = vmatpush3.bf16.msra.mxu1 %v7424_v14 }
0x1583   : > { %6126 = vmatprep.subr.bf16.mxu1 %v6660_v0 }
0x1586   : > { %6127 = vmatpush3.bf16.msra.mxu1 %v7433_v34 }
0x1587   : > { %6140 = vmatprep.subr.bf16.mxu1 %v6660_v0 }
0x15de   : > { %v2920_v63 = vpop.permute.xlu1 %2919 }
0x15df   : > { %v2923_v17 = vsel %vm668_vm1, %v2909_v57, %v2920_v63 }
0x15e0   : > { %6077 = vmatmul.mubr.msk.bf16.vlgmr.msra.gmra.mxu0 %vm2975_vm7, %v2923_v17 }
0x15e1   : > { %6093 = vmatpush3.bf16.msra.mxu0 %v7522_v45  ;;  %6096 = vmatprep.mubr.msk.bf16.mxu0 %vm6661_vm0, %v6660_v0 }
0x15e2   : > { %6094 = vmatprep.subr.bf16.mxu0 %v6660_v0  ;;  %v7561_v39 = vpop.permute.xlu1 %3220 }
0x15e5   : > { %6095 = vmatpush3.bf16.msra.mxu0 %v7528_v12 }
0x15e6   : > { %6108 = vmatprep.subr.bf16.mxu0 %v6660_v0 }
0x15e8   : > { %6097 = vmatmul.mubr.msk.bf16.vlgmr.msra.gmra.mxu0 %vm668_vm1, %v3084_v16 }
0x15e9   : > { %6109 = vmatpush3.bf16.msra.mxu0 %v7464_v40  ;;  %6116 = vmatprep.mubr.msk.bf16.mxu0 %vm6661_vm0, %v6660_v0 }
0x15ea   : > { %6110 = vmatprep.subr.bf16.mxu0 %v6660_v0 }
0x15ed   : > { %6111 = vmatpush3.bf16.msra.mxu0 %v7469_v32 }
0x15ee   : > { %6112 = vmatprep.subr.bf16.mxu0 %v6660_v0 }
0x15f1   : > { %6113 = vmatpush3.bf16.msra.mxu0 %v7475_v47 }
0x15f2   : > { %6114 = vmatprep.subr.bf16.mxu0 %v6660_v0 }
0x15f5   : > { %6115 = vmatpush3.bf16.msra.mxu0 %v7480_v59 }
0x15f6   : > { %6132 = vmatprep.subr.bf16.mxu0 %v6660_v0 }
0x1631   : > { %v3078_v49 = vpop.f32.mrf.mxu1 }
0x1632   : > { %v3079_v8 = vadd.f32 %v7558_v28, %v3078_v49 }
0x1633   : > { %v6090_v42 = vpop.f32.mrf.mxu1 }
0x1635   : > { %v3081_v33 = vpop.f32.mrf.mxu1 }
0x1636   : > { %v1270_v33 = vrot.slane %v7005_v51, %v7406_v43 }
0x1637   : > { %v6091_v30 = vpop.f32.mrf.mxu1 }
0x1638   : > { %v2594_v30 = vrot.slane %v7387_v60, %v7406_v43  ;;  %v2608_v60 = vrot.slane %v7376_v23, %v7406_v43 }
0x1639   : > { %v3190_v20 = vpop.f32.mrf.mxu1 }
0x163a   : > { %v3227_v56 = vadd.f32 %v7547_v25, %v3190_v20  ;;  %v3197_v58 = vadd.f32 %v3190_v20, %v3079_v8  ;;  %v7579_v20 = vld [vmem:[%s7555_s29] ss:$0 sm:$0xff] }
0x163b   : > { %v6106_v4 = vpop.f32.mrf.mxu1 }
0x163c   : > { %3232 = vrot.lane.b32.xlu0 %v3227_v56, %s6662_s27  ;;  %v5514_v50 = vmul.f32 -1.442695, %v3197_v58 }
0x163d   : > { %v3193_v55 = vpop.f32.mrf.mxu1 }
0x163e   : > { %6532 = vpow2.f32 %v5514_v50 }
0x163f   : > { %v6107_v52 = vpop.f32.mrf.mxu1 }
0x164b   : > { %v6533_v26 = vpop.eup %6532 }
0x164c   : > { %v3205_v35 = vadd.f32 1.0, %v6533_v26 }
0x164e   : > { %6534 = vrcp.f32 %v3205_v35 }
0x165b   : > { %v7565_v17 = vpop.eup %6534 }
0x16a0   : > { %v3012_v37 = vpop.f32.mrf.mxu0 }
0x16a1   : > { %v3013_v56 = vadd.f32 %v7579_v20, %v3012_v37 }
0x16a2   : > { %v6078_v2 = vpop.f32.mrf.mxu0 }
0x16a4   : > { %v3015_v53 = vpop.f32.mrf.mxu0 }
0x16a6   : > { %v6079_v38 = vpop.f32.mrf.mxu0 }
0x16a8   : > { %v3135_v11 = vpop.f32.mrf.mxu0 }
0x16a9   : > { %v3226_v44 = vadd.f32 %v7561_v39, %v3135_v11  ;;  %v3196_v4 = vadd.f32 %v3135_v11, %v3013_v56 }
0x16aa   : > { %v6098_v57 = vpop.f32.mrf.mxu0 }
0x16ab   : > { %3230 = vrot.lane.b32.xlu1 %v3226_v44, %s6662_s27  ;;  %v5513_v55 = vmul.f32 -1.442695, %v3196_v4 }
0x16ac   : > { %v3138_v63 = vpop.f32.mrf.mxu0 }
0x16ad   : > { %6536 = vpow2.f32 %v5513_v55 }
0x16ae   : > { %v3233_v16 = vpop.permute.xlu0 %3232  ;;  %v6099_v49 = vpop.f32.mrf.mxu0 }
0x16af   : > { %v3237_v42 = vmul.f32 %v7565_v17, %v3233_v16 }
0x16b1   : > { %3242 = vrot.lane.b32.xlu0 %v3237_v42, %s6662_s27  ;;  %v1256_v42 = vrot.slane %v7017_v54, %v7406_v43 }
0x16b5   : > { %1271 = vrot.lane.b32.xlu0 %v1270_v33, %s6665_s17 }
0x16b9   : > { %3264 = vrot.lane.b32.xlu0 %v5491_v29, %s6664_s13 }
0x16ba   : > { %v6537_v51 = vpop.eup %6536 }
0x16bb   : > { %v3204_v52 = vadd.f32 1.0, %v6537_v51 }
0x16bd   : > { %3266 = vrot.lane.b32.xlu0 %v7501_v9, %s6664_s13  ;;  %6538 = vrcp.f32 %v3204_v52  ;;  %v3251_v52 = vsub.f32 1.0, %v7565_v17 }
0x16c1   : > { %2595 = vrot.lane.b32.xlu0 %v2594_v30, %s6665_s17 }
0x16ca   : > { %v6539_v58 = vpop.eup %6538 }
0x16cb   : > { %v3250_v30 = vsub.f32 1.0, %v6539_v58 }
0x171d   : > { %v3231_v29 = vpop.permute.xlu1 %3230 }
0x171e   : > { %v3236_v50 = vmul.f32 %v6539_v58, %v3231_v29 }
0x1720   : > { %3240 = vrot.lane.b32.xlu1 %v3236_v50, %s6662_s27 }
0x1723   : > { %v3243_v9 = vpop.permute.xlu0 %3242 }
0x1724   : > { %2609 = vrot.lane.b32.xlu1 %v2608_v60, %s6665_s17  ;;  %v3247_v44 = vadd.f32 %v3243_v9, %v3079_v8 }
0x1727   : > { %v1272_v26 = vpop.permute.xlu0 %1271 }
0x1728   : > { %1275 = vst.msk [vmem:[#allocation2 + $0x3c] sm:$0x3] %vm984_vm6, %v1272_v26 }
0x172b   : > { %v3265_v35 = vpop.permute.xlu0 %3264 }
0x172c   : > { %v3270_v4 = vmul.f32 %v6539_v58, %v3265_v35 }
0x172f   : > { %v3267_v37 = vpop.permute.xlu0 %3266  ;;  %v5518_v2 = vld.sshfl [vmem:[#allocation2 + $0x3c] sm:$0x3 pattern:$0x76325410] }
0x1730   : > { %3301 = vrot.lane.b32.xlu0 %v5518_v2, %s6664_s13  ;;  %v3271_v50 = vmul.f32 %v7565_v17, %v3267_v37 }
0x1733   : > { %v2596_v53 = vpop.permute.xlu0 %2595 }
0x1734   : > { %2599 = vst.msk [vmem:[#allocation2 + $0x2c] sm:$0x3] %vm984_vm6, %v2596_v53 }
0x173b   : > { %v3291_v63 = vld [vmem:[#allocation2 + $0x2c] sm:$0x3] }
0x1792   : > { %v3241_v38 = vpop.permute.xlu1 %3240 }
0x1793   : > { %v3246_v11 = vadd.f32 %v3241_v38, %v3013_v56 }
0x1795   : > { %6540 = vtanh.f32 %v3246_v11 }
0x1796   : > { %v2610_v57 = vpop.permute.xlu1 %2609  ;;  %6542 = vtanh.f32 %v3247_v44 }
0x1797   : > { %2613 = vst.msk [vmem:[#allocation2 + $0x32] sm:$0x3] %vm984_vm6, %v2610_v57 }
0x179e   : > { %v5517_v33 = vld.sshfl [vmem:[#allocation2 + $0x32] sm:$0x3 pattern:$0x76325410] }
0x17a2   : > { %v6541_v23 = vpop.eup %6540  ;;  %v3302_v16 = vpop.permute.xlu0 %3301 }
0x17a3   : > { %v3305_v49 = vsel %vm668_vm1, %v3291_v63, %v3302_v16  ;;  %3254 = vrot.lane.b32.xlu1 %v6541_v23, %s6665_s17  ;;  %v6543_v8 = vpop.eup %6542 }
0x17a4   : > { %6129 = vmatmul.mubr.msk.bf16.vlgmr.msra.gmra.mxu1 %vm2975_vm7, %v3305_v49 }
0x17a5   : > { %6141 = vmatpush3.bf16.msra.mxu1 %v7490_v62  ;;  %6144 = vmatprep.mubr.msk.bf16.mxu1 %vm6661_vm0, %v6660_v0 }
0x17a6   : > { %6142 = vmatprep.subr.bf16.mxu1 %v6660_v0 }
0x17a7   : > { %3256 = vrot.lane.b32.xlu1 %v6543_v8, %s6665_s17 }
0x17a9   : > { %6143 = vmatpush3.bf16.msra.mxu1 %v7496_v1 }
0x17aa   : > { %6160 = vmatprep.subr.bf16.mxu1 %v6660_v0 }
0x17ab   : > { %1257 = vrot.lane.b32.xlu1 %v1256_v42, %s6665_s17 }
0x17af   : > { %3286 = vrot.lane.b32.xlu1 %v5517_v33, %s6664_s13 }
0x1815   : > { %v3255_v56 = vpop.permute.xlu1 %3254 }
0x1816   : > { %v3260_v55 = vmul.f32 %v3255_v56, %v3250_v30 }
0x1818   : > { %v3272_v51 = vadd.f32 %v3270_v4, %v3260_v55 }
0x1819   : > { %v3257_v29 = vpop.permute.xlu1 %3256 }
0x181a   : > { %v3261_v54 = vmul.f32 %v3257_v29, %v3251_v52  ;;  %v7608_v60 = vsel %vm967_vm5, %v3272_v51, %v3265_v35 }
0x181b   : > { %v3390_v9 = vpack.c.bf16 %v7608_v60, %v7608_v60 }
0x181c   : > { %v3273_v26 = vadd.f32 %v3271_v50, %v3261_v54 }
0x181d   : > { %3393 = vrot.lane.b32.xlu1 %v3390_v9, %s6665_s17  ;;  %v1258_v2 = vpop.permute.xlu1 %1257 }
0x181e   : > { %1261 = vst.msk [vmem:[#allocation2 + $0x22] sm:$0x3] %vm984_vm6, %v1258_v2  ;;  %v7616_v58 = vsel %vm968_vm4, %v3273_v26, %v3267_v37 }
0x181f   : > { %v3391_v17 = vpack.c.bf16 %v7616_v58, %v7616_v58 }
0x1821   : > { %3439 = vrot.lane.b32.xlu0 %v3391_v17, %s6665_s17  ;;  %v3287_v53 = vpop.permute.xlu1 %3286 }
0x1825   : > { %v3276_v35 = vld [vmem:[#allocation2 + $0x22] sm:$0x3] }
0x1826   : > { %v3290_v38 = vsel %vm668_vm1, %v3276_v35, %v3287_v53 }
0x1827   : > { %6117 = vmatmul.mubr.msk.bf16.vlgmr.msra.gmra.mxu0 %vm2975_vm7, %v3290_v38 }
0x1828   : > { %6133 = vmatpush3.bf16.msra.mxu0 %v7522_v45  ;;  %6136 = vmatprep.mubr.msk.bf16.mxu0 %vm6661_vm0, %v6660_v0 }
0x1829   : > { %6134 = vmatprep.subr.bf16.mxu0 %v6660_v0 }
0x182c   : > { %6135 = vmatpush3.bf16.msra.mxu0 %v7528_v12 }
0x182d   : > { %6148 = vmatprep.subr.bf16.mxu0 %v6660_v0 }
0x1864   : > { %v3384_v37 = vpop.f32.mrf.mxu1 }
0x1865   : > { %v3385_v2 = vadd.f32 %v7558_v28, %v3384_v37  ;;  %v2346_v37 = vrot.slane %v7312_v31, %v7406_v43 }
0x1866   : > { %v6130_v11 = vpop.f32.mrf.mxu1 }
0x1868   : > { %v3387_v44 = vpop.f32.mrf.mxu1 }
0x186a   : > { %v6131_v57 = vpop.f32.mrf.mxu1 }
0x188f   : > { %v3394_v23 = vpop.permute.xlu1 %3393 }
0x1890   : > { %6137 = vmatmul.mubr.msk.bf16.vlgmr.msra.gmra.mxu0 %vm668_vm1, %v3394_v23 }
0x1891   : > { %6149 = vmatpush3.bf16.msra.mxu0 %v7464_v40  ;;  %6156 = vmatprep.mubr.msk.bf16.mxu0 %vm6661_vm0, %v6660_v0 }
0x1892   : > { %6150 = vmatprep.subr.bf16.mxu0 %v6660_v0 }
0x1893   : > { %v3440_v63 = vpop.permute.xlu0 %3439 }
0x1894   : > { %6145 = vmatmul.mubr.msk.bf16.vlgmr.msra.gmra.mxu1 %vm668_vm1, %v3440_v63 }
0x1895   : > { %6151 = vmatpush3.bf16.msra.mxu0 %v7469_v32  ;;  %6161 = vmatpush3.bf16.msra.mxu1 %v7410_v5 }
0x1896   : > { %6152 = vmatprep.subr.bf16.mxu0 %v6660_v0  ;;  %6162 = vmatprep.subr.bf16.mxu1 %v6660_v0 }
0x1897   : > { %6168 = vmatprep.mubr.msk.bf16.mxu1 %vm6661_vm0, %v6660_v0 }
0x1899   : > { %6153 = vmatpush3.bf16.msra.mxu0 %v7475_v47  ;;  %6163 = vmatpush3.bf16.msra.mxu1 %v7418_v48 }
0x189a   : > { %6154 = vmatprep.subr.bf16.mxu0 %v6660_v0  ;;  %6164 = vmatprep.subr.bf16.mxu1 %v6660_v0 }
0x189d   : > { %6155 = vmatpush3.bf16.msra.mxu0 %v7480_v59  ;;  %6165 = vmatpush3.bf16.msra.mxu1 %v7424_v14 }
0x189e   : > { %6166 = vmatprep.subr.bf16.mxu1 %v6660_v0  ;;  %6172 = vmatprep.subr.bf16.mxu0 %v6660_v0 }
0x18a1   : > { %6167 = vmatpush3.bf16.msra.mxu1 %v7433_v34 }
0x18a2   : > { %6180 = vmatprep.subr.bf16.mxu1 %v6660_v0 }
0x18e7   : > { %v3342_v16 = vpop.f32.mrf.mxu0 }
0x18e8   : > { %v3343_v9 = vadd.f32 %v7579_v20, %v3342_v16 }
0x18e9   : > { %v6118_v49 = vpop.f32.mrf.mxu0 }
0x18eb   : > { %v3345_v8 = vpop.f32.mrf.mxu0 }
0x18ed   : > { %v6119_v42 = vpop.f32.mrf.mxu0 }
0x1950   : > { %v3432_v33 = vpop.f32.mrf.mxu0 }
0x1951   : > { %v3498_v30 = vadd.f32 %v3432_v33, %v7561_v39  ;;  %v3484_v26 = vadd.f32 %v3432_v33, %v3343_v9  ;;  %v1546_v33 = vrot.slane %v7079_v19, %v7406_v43  ;;  %v1532_v19 = vrot.slane %v7091_v24, %v7406_v43 }
0x1952   : > { %v6138_v56 = vpop.f32.mrf.mxu0 }
0x1953   : > { %3502 = vrot.lane.b32.xlu1 %v3498_v30, %s6662_s27  ;;  %v5523_v17 = vmul.f32 -1.442695, %v3484_v26 }
0x1954   : > { %v3435_v4 = vpop.f32.mrf.mxu0  ;;  %v3478_v55 = vpop.f32.mrf.mxu1 }
0x1955   : > { %v3499_v51 = vadd.f32 %v3478_v55, %v7547_v25  ;;  %v3485_v35 = vadd.f32 %v3478_v55, %v3385_v2  ;;  %6544 = vpow2.f32 %v5523_v17 }
0x1956   : > { %v6139_v52 = vpop.f32.mrf.mxu0  ;;  %v6146_v29 = vpop.f32.mrf.mxu1 }
0x1957   : > { %3504 = vrot.lane.b32.xlu0 %v3499_v51, %s6662_s27  ;;  %v5524_v53 = vmul.f32 -1.442695, %v3485_v35 }
0x1958   : > { %v3481_v50 = vpop.f32.mrf.mxu1 }
0x1959   : > { %6546 = vpow2.f32 %v5524_v53  ;;  %v2332_v50 = vrot.slane %v7323_v7, %v7406_v43 }
0x195a   : > { %v6147_v54 = vpop.f32.mrf.mxu1 }
0x1962   : > { %v6545_v38 = vpop.eup %6544 }
0x1963   : > { %v3492_v11 = vadd.f32 1.0, %v6545_v38 }
0x1965   : > { %6548 = vrcp.f32 %v3492_v11 }
0x1966   : > { %v6547_v44 = vpop.eup %6546 }
0x1967   : > { %v3493_v57 = vadd.f32 1.0, %v6547_v44 }
0x1969   : > { %6550 = vrcp.f32 %v3493_v57 }
0x1972   : > { %v6549_v23 = vpop.eup %6548 }
0x1973   : > { %v3522_v24 = vsub.f32 1.0, %v6549_v23 }
0x1976   : > { %v6551_v16 = vpop.eup %6550 }
0x1977   : > { %v3523_v53 = vsub.f32 1.0, %v6551_v16  ;;  %v3535_v44 = vmul.f32 %v6551_v16, %v7616_v58 }
0x19c5   : > { %v3503_v63 = vpop.permute.xlu1 %3502 }
0x19c6   : > { %v3508_v49 = vmul.f32 %v6549_v23, %v3503_v63 }
0x19c8   : > { %3512 = vrot.lane.b32.xlu1 %v3508_v49, %s6662_s27 }
0x19c9   : > { %v3505_v8 = vpop.permute.xlu0 %3504 }
0x19ca   : > { %v3509_v42 = vmul.f32 %v6551_v16, %v3505_v8 }
0x19cc   : > { %3514 = vrot.lane.b32.xlu0 %v3509_v42, %s6662_s27  ;;  %2347 = vrot.lane.b32.xlu1 %v2346_v37, %s6665_s17 }
0x19d0   : > { %1547 = vrot.lane.b32.xlu0 %v1546_v33, %s6665_s17 }
0x1a3a   : > { %v3513_v30 = vpop.permute.xlu1 %3512 }
0x1a3b   : > { %v3518_v56 = vadd.f32 %v3513_v30, %v3343_v9 }
0x1a3d   : > { %6552 = vtanh.f32 %v3518_v56 }
0x1a3e   : > { %v3515_v4 = vpop.permute.xlu0 %3514  ;;  %v2348_v55 = vpop.permute.xlu1 %2347 }
0x1a3f   : > { %v3519_v51 = vadd.f32 %v3515_v4, %v3385_v2  ;;  %2351 = vst.msk [vmem:[#allocation2 + $0x34] sm:$0x3] %vm984_vm6, %v2348_v55  ;;  %v3534_v2 = vmul.f32 %v6549_v23, %v7608_v60 }
0x1a41   : > { %6554 = vtanh.f32 %v3519_v51 }
0x1a42   : > { %v1548_v31 = vpop.permute.xlu0 %1547 }
0x1a43   : > { %1551 = vst.msk [vmem:[#allocation2 + $0x3a] sm:$0x3] %vm984_vm6, %v1548_v31 }
0x1a46   : > { %v7674_v54 = vld.sshfl [vmem:[#allocation2 + $0x34] sm:$0x3 pattern:$0x76325410] }
0x1a4a   : > { %v6553_v52 = vpop.eup %6552  ;;  %v7679_v9 = vld.sshfl [vmem:[#allocation2 + $0x3a] sm:$0x3 pattern:$0x76325410] }
0x1a4b   : > { %3526 = vrot.lane.b32.xlu1 %v6553_v52, %s6665_s17 }
0x1a4e   : > { %v6555_v29 = vpop.eup %6554 }
0x1a4f   : > { %3528 = vrot.lane.b32.xlu0 %v6555_v29, %s6665_s17  ;;  %1533 = vrot.lane.b32.xlu1 %v1532_v19, %s6665_s17 }
0x1a53   : > { %2333 = vrot.lane.b32.xlu0 %v2332_v50, %s6665_s17  ;;  %3550 = vrot.lane.b32.xlu1 %v7674_v54, %s6664_s13 }
0x1a57   : > { %3565 = vrot.lane.b32.xlu0 %v7679_v9, %s6664_s13 }
0x1abd   : > { %v3527_v26 = vpop.permute.xlu1 %3526 }
0x1abe   : > { %v3532_v17 = vmul.f32 %v3527_v26, %v3522_v24 }
0x1ac0   : > { %v3536_v35 = vadd.f32 %v3534_v2, %v3532_v17 }
0x1ac1   : > { %v3529_v7 = vpop.permute.xlu0 %3528  ;;  %v1534_v38 = vpop.permute.xlu1 %1533 }
0x1ac2   : > { %v7687_v11 = vsel %vm1244_vm9, %v3536_v35, %v7608_v60  ;;  %v3533_v57 = vmul.f32 %v3529_v7, %v3523_v53  ;;  %1537 = vst.msk [vmem:[#allocation2 + $0x24] sm:$0x3] %vm984_vm6, %v1534_v38 }
0x1ac3   : > { %v3654_v63 = vpack.c.bf16 %v7687_v11, %v7687_v11 }
0x1ac4   : > { %v3537_v49 = vadd.f32 %v3535_v44, %v3533_v57 }
0x1ac5   : > { %v2334_v23 = vpop.permute.xlu0 %2333  ;;  %3657 = vrot.lane.b32.xlu1 %v3654_v63, %s6665_s17  ;;  %v3551_v37 = vpop.permute.xlu1 %3550 }
0x1ac6   : > { %v7697_v8 = vsel %vm1245_vm8, %v3537_v49, %v7616_v58  ;;  %2337 = vst.msk [vmem:[#allocation2 + $0x2a] sm:$0x3] %vm984_vm6, %v2334_v23 }
0x1ac7   : > { %v3655_v60 = vpack.c.bf16 %v7697_v8, %v7697_v8 }
0x1ac9   : > { %v3540_v16 = vld [vmem:[#allocation2 + $0x24] sm:$0x3]  ;;  %3703 = vrot.lane.b32.xlu0 %v3655_v60, %s6665_s17  ;;  %v3566_v33 = vpop.permute.xlu0 %3565 }
0x1aca   : > { %v3554_v42 = vsel %vm668_vm1, %v3540_v16, %v3551_v37  ;;  %v4347_v6 = vld [vmem:[#allocation2 + $0x24] sm:$0x3] }
0x1acb   : > { %6157 = vmatmul.mubr.msk.bf16.vlgmr.msra.gmra.mxu0 %vm2975_vm7, %v3554_v42 }
0x1acc   : > { %6173 = vmatpush3.bf16.msra.mxu0 %v7522_v45  ;;  %6176 = vmatprep.mubr.msk.bf16.mxu0 %vm6661_vm0, %v6660_v0 }
0x1acd   : > { %v3555_v58 = vld [vmem:[#allocation2 + $0x2a] sm:$0x3]  ;;  %6174 = vmatprep.subr.bf16.mxu0 %v6660_v0 }
0x1ace   : > { %v3569_v30 = vsel %vm668_vm1, %v3555_v58, %v3566_v33 }
0x1acf   : > { %6169 = vmatmul.mubr.msk.bf16.vlgmr.msra.gmra.mxu1 %vm2975_vm7, %v3569_v30 }
0x1ad0   : > { %6175 = vmatpush3.bf16.msra.mxu0 %v7528_v12  ;;  %6181 = vmatpush3.bf16.msra.mxu1 %v7490_v62 }
0x1ad1   : > { %6182 = vmatprep.subr.bf16.mxu1 %v6660_v0  ;;  %6184 = vmatprep.mubr.msk.bf16.mxu1 %vm6661_vm0, %v6660_v0 }
0x1ad2   : > { %6188 = vmatprep.subr.bf16.mxu0 %v6660_v0 }
0x1ad4   : > { %6183 = vmatpush3.bf16.msra.mxu1 %v7496_v1 }
0x1ad5   : > { %6200 = vmatprep.subr.bf16.mxu1 %v6660_v0 }
0x1b37   : > { %v3658_v56 = vpop.permute.xlu1 %3657 }
0x1b38   : > { %6177 = vmatmul.mubr.msk.bf16.vlgmr.msra.gmra.mxu0 %vm668_vm1, %v3658_v56 }
0x1b39   : > { %6189 = vmatpush3.bf16.msra.mxu0 %v7464_v40  ;;  %6196 = vmatprep.mubr.msk.bf16.mxu0 %vm6661_vm0, %v6660_v0 }
0x1b3a   : > { %6190 = vmatprep.subr.bf16.mxu0 %v6660_v0 }
0x1b3b   : > { %v3704_v4 = vpop.permute.xlu0 %3703 }
0x1b3c   : > { %6185 = vmatmul.mubr.msk.bf16.vlgmr.msra.gmra.mxu1 %vm668_vm1, %v3704_v4 }
0x1b3d   : > { %6191 = vmatpush3.bf16.msra.mxu0 %v7469_v32  ;;  %6201 = vmatpush3.bf16.msra.mxu1 %v7410_v5 }
0x1b3e   : > { %6192 = vmatprep.subr.bf16.mxu0 %v6660_v0  ;;  %6202 = vmatprep.subr.bf16.mxu1 %v6660_v0 }
0x1b3f   : > { %6208 = vmatprep.mubr.msk.bf16.mxu1 %vm6661_vm0, %v6660_v0 }
0x1b41   : > { %6193 = vmatpush3.bf16.msra.mxu0 %v7475_v47  ;;  %6203 = vmatpush3.bf16.msra.mxu1 %v7418_v48 }
0x1b42   : > { %6194 = vmatprep.subr.bf16.mxu0 %v6660_v0  ;;  %6204 = vmatprep.subr.bf16.mxu1 %v6660_v0 }
0x1b45   : > { %6195 = vmatpush3.bf16.msra.mxu0 %v7480_v59  ;;  %6205 = vmatpush3.bf16.msra.mxu1 %v7424_v14 }
0x1b46   : > { %6206 = vmatprep.subr.bf16.mxu1 %v6660_v0  ;;  %6212 = vmatprep.subr.bf16.mxu0 %v6660_v0 }
0x1b49   : > { %6207 = vmatpush3.bf16.msra.mxu1 %v7433_v34 }
0x1b4a   : > { %6220 = vmatprep.subr.bf16.mxu1 %v6660_v0 }
0x1b8b   : > { %v3606_v55 = vpop.f32.mrf.mxu0 }
0x1b8c   : > { %v3607_v49 = vadd.f32 %v7579_v20, %v3606_v55 }
0x1b8d   : > { %v6158_v51 = vpop.f32.mrf.mxu0 }
0x1b8f   : > { %v3609_v31 = vpop.f32.mrf.mxu0  ;;  %v3648_v52 = vpop.f32.mrf.mxu1 }
0x1b90   : > { %v3649_v60 = vadd.f32 %v7558_v28, %v3648_v52  ;;  %v2084_v52 = vrot.slane %v7242_v21, %v7406_v43 }
0x1b91   : > { %v6159_v19 = vpop.f32.mrf.mxu0  ;;  %v6170_v29 = vpop.f32.mrf.mxu1 }
0x1b93   : > { %v3651_v50 = vpop.f32.mrf.mxu1 }
0x1b94   : > { %v1822_v50 = vrot.slane %v7153_v3, %v7406_v43  ;;  %v1808_v3 = vrot.slane %v7165_v18, %v7406_v43 }
0x1b95   : > { %v6171_v24 = vpop.f32.mrf.mxu1 }
0x1bf8   : > { %v3696_v26 = vpop.f32.mrf.mxu0 }
0x1bf9   : > { %v3762_v2 = vadd.f32 %v3696_v26, %v7561_v39  ;;  %v3748_v23 = vadd.f32 %v3696_v26, %v3607_v49 }
0x1bfa   : > { %v6178_v17 = vpop.f32.mrf.mxu0 }
0x1bfb   : > { %3766 = vrot.lane.b32.xlu1 %v3762_v2, %s6662_s27  ;;  %v5531_v16 = vmul.f32 -1.442695, %v3748_v23 }
0x1bfc   : > { %v3699_v35 = vpop.f32.mrf.mxu0  ;;  %v3742_v53 = vpop.f32.mrf.mxu1 }
0x1bfd   : > { %v3763_v7 = vadd.f32 %v3742_v53, %v7547_v25  ;;  %v3749_v37 = vadd.f32 %v3742_v53, %v3649_v60  ;;  %6556 = vpow2.f32 %v5531_v16 }
0x1bfe   : > { %v6179_v38 = vpop.f32.mrf.mxu0  ;;  %v6186_v44 = vpop.f32.mrf.mxu1 }
0x1bff   : > { %3768 = vrot.lane.b32.xlu0 %v3763_v7, %s6662_s27  ;;  %v5532_v42 = vmul.f32 -1.442695, %v3749_v37  ;;  %v2070_v38 = vrot.slane %v7253_v27, %v7406_v43 }
0x1c00   : > { %v3745_v57 = vpop.f32.mrf.mxu1 }
0x1c01   : > { %6558 = vpow2.f32 %v5532_v42 }
0x1c02   : > { %v6187_v63 = vpop.f32.mrf.mxu1 }
0x1c0a   : > { %v6557_v58 = vpop.eup %6556 }
0x1c0b   : > { %v3756_v33 = vadd.f32 1.0, %v6557_v58 }
0x1c0d   : > { %6560 = vrcp.f32 %v3756_v33 }
0x1c0e   : > { %v6559_v30 = vpop.eup %6558 }
0x1c0f   : > { %v3757_v56 = vadd.f32 1.0, %v6559_v30 }
0x1c11   : > { %6562 = vrcp.f32 %v3757_v56 }
0x1c1a   : > { %v6561_v4 = vpop.eup %6560 }
0x1c1b   : > { %v3786_v18 = vsub.f32 1.0, %v6561_v4 }
0x1c1e   : > { %v6563_v55 = vpop.eup %6562 }
0x1c1f   : > { %v3787_v16 = vsub.f32 1.0, %v6563_v55  ;;  %v3799_v42 = vmul.f32 %v6563_v55, %v7697_v8 }
0x1c6d   : > { %v3767_v51 = vpop.permute.xlu1 %3766 }
0x1c6e   : > { %v3772_v31 = vmul.f32 %v6561_v4, %v3767_v51 }
0x1c70   : > { %3776 = vrot.lane.b32.xlu1 %v3772_v31, %s6662_s27 }
0x1c71   : > { %v3769_v19 = vpop.permute.xlu0 %3768 }
0x1c72   : > { %v3773_v29 = vmul.f32 %v6563_v55, %v3769_v19 }
0x1c74   : > { %3778 = vrot.lane.b32.xlu0 %v3773_v29, %s6662_s27  ;;  %2085 = vrot.lane.b32.xlu1 %v2084_v52, %s6665_s17 }
0x1c78   : > { %1823 = vrot.lane.b32.xlu0 %v1822_v50, %s6665_s17 }
0x1ce2   : > { %v3777_v24 = vpop.permute.xlu1 %3776 }
0x1ce3   : > { %v3782_v26 = vadd.f32 %v3777_v24, %v3607_v49  ;;  %v3798_v49 = vmul.f32 %v6561_v4, %v7687_v11 }
0x1ce5   : > { %6564 = vtanh.f32 %v3782_v26 }
0x1ce6   : > { %v3779_v2 = vpop.permute.xlu0 %3778  ;;  %v2086_v17 = vpop.permute.xlu1 %2085 }
0x1ce7   : > { %v3783_v35 = vadd.f32 %v3779_v2, %v3649_v60  ;;  %2089 = vst.msk [vmem:[#allocation2 + $0x36] sm:$0x3] %vm984_vm6, %v2086_v17 }
0x1ce9   : > { %6566 = vtanh.f32 %v3783_v35 }
0x1cea   : > { %v1824_v21 = vpop.permute.xlu0 %1823 }
0x1ceb   : > { %1827 = vst.msk [vmem:[#allocation2 + $0x38] sm:$0x3] %vm984_vm6, %v1824_v21 }
0x1cee   : > { %v7764_v44 = vld.sshfl [vmem:[#allocation2 + $0x36] sm:$0x3 pattern:$0x76325410] }
0x1cf2   : > { %v6565_v53 = vpop.eup %6564  ;;  %v7769_v57 = vld.sshfl [vmem:[#allocation2 + $0x38] sm:$0x3 pattern:$0x76325410] }
0x1cf3   : > { %3790 = vrot.lane.b32.xlu1 %v6565_v53, %s6665_s17 }
0x1cf6   : > { %v6567_v7 = vpop.eup %6566 }
0x1cf7   : > { %3792 = vrot.lane.b32.xlu0 %v6567_v7, %s6665_s17  ;;  %1809 = vrot.lane.b32.xlu1 %v1808_v3, %s6665_s17 }
0x1cfb   : > { %2071 = vrot.lane.b32.xlu0 %v2070_v38, %s6665_s17  ;;  %3814 = vrot.lane.b32.xlu1 %v7764_v44, %s6664_s13 }
0x1cff   : > { %3829 = vrot.lane.b32.xlu0 %v7769_v57, %s6664_s13 }
0x1d65   : > { %v3791_v63 = vpop.permute.xlu1 %3790 }
0x1d66   : > { %v3796_v23 = vmul.f32 %v3791_v63, %v3786_v18 }
0x1d68   : > { %v3800_v60 = vadd.f32 %v3798_v49, %v3796_v23 }
0x1d69   : > { %v3793_v27 = vpop.permute.xlu0 %3792  ;;  %v1810_v43 = vpop.permute.xlu1 %1809 }
0x1d6a   : > { %v7777_v37 = vsel %vm1520_vm13, %v3800_v60, %v7687_v11  ;;  %v3797_v58 = vmul.f32 %v3793_v27, %v3787_v16  ;;  %1813 = vst.msk [vmem:[#allocation2 + $0x26] sm:$0x3] %vm984_vm6, %v1810_v43 }
0x1d6b   : > { %v3918_v33 = vpack.c.bf16 %v7777_v37, %v7777_v37 }
0x1d6c   : > { %v3801_v30 = vadd.f32 %v3799_v42, %v3797_v58 }
0x1d6d   : > { %v2072_v56 = vpop.permute.xlu0 %2071  ;;  %3921 = vrot.lane.b32.xlu1 %v3918_v33, %s6665_s17  ;;  %v3815_v31 = vpop.permute.xlu1 %3814 }
0x1d6e   : > { %v7787_v4 = vsel %vm1521_vm12, %v3801_v30, %v7697_v8  ;;  %2075 = vst.msk [vmem:[#allocation2 + $0x28] sm:$0x3] %vm984_vm6, %v2072_v56 }
0x1d6f   : > { %v3919_v11 = vpack.c.bf16 %v7787_v4, %v7787_v4 }
0x1d71   : > { %v3804_v51 = vld [vmem:[#allocation2 + $0x26] sm:$0x3]  ;;  %3967 = vrot.lane.b32.xlu0 %v3919_v11, %s6665_s17  ;;  %v3830_v19 = vpop.permute.xlu0 %3829 }
0x1d72   : > { %v3818_v55 = vsel %vm668_vm1, %v3804_v51, %v3815_v31 }
0x1d73   : > { %6197 = vmatmul.mubr.msk.bf16.vlgmr.msra.gmra.mxu0 %vm2975_vm7, %v3818_v55 }
0x1d74   : > { %6213 = vmatpush3.bf16.msra.mxu0 %v7522_v45  ;;  %6216 = vmatprep.mubr.msk.bf16.mxu0 %vm6661_vm0, %v6660_v0 }
0x1d75   : > { %v3819_v8 = vld [vmem:[#allocation2 + $0x28] sm:$0x3]  ;;  %6214 = vmatprep.subr.bf16.mxu0 %v6660_v0 }
0x1d76   : > { %v3833_v52 = vsel %vm668_vm1, %v3819_v8, %v3830_v19 }
0x1d77   : > { %6209 = vmatmul.mubr.msk.bf16.vlgmr.msra.gmra.mxu1 %vm2975_vm7, %v3833_v52 }
0x1d78   : > { %6215 = vmatpush3.bf16.msra.mxu0 %v7528_v12  ;;  %6221 = vmatpush3.bf16.msra.mxu1 %v7490_v62 }
0x1d79   : > { %6222 = vmatprep.subr.bf16.mxu1 %v6660_v0  ;;  %6224 = vmatprep.mubr.msk.bf16.mxu1 %vm6661_vm0, %v6660_v0 }
0x1d7a   : > { %6228 = vmatprep.subr.bf16.mxu0 %v6660_v0 }
0x1d7c   : > { %6223 = vmatpush3.bf16.msra.mxu1 %v7496_v1 }
0x1d7d   : > { %6240 = vmatprep.subr.bf16.mxu1 %v6660_v0 }
0x1ddf   : > { %v3922_v29 = vpop.permute.xlu1 %3921 }
0x1de0   : > { %6217 = vmatmul.mubr.msk.bf16.vlgmr.msra.gmra.mxu0 %vm668_vm1, %v3922_v29 }
0x1de1   : > { %6229 = vmatpush3.bf16.msra.mxu0 %v7464_v40  ;;  %6236 = vmatprep.mubr.msk.bf16.mxu0 %vm6661_vm0, %v6660_v0 }
0x1de2   : > { %6230 = vmatprep.subr.bf16.mxu0 %v6660_v0 }
0x1de3   : > { %v3968_v62 = vpop.permute.xlu0 %3967 }
0x1de4   : > { %6225 = vmatmul.mubr.msk.bf16.vlgmr.msra.gmra.mxu1 %vm668_vm1, %v3968_v62 }
0x1de5   : > { %6231 = vmatpush3.bf16.msra.mxu0 %v7469_v32  ;;  %6241 = vmatpush3.bf16.msra.mxu1 %v7410_v5 }
0x1de6   : > { %6232 = vmatprep.subr.bf16.mxu0 %v6660_v0  ;;  %6242 = vmatprep.subr.bf16.mxu1 %v6660_v0 }
0x1de7   : > { %6248 = vmatprep.mubr.msk.bf16.mxu1 %vm6661_vm0, %v6660_v0 }
0x1de9   : > { %6233 = vmatpush3.bf16.msra.mxu0 %v7475_v47  ;;  %6243 = vmatpush3.bf16.msra.mxu1 %v7418_v48 }
0x1dea   : > { %6234 = vmatprep.subr.bf16.mxu0 %v6660_v0  ;;  %6244 = vmatprep.subr.bf16.mxu1 %v6660_v0 }
0x1ded   : > { %6235 = vmatpush3.bf16.msra.mxu0 %v7480_v59  ;;  %6245 = vmatpush3.bf16.msra.mxu1 %v7424_v14 }
0x1dee   : > { %6246 = vmatprep.subr.bf16.mxu1 %v6660_v0  ;;  %6252 = vmatprep.subr.bf16.mxu0 %v6660_v0 }
0x1df1   : > { %6247 = vmatpush3.bf16.msra.mxu1 %v7433_v34 }
0x1df2   : > { %6260 = vmatprep.subr.bf16.mxu1 %v6660_v0 }
0x1e33   : > { %v3870_v5 = vpop.f32.mrf.mxu0 }
0x1e34   : > { %v3871_v7 = vadd.f32 %v7579_v20, %v3870_v5 }
0x1e35   : > { %v6198_v40 = vpop.f32.mrf.mxu0 }
0x1e37   : > { %v3873_v32 = vpop.f32.mrf.mxu0  ;;  %v3912_v48 = vpop.f32.mrf.mxu1 }
0x1e38   : > { %v3913_v18 = vadd.f32 %v7558_v28, %v3912_v48 }
0x1e39   : > { %v6199_v47 = vpop.f32.mrf.mxu0  ;;  %v6210_v1 = vpop.f32.mrf.mxu1 }
0x1e3a   : > { %v4068_v47 = vld [vmem:[#allocation2 + $0x28] sm:$0x3] }
0x1e3b   : > { %v3915_v50 = vpop.f32.mrf.mxu1 }
0x1e3d   : > { %v6211_v24 = vpop.f32.mrf.mxu1 }
0x1ea0   : > { %v3960_v26 = vpop.f32.mrf.mxu0 }
0x1ea1   : > { %v4026_v59 = vadd.f32 %v3960_v26, %v7561_v39  ;;  %v4012_v38 = vadd.f32 %v3960_v26, %v3871_v7 }
0x1ea2   : > { %v6218_v14 = vpop.f32.mrf.mxu0 }
0x1ea3   : > { %4030 = vrot.lane.b32.xlu1 %v4026_v59, %s6662_s27  ;;  %v5539_v63 = vmul.f32 -1.442695, %v4012_v38  ;;  %v4083_v14 = vld [vmem:[#allocation2 + $0x26] sm:$0x3]  ;;  %v7911_v38 = vld [vmem:[%s6817_s14 + $0x30] sm:$0xff]  }
0x1ea4   : > { %v3963_v2 = vpop.f32.mrf.mxu0  ;;  %v4006_v17 = vpop.f32.mrf.mxu1 }
0x1ea5   : > { %v4027_v34 = vadd.f32 %v4006_v17, %v7547_v25  ;;  %v4013_v49 = vadd.f32 %v4006_v17, %v3913_v18  ;;  %6568 = vpow2.f32 %v5539_v63  ;;  %v7921_v63 = vld [vmem:[%s6817_s14 + $0x28] sm:$0xff]  }
0x1ea6   : > { %v6219_v35 = vpop.f32.mrf.mxu0  ;;  %v6226_v21 = vpop.f32.mrf.mxu1 }
0x1ea7   : > { %4032 = vrot.lane.b32.xlu0 %v4027_v34, %s6662_s27  ;;  %v5540_v23 = vmul.f32 -1.442695, %v4013_v49  ;;  %v7872_v34 = vld [vmem:[%s7442_s15 + $0x18] sm:$0xff]   ;;  %v7927_v49 = vld [vmem:[%s6817_s14 + $0x20] sm:$0xff]  }
0x1ea8   : > { %v4009_v53 = vpop.f32.mrf.mxu1  ;;  %v7887_v35 = vld [vmem:[%s6817_s14 + $0x18] sm:$0xff]  }
0x1ea9   : > { %6570 = vpow2.f32 %v5540_v23  ;;  %v7895_v53 = vld [vmem:[%s6817_s14 + $0x10] sm:$0xff]  }
0x1eaa   : > { %v6227_v3 = vpop.f32.mrf.mxu1 }
0x1eab   : > { %v7899_v3 = vld [vmem:[%s6817_s14 + $0x38] sm:$0xff]  }
0x1eb2   : > { %v6569_v60 = vpop.eup %6568 }
0x1eb3   : > { %v4020_v16 = vadd.f32 1.0, %v6569_v60 }
0x1eb5   : > { %6572 = vrcp.f32 %v4020_v16 }
0x1eb6   : > { %v6571_v27 = vpop.eup %6570 }
0x1eb7   : > { %v4021_v43 = vadd.f32 1.0, %v6571_v27 }
0x1eb9   : > { %6574 = vrcp.f32 %v4021_v43 }
0x1ec2   : > { %v6573_v42 = vpop.eup %6572 }
0x1ec3   : > { %v4050_v52 = vsub.f32 1.0, %v6573_v42  ;;  %v4062_v62 = vmul.f32 %v6573_v42, %v7777_v37 }
0x1ec6   : > { %v6575_v30 = vpop.eup %6574 }
0x1ec7   : > { %v4051_v32 = vsub.f32 1.0, %v6575_v30 }
0x1f15   : > { %v4031_v58 = vpop.permute.xlu1 %4030 }
0x1f16   : > { %v4036_v33 = vmul.f32 %v6573_v42, %v4031_v58 }
0x1f18   : > { %4040 = vrot.lane.b32.xlu1 %v4036_v33, %s6662_s27 }
0x1f19   : > { %v4033_v56 = vpop.permute.xlu0 %4032 }
0x1f1a   : > { %v4037_v11 = vmul.f32 %v6575_v30, %v4033_v56 }
0x1f1c   : > { %4042 = vrot.lane.b32.xlu0 %v4037_v11, %s6662_s27 }
0x1f8a   : > { %v4041_v28 = vpop.permute.xlu1 %4040 }
0x1f8b   : > { %v4046_v51 = vadd.f32 %v4041_v28, %v3871_v7  ;;  %v7907_v7 = vld [vmem:[%s6817_s14 + $0x8] sm:$0xff]  }
0x1f8d   : > { %6576 = vtanh.f32 %v4046_v51 }
0x1f8e   : > { %v4043_v31 = vpop.permute.xlu0 %4042 }
0x1f8f   : > { %v4047_v55 = vadd.f32 %v4043_v31, %v3913_v18  ;;  %v7917_v18 = vld [vmem:[%s6817_s14] sm:$0xff]  }
0x1f91   : > { %6578 = vtanh.f32 %v4047_v55 }
0x1f9a   : > { %v6577_v8 = vpop.eup %6576 }
0x1f9b   : > { %4054 = vrot.lane.b32.xlu1 %v6577_v8, %s6665_s17 }
0x1f9e   : > { %v6579_v19 = vpop.eup %6578 }
0x1f9f   : > { %4056 = vrot.lane.b32.xlu0 %v6579_v19, %s6665_s17  ;;  %4078 = vrot.lane.b32.xlu1 %v7769_v57, %s6664_s13  ;;  %v4063_v57 = vmul.f32 %v6575_v30, %v7787_v4 }
0x1fa3   : > { %4093 = vrot.lane.b32.xlu0 %v7764_v44, %s6664_s13 }
0x200d   : > { %v4055_v29 = vpop.permute.xlu1 %4054 }
0x200e   : > { %v4060_v5 = vmul.f32 %v4055_v29, %v4050_v52 }
0x2010   : > { %v4064_v40 = vadd.f32 %v4062_v62, %v4060_v5  ;;  %v7937_v5 = vld [vmem:[%s7555_s29 + $0x1] ss:$0 sm:$0xff] }
0x2011   : > { %v4057_v48 = vpop.permute.xlu0 %4056  ;;  %v4079_v1 = vpop.permute.xlu1 %4078 }
0x2012   : > { %v7849_v50 = vsel %vm1796_vm3, %v4064_v40, %v7777_v37  ;;  %v4061_v24 = vmul.f32 %v4057_v48, %v4051_v32  ;;  %v4082_v44 = vsel %vm668_vm1, %v4068_v47, %v4079_v1 }
0x2013   : > { %6237 = vmatmul.mubr.msk.bf16.vlgmr.msra.gmra.mxu0 %vm2975_vm7, %v4082_v44  ;;  %v4182_v26 = vpack.c.bf16 %v7849_v50, %v7849_v50 }
0x2014   : > { %v4065_v59 = vadd.f32 %v4063_v57, %v4061_v24  ;;  %6253 = vmatpush3.bf16.msra.mxu0 %v7522_v45  ;;  %6256 = vmatprep.mubr.msk.bf16.mxu0 %vm6661_vm0, %v6660_v0 }
0x2015   : > { %v4094_v37 = vpop.permute.xlu0 %4093  ;;  %4185 = vrot.lane.b32.xlu1 %v4182_v26, %s6665_s17  ;;  %6254 = vmatprep.subr.bf16.mxu0 %v6660_v0 }
0x2016   : > { %v7864_v2 = vsel %vm1797_vm2, %v4065_v59, %v7787_v4  ;;  %v4097_v17 = vsel %vm668_vm1, %v4083_v14, %v4094_v37  ;;  %v7881_v4 = vld [vmem:[%s7442_s15 + $0x10] sm:$0xff]  }
0x2017   : > { %6249 = vmatmul.mubr.msk.bf16.vlgmr.msra.gmra.mxu1 %vm2975_vm7, %v4097_v17  ;;  %v4183_v45 = vpack.c.bf16 %v7864_v2, %v7864_v2 }
0x2018   : > { %6255 = vmatpush3.bf16.msra.mxu0 %v7528_v12  ;;  %6261 = vmatpush3.bf16.msra.mxu1 %v7872_v34 }
0x2019   : > { %4231 = vrot.lane.b32.xlu0 %v4183_v45, %s6665_s17  ;;  %6262 = vmatprep.subr.bf16.mxu1 %v6660_v0 }
0x201a   : > { %6264 = vmatprep.mubr.msk.bf16.mxu1 %vm6661_vm0, %v6660_v0  ;;  %6268 = vmatprep.subr.bf16.mxu0 %v6660_v0 }
0x201c   : > { %6263 = vmatpush3.bf16.msra.mxu1 %v7881_v4 }
0x201d   : > { %6280 = vmatprep.subr.bf16.mxu1 %v6660_v0 }
0x2087   : > { %v4186_v12 = vpop.permute.xlu1 %4185 }
0x2088   : > { %6257 = vmatmul.mubr.msk.bf16.vlgmr.msra.gmra.mxu0 %vm668_vm1, %v4186_v12 }
0x2089   : > { %6269 = vmatpush3.bf16.msra.mxu0 %v7887_v35  ;;  %6276 = vmatprep.mubr.msk.bf16.mxu0 %vm6661_vm0, %v6660_v0 }
0x208a   : > { %6270 = vmatprep.subr.bf16.mxu0 %v6660_v0 }
0x208b   : > { %v4232_v21 = vpop.permute.xlu0 %4231 }
0x208c   : > { %6265 = vmatmul.mubr.msk.bf16.vlgmr.msra.gmra.mxu1 %vm668_vm1, %v4232_v21 }
0x208d   : > { %6271 = vmatpush3.bf16.msra.mxu0 %v7895_v53  ;;  %6281 = vmatpush3.bf16.msra.mxu1 %v7899_v3 }
0x208e   : > { %6272 = vmatprep.subr.bf16.mxu0 %v6660_v0  ;;  %6282 = vmatprep.subr.bf16.mxu1 %v6660_v0 }
0x208f   : > { %6288 = vmatprep.mubr.msk.bf16.mxu1 %vm6661_vm0, %v6660_v0 }
0x2091   : > { %6273 = vmatpush3.bf16.msra.mxu0 %v7907_v7  ;;  %6283 = vmatpush3.bf16.msra.mxu1 %v7911_v38 }
0x2092   : > { %6274 = vmatprep.subr.bf16.mxu0 %v6660_v0  ;;  %6284 = vmatprep.subr.bf16.mxu1 %v6660_v0 }
0x2095   : > { %6275 = vmatpush3.bf16.msra.mxu0 %v7917_v18  ;;  %6285 = vmatpush3.bf16.msra.mxu1 %v7921_v63 }
0x2096   : > { %6286 = vmatprep.subr.bf16.mxu1 %v6660_v0  ;;  %6292 = vmatprep.subr.bf16.mxu0 %v6660_v0 }
0x2099   : > { %6287 = vmatpush3.bf16.msra.mxu1 %v7927_v49 }
0x209a   : > { %6300 = vmatprep.subr.bf16.mxu1 %v6660_v0 }
0x20d3   : > { %v4134_v23 = vpop.f32.mrf.mxu0 }
0x20d4   : > { %v4135_v29 = vadd.f32 %v7579_v20, %v4134_v23 }
0x20d5   : > { %v6238_v60 = vpop.f32.mrf.mxu0 }
0x20d7   : > { %v4137_v16 = vpop.f32.mrf.mxu0  ;;  %v4176_v27 = vpop.f32.mrf.mxu1 }
0x20d8   : > { %v4177_v40 = vadd.f32 %v7937_v5, %v4176_v27 }
0x20d9   : > { %v6239_v43 = vpop.f32.mrf.mxu0  ;;  %v6250_v42 = vpop.f32.mrf.mxu1 }
0x20db   : > { %v4179_v58 = vpop.f32.mrf.mxu1 }
0x20dd   : > { %v6251_v33 = vpop.f32.mrf.mxu1 }
0x2148   : > { %v4224_v30 = vpop.f32.mrf.mxu0 }
0x2149   : > { %v4290_v56 = vadd.f32 %v4224_v30, %v7561_v39  ;;  %v4276_v62 = vadd.f32 %v4224_v30, %v4135_v29 }
0x214a   : > { %v6258_v11 = vpop.f32.mrf.mxu0 }
0x214b   : > { %4294 = vrot.lane.b32.xlu1 %v4290_v56, %s6662_s27  ;;  %v5547_v32 = vmul.f32 -1.442695, %v4276_v62  ;;  %v4332_v11 = vld [vmem:[#allocation2 + $0x2a] sm:$0x3] }
0x214c   : > { %v4227_v28 = vpop.f32.mrf.mxu0  ;;  %v4270_v51 = vpop.f32.mrf.mxu1 }
0x214d   : > { %v4291_v31 = vadd.f32 %v4270_v51, %v7547_v25  ;;  %v4277_v48 = vadd.f32 %v4270_v51, %v4177_v40  ;;  %6580 = vpow2.f32 %v5547_v32 }
0x214e   : > { %v6259_v55 = vpop.f32.mrf.mxu0  ;;  %v6266_v8 = vpop.f32.mrf.mxu1 }
0x214f   : > { %4296 = vrot.lane.b32.xlu0 %v4291_v31, %s6662_s27  ;;  %v5548_v47 = vmul.f32 -1.442695, %v4277_v48 }
0x2150   : > { %v4273_v19 = vpop.f32.mrf.mxu1 }
0x2151   : > { %6582 = vpow2.f32 %v5548_v47  ;;  %v7960_v19 = vld [vmem:[%s7442_s15 + $0x8] sm:$0xff]  }
0x2152   : > { %v6267_v52 = vpop.f32.mrf.mxu1 }
0x215a   : > { %v6581_v1 = vpop.eup %6580 }
0x215b   : > { %v4284_v57 = vadd.f32 1.0, %v6581_v1 }
0x215d   : > { %6584 = vrcp.f32 %v4284_v57 }
0x215e   : > { %v6583_v24 = vpop.eup %6582 }
0x215f   : > { %v4285_v44 = vadd.f32 1.0, %v6583_v24 }
0x2161   : > { %6586 = vrcp.f32 %v4285_v44 }
0x216a   : > { %v6585_v26 = vpop.eup %6584 }
0x216b   : > { %v4314_v27 = vsub.f32 1.0, %v6585_v26  ;;  %v4326_v42 = vmul.f32 %v6585_v26, %v7849_v50 }
0x216e   : > { %v6587_v20 = vpop.eup %6586 }
0x216f   : > { %v4315_v30 = vsub.f32 1.0, %v6587_v20 }
0x21bd   : > { %v4295_v59 = vpop.permute.xlu1 %4294 }
0x21be   : > { %v4300_v37 = vmul.f32 %v6585_v26, %v4295_v59 }
0x21c0   : > { %4304 = vrot.lane.b32.xlu1 %v4300_v37, %s6662_s27 }
0x21c1   : > { %v4297_v14 = vpop.permute.xlu0 %4296 }
0x21c2   : > { %v4301_v17 = vmul.f32 %v6587_v20, %v4297_v14 }
0x21c4   : > { %4306 = vrot.lane.b32.xlu0 %v4301_v17, %s6662_s27 }
0x2232   : > { %v4305_v45 = vpop.permute.xlu1 %4304 }
0x2233   : > { %v4310_v12 = vadd.f32 %v4305_v45, %v4135_v29 }
0x2235   : > { %6588 = vtanh.f32 %v4310_v12 }
0x2236   : > { %v4307_v21 = vpop.permute.xlu0 %4306 }
0x2237   : > { %v4311_v23 = vadd.f32 %v4307_v21, %v4177_v40  ;;  %v7977_v40 = vld [vmem:[%s7442_s15] sm:$0xff]  }
0x2239   : > { %6590 = vtanh.f32 %v4311_v23 }
0x2242   : > { %v6589_v60 = vpop.eup %6588 }
0x2243   : > { %4318 = vrot.lane.b32.xlu1 %v6589_v60, %s6665_s17 }
0x2246   : > { %v6591_v16 = vpop.eup %6590 }
0x2247   : > { %4320 = vrot.lane.b32.xlu0 %v6591_v16, %s6665_s17  ;;  %4342 = vrot.lane.b32.xlu1 %v7679_v9, %s6664_s13  ;;  %v4327_v9 = vmul.f32 %v6587_v20, %v7864_v2  ;;  %v8015_v16 = vld [vmem:[%s7555_s29] ss:$0 sm:$0xff] }
0x224b   : > { %4357 = vrot.lane.b32.xlu0 %v7674_v54, %s6664_s13 }
0x22b5   : > { %v4319_v43 = vpop.permute.xlu1 %4318 }
0x22b6   : > { %v4324_v58 = vmul.f32 %v4319_v43, %v4314_v27 }
0x22b8   : > { %v4328_v33 = vadd.f32 %v4326_v42, %v4324_v58 }
0x22b9   : > { %v4321_v56 = vpop.permute.xlu0 %4320  ;;  %v4343_v28 = vpop.permute.xlu1 %4342 }
0x22ba   : > { %v7952_v51 = vsel %vm1797_vm2, %v4328_v33, %v7849_v50  ;;  %v4325_v31 = vmul.f32 %v4321_v56, %v4315_v30  ;;  %v4346_v54 = vsel %vm668_vm1, %v4332_v11, %v4343_v28 }
0x22bb   : > { %6277 = vmatmul.mubr.msk.bf16.vlgmr.msra.gmra.mxu0 %vm2975_vm7, %v4346_v54  ;;  %v4446_v55 = vpack.c.bf16 %v7952_v51, %v7952_v51 }
0x22bc   : > { %v4329_v8 = vadd.f32 %v4327_v9, %v4325_v31  ;;  %6293 = vmatpush3.bf16.msra.mxu0 %v7960_v19  ;;  %6296 = vmatprep.mubr.msk.bf16.mxu0 %vm6661_vm0, %v6660_v0 }
0x22bd   : > { %v4358_v50 = vpop.permute.xlu0 %4357  ;;  %4449 = vrot.lane.b32.xlu1 %v4446_v55, %s6665_s17  ;;  %6294 = vmatprep.subr.bf16.mxu0 %v6660_v0 }
0x22be   : > { %v7970_v52 = vsel %vm1796_vm3, %v4329_v8, %v7864_v2  ;;  %v4361_v29 = vsel %vm668_vm1, %v4347_v6, %v4358_v50 }
0x22bf   : > { %6289 = vmatmul.mubr.msk.bf16.vlgmr.msra.gmra.mxu1 %vm2975_vm7, %v4361_v29  ;;  %v4447_v62 = vpack.c.bf16 %v7970_v52, %v7970_v52 }
0x22c0   : > { %6295 = vmatpush3.bf16.msra.mxu0 %v7977_v40  ;;  %6301 = vmatpush3.bf16.msra.mxu1 %v7872_v34 }
0x22c1   : > { %4495 = vrot.lane.b32.xlu0 %v4447_v62, %s6665_s17  ;;  %6302 = vmatprep.subr.bf16.mxu1 %v6660_v0 }
0x22c2   : > { %6304 = vmatprep.mubr.msk.bf16.mxu1 %vm6661_vm0, %v6660_v0  ;;  %6308 = vmatprep.subr.bf16.mxu0 %v6660_v0 }
0x22c4   : > { %6303 = vmatpush3.bf16.msra.mxu1 %v7881_v4 }
0x22c5   : > { %6320 = vmatprep.subr.bf16.mxu1 %v6660_v0 }
0x232f   : > { %v4450_v41 = vpop.permute.xlu1 %4449 }
0x2330   : > { %6297 = vmatmul.mubr.msk.bf16.vlgmr.msra.gmra.mxu0 %vm668_vm1, %v4450_v41 }
0x2331   : > { %6309 = vmatpush3.bf16.msra.mxu0 %v7887_v35  ;;  %6316 = vmatprep.mubr.msk.bf16.mxu0 %vm6661_vm0, %v6660_v0 }
0x2332   : > { %6310 = vmatprep.subr.bf16.mxu0 %v6660_v0 }
0x2333   : > { %v4496_v2 = vpop.permute.xlu0 %4495 }
0x2334   : > { %6305 = vmatmul.mubr.msk.bf16.vlgmr.msra.gmra.mxu1 %vm668_vm1, %v4496_v2 }
0x2335   : > { %6311 = vmatpush3.bf16.msra.mxu0 %v7895_v53  ;;  %6321 = vmatpush3.bf16.msra.mxu1 %v7899_v3 }
0x2336   : > { %6312 = vmatprep.subr.bf16.mxu0 %v6660_v0  ;;  %6322 = vmatprep.subr.bf16.mxu1 %v6660_v0 }
0x2337   : > { %6328 = vmatprep.mubr.msk.bf16.mxu1 %vm6661_vm0, %v6660_v0 }
0x2339   : > { %6313 = vmatpush3.bf16.msra.mxu0 %v7907_v7  ;;  %6323 = vmatpush3.bf16.msra.mxu1 %v7911_v38 }
0x233a   : > { %6314 = vmatprep.subr.bf16.mxu0 %v6660_v0  ;;  %6324 = vmatprep.subr.bf16.mxu1 %v6660_v0 }
0x233d   : > { %6315 = vmatpush3.bf16.msra.mxu0 %v7917_v18  ;;  %6325 = vmatpush3.bf16.msra.mxu1 %v7921_v63 }
0x233e   : > { %6326 = vmatprep.subr.bf16.mxu1 %v6660_v0  ;;  %6332 = vmatprep.subr.bf16.mxu0 %v6660_v0 }
0x2341   : > { %6327 = vmatpush3.bf16.msra.mxu1 %v7927_v49 }
0x2342   : > { %6340 = vmatprep.subr.bf16.mxu1 %v6660_v0 }
0x237b   : > { %v4398_v32 = vpop.f32.mrf.mxu0 }
0x237c   : > { %v4399_v27 = vadd.f32 %v8015_v16, %v4398_v32 }
0x237d   : > { %v6278_v48 = vpop.f32.mrf.mxu0 }
0x237f   : > { %v4401_v47 = vpop.f32.mrf.mxu0  ;;  %v4440_v1 = vpop.f32.mrf.mxu1 }
0x2380   : > { %v4441_v42 = vadd.f32 %v7937_v5, %v4440_v1  ;;  %v5557_v47 = vld.sshfl [vmem:[#allocation2 + $0x3c] sm:$0x3 pattern:$0x76325410] }
0x2381   : > { %v6279_v57 = vpop.f32.mrf.mxu0  ;;  %v6290_v24 = vpop.f32.mrf.mxu1  ;;  %v5558_v1 = vld.sshfl [vmem:[#allocation2 + $0x32] sm:$0x3 pattern:$0x76325410] }
0x2383   : > { %v4443_v44 = vpop.f32.mrf.mxu1 }
0x2385   : > { %v6291_v26 = vpop.f32.mrf.mxu1 }
0x23f0   : > { %v4488_v59 = vpop.f32.mrf.mxu0 }
0x23f1   : > { %v4554_v37 = vadd.f32 %v4488_v59, %v7561_v39  ;;  %v4540_v43 = vadd.f32 %v4488_v59, %v4399_v27 }
0x23f2   : > { %v6298_v20 = vpop.f32.mrf.mxu0 }
0x23f3   : > { %4558 = vrot.lane.b32.xlu1 %v4554_v37, %s6662_s27  ;;  %v5555_v58 = vmul.f32 -1.442695, %v4540_v43  ;;  %v4611_v43 = vld [vmem:[#allocation2 + $0x22] sm:$0x3] }
0x23f4   : > { %v4491_v14 = vpop.f32.mrf.mxu0  ;;  %v4534_v17 = vpop.f32.mrf.mxu1 }
0x23f5   : > { %v4555_v45 = vadd.f32 %v4534_v17, %v7547_v25  ;;  %v4541_v33 = vadd.f32 %v4534_v17, %v4441_v42  ;;  %6592 = vpow2.f32 %v5555_v58  ;;  %v4596_v14 = vld [vmem:[#allocation2 + $0x2c] sm:$0x3] }
0x23f6   : > { %v6299_v12 = vpop.f32.mrf.mxu0  ;;  %v6306_v21 = vpop.f32.mrf.mxu1 }
0x23f7   : > { %4560 = vrot.lane.b32.xlu0 %v4555_v45, %s6662_s27  ;;  %v5556_v30 = vmul.f32 -1.442695, %v4541_v33 }
0x23f8   : > { %v4537_v23 = vpop.f32.mrf.mxu1 }
0x23f9   : > { %6594 = vpow2.f32 %v5556_v30 }
0x23fa   : > { %v6307_v60 = vpop.f32.mrf.mxu1 }
0x2402   : > { %v6593_v56 = vpop.eup %6592 }
0x2403   : > { %v4548_v11 = vadd.f32 1.0, %v6593_v56 }
0x2405   : > { %6596 = vrcp.f32 %v4548_v11 }
0x2406   : > { %v6595_v28 = vpop.eup %6594 }
0x2407   : > { %v4549_v9 = vadd.f32 1.0, %v6595_v28 }
0x2409   : > { %6598 = vrcp.f32 %v4549_v9 }
0x2412   : > { %v6597_v31 = vpop.eup %6596 }
0x2413   : > { %v4578_v57 = vsub.f32 1.0, %v6597_v31  ;;  %v4590_v44 = vmul.f32 %v6597_v31, %v7952_v51 }
0x2416   : > { %v6599_v8 = vpop.eup %6598 }
0x2417   : > { %v4579_v37 = vsub.f32 1.0, %v6599_v8  ;;  %v4591_v12 = vmul.f32 %v6599_v8, %v7970_v52 }
0x2465   : > { %v4559_v54 = vpop.permute.xlu1 %4558 }
0x2466   : > { %v4564_v55 = vmul.f32 %v6597_v31, %v4559_v54 }
0x2468   : > { %4568 = vrot.lane.b32.xlu1 %v4564_v55, %s6662_s27 }
0x2469   : > { %v4561_v6 = vpop.permute.xlu0 %4560 }
0x246a   : > { %v4565_v50 = vmul.f32 %v6599_v8, %v4561_v6 }
0x246c   : > { %4570 = vrot.lane.b32.xlu0 %v4565_v50, %s6662_s27 }
0x24da   : > { %v4569_v29 = vpop.permute.xlu1 %4568 }
0x24db   : > { %v4574_v62 = vadd.f32 %v4569_v29, %v4399_v27 }
0x24dd   : > { %6600 = vtanh.f32 %v4574_v62 }
0x24de   : > { %v4571_v41 = vpop.permute.xlu0 %4570 }
0x24df   : > { %v4575_v2 = vadd.f32 %v4571_v41, %v4441_v42 }
0x24e1   : > { %6602 = vtanh.f32 %v4575_v2 }
0x24ea   : > { %v6601_v32 = vpop.eup %6600 }
0x24eb   : > { %4582 = vrot.lane.b32.xlu1 %v6601_v32, %s6665_s17 }
0x24ee   : > { %v6603_v48 = vpop.eup %6602 }
0x24ef   : > { %4584 = vrot.lane.b32.xlu0 %v6603_v48, %s6665_s17  ;;  %4606 = vrot.lane.b32.xlu1 %v5557_v47, %s6664_s13 }
0x24f3   : > { %4621 = vrot.lane.b32.xlu0 %v5558_v1, %s6664_s13 }
0x255d   : > { %v4583_v24 = vpop.permute.xlu1 %4582 }
0x255e   : > { %v4588_v26 = vmul.f32 %v4583_v24, %v4578_v57 }
0x2560   : > { %v4592_v59 = vadd.f32 %v4590_v44, %v4588_v26 }
0x2561   : > { %v4585_v20 = vpop.permute.xlu0 %4584  ;;  %v4607_v17 = vpop.permute.xlu1 %4606 }
0x2562   : > { %v8029_v45 = vsel %vm1521_vm12, %v4592_v59, %v7952_v51  ;;  %v4589_v21 = vmul.f32 %v4585_v20, %v4579_v37  ;;  %v4610_v23 = vsel %vm668_vm1, %v4596_v14, %v4607_v17 }
0x2563   : > { %6317 = vmatmul.mubr.msk.bf16.vlgmr.msra.gmra.mxu0 %vm2975_vm7, %v4610_v23  ;;  %v4710_v60 = vpack.c.bf16 %v8029_v45, %v8029_v45 }
0x2564   : > { %v4593_v27 = vadd.f32 %v4591_v12, %v4589_v21  ;;  %6333 = vmatpush3.bf16.msra.mxu0 %v7960_v19  ;;  %6336 = vmatprep.mubr.msk.bf16.mxu0 %vm6661_vm0, %v6660_v0 }
0x2565   : > { %v4622_v61 = vpop.permute.xlu0 %4621  ;;  %4713 = vrot.lane.b32.xlu1 %v4710_v60, %s6665_s17  ;;  %6334 = vmatprep.subr.bf16.mxu0 %v6660_v0  ;;  %v5565_v60 = vld.sshfl [vmem:[#allocation2 + $0x3e] sm:$0x3 pattern:$0x76325410] }
0x2566   : > { %v8044_v51 = vsel %vm1520_vm13, %v4593_v27, %v7970_v52  ;;  %v4625_v42 = vsel %vm668_vm1, %v4611_v43, %v4622_v61  ;;  %v5566_v27 = vld.sshfl [vmem:[#allocation2 + $0x30] sm:$0x3 pattern:$0x76325410] }
0x2567   : > { %6329 = vmatmul.mubr.msk.bf16.vlgmr.msra.gmra.mxu1 %vm2975_vm7, %v4625_v42  ;;  %v4711_v58 = vpack.c.bf16 %v8044_v51, %v8044_v51 }
0x2568   : > { %6335 = vmatpush3.bf16.msra.mxu0 %v7977_v40  ;;  %6341 = vmatpush3.bf16.msra.mxu1 %v7872_v34 }
0x2569   : > { %4759 = vrot.lane.b32.xlu0 %v4711_v58, %s6665_s17  ;;  %6342 = vmatprep.subr.bf16.mxu1 %v6660_v0 }
0x256a   : > { %6344 = vmatprep.mubr.msk.bf16.mxu1 %vm6661_vm0, %v6660_v0  ;;  %6348 = vmatprep.subr.bf16.mxu0 %v6660_v0 }
0x256c   : > { %6343 = vmatpush3.bf16.msra.mxu1 %v7881_v4 }
0x256d   : > { %6360 = vmatprep.subr.bf16.mxu1 %v6660_v0 }
0x25d7   : > { %v4714_v15 = vpop.permute.xlu1 %4713 }
0x25d8   : > { %6337 = vmatmul.mubr.msk.bf16.vlgmr.msra.gmra.mxu0 %vm668_vm1, %v4714_v15 }
0x25d9   : > { %6349 = vmatpush3.bf16.msra.mxu0 %v7887_v35  ;;  %6356 = vmatprep.mubr.msk.bf16.mxu0 %vm6661_vm0, %v6660_v0 }
0x25da   : > { %6350 = vmatprep.subr.bf16.mxu0 %v6660_v0 }
0x25db   : > { %v4760_v52 = vpop.permute.xlu0 %4759 }
0x25dc   : > { %6345 = vmatmul.mubr.msk.bf16.vlgmr.msra.gmra.mxu1 %vm668_vm1, %v4760_v52 }
0x25dd   : > { %6351 = vmatpush3.bf16.msra.mxu0 %v7895_v53  ;;  %6361 = vmatpush3.bf16.msra.mxu1 %v7899_v3 }
0x25de   : > { %6352 = vmatprep.subr.bf16.mxu0 %v6660_v0  ;;  %6362 = vmatprep.subr.bf16.mxu1 %v6660_v0 }
0x25df   : > { %6368 = vmatprep.mubr.msk.bf16.mxu1 %vm6661_vm0, %v6660_v0 }
0x25e1   : > { %6353 = vmatpush3.bf16.msra.mxu0 %v7907_v7  ;;  %6363 = vmatpush3.bf16.msra.mxu1 %v7911_v38 }
0x25e2   : > { %6354 = vmatprep.subr.bf16.mxu0 %v6660_v0  ;;  %6364 = vmatprep.subr.bf16.mxu1 %v6660_v0 }
0x25e5   : > { %6355 = vmatpush3.bf16.msra.mxu0 %v7917_v18  ;;  %6365 = vmatpush3.bf16.msra.mxu1 %v7921_v63 }
0x25e6   : > { %6366 = vmatprep.subr.bf16.mxu1 %v6660_v0  ;;  %6372 = vmatprep.subr.bf16.mxu0 %v6660_v0 }
0x25e9   : > { %6367 = vmatpush3.bf16.msra.mxu1 %v7927_v49 }
0x25ea   : > { %6380 = vmatprep.subr.bf16.mxu1 %v6660_v0 }
0x2623   : > { %v4662_v35 = vpop.f32.mrf.mxu0 }
0x2624   : > { %v4663_v6 = vadd.f32 %v8015_v16, %v4662_v35 }
0x2625   : > { %v6318_v53 = vpop.f32.mrf.mxu0 }
0x2626   : > { %v4860_v53 = vld [vmem:[#allocation2 + $0x2e] sm:$0x3] }
0x2627   : > { %v4665_v3 = vpop.f32.mrf.mxu0  ;;  %v4704_v7 = vpop.f32.mrf.mxu1 }
0x2628   : > { %v4705_v29 = vadd.f32 %v7937_v5, %v4704_v7 }
0x2629   : > { %v6319_v38 = vpop.f32.mrf.mxu0  ;;  %v6330_v33 = vpop.f32.mrf.mxu1 }
0x262b   : > { %v4707_v30 = vpop.f32.mrf.mxu1 }
0x262d   : > { %v6331_v56 = vpop.f32.mrf.mxu1 }
0x2698   : > { %v4752_v11 = vpop.f32.mrf.mxu0 }
0x2699   : > { %v4818_v18 = vadd.f32 %v4752_v11, %v7561_v39  ;;  %v4804_v50 = vadd.f32 %v4752_v11, %v4663_v6 }
0x269a   : > { %v6338_v63 = vpop.f32.mrf.mxu0 }
0x269b   : > { %4822 = vrot.lane.b32.xlu1 %v4818_v18, %s6662_s27  ;;  %v5563_v62 = vmul.f32 -1.442695, %v4804_v50  ;;  %v4875_v18 = vld [vmem:[#allocation2 + $0x20] sm:$0x3] }
0x269c   : > { %v4755_v28 = vpop.f32.mrf.mxu0  ;;  %v4798_v9 = vpop.f32.mrf.mxu1 }
0x269d   : > { %v4819_v49 = vadd.f32 %v4798_v9, %v7547_v25  ;;  %v4805_v41 = vadd.f32 %v4798_v9, %v4705_v29  ;;  %6604 = vpow2.f32 %v5563_v62 }
0x269e   : > { %v6339_v31 = vpop.f32.mrf.mxu0  ;;  %v6346_v54 = vpop.f32.mrf.mxu1 }
0x269f   : > { %4824 = vrot.lane.b32.xlu0 %v4819_v49, %s6662_s27  ;;  %v5564_v2 = vmul.f32 -1.442695, %v4805_v41 }
0x26a0   : > { %v4801_v55 = vpop.f32.mrf.mxu1 }
0x26a1   : > { %6606 = vpow2.f32 %v5564_v2 }
0x26a2   : > { %v6347_v8 = vpop.f32.mrf.mxu1 }
0x26aa   : > { %v6605_v32 = vpop.eup %6604 }
0x26ab   : > { %v4812_v48 = vadd.f32 1.0, %v6605_v32 }
0x26ad   : > { %6608 = vrcp.f32 %v4812_v48 }
0x26ae   : > { %v6607_v47 = vpop.eup %6606 }
0x26af   : > { %v4813_v1 = vadd.f32 1.0, %v6607_v47 }
0x26b1   : > { %6610 = vrcp.f32 %v4813_v1 }
0x26ba   : > { %v6609_v57 = vpop.eup %6608 }
0x26bb   : > { %v4842_v43 = vsub.f32 1.0, %v6609_v57  ;;  %v4854_v42 = vmul.f32 %v6609_v57, %v8029_v45 }
0x26be   : > { %v6611_v26 = vpop.eup %6610 }
0x26bf   : > { %v4843_v52 = vsub.f32 1.0, %v6611_v26  ;;  %v4855_v38 = vmul.f32 %v6611_v26, %v8044_v51 }
0x270d   : > { %v4823_v24 = vpop.permute.xlu1 %4822 }
0x270e   : > { %v4828_v44 = vmul.f32 %v6609_v57, %v4823_v24 }
0x2710   : > { %4832 = vrot.lane.b32.xlu1 %v4828_v44, %s6662_s27 }
0x2711   : > { %v4825_v59 = vpop.permute.xlu0 %4824 }
0x2712   : > { %v4829_v37 = vmul.f32 %v6611_v26, %v4825_v59 }
0x2714   : > { %4834 = vrot.lane.b32.xlu0 %v4829_v37, %s6662_s27 }
0x2782   : > { %v4833_v20 = vpop.permute.xlu1 %4832 }
0x2783   : > { %v4838_v14 = vadd.f32 %v4833_v20, %v4663_v6 }
0x2785   : > { %6612 = vtanh.f32 %v4838_v14 }
0x2786   : > { %v4835_v17 = vpop.permute.xlu0 %4834 }
0x2787   : > { %v4839_v12 = vadd.f32 %v4835_v17, %v4705_v29 }
0x2789   : > { %6614 = vtanh.f32 %v4839_v12 }
0x2792   : > { %v6613_v21 = vpop.eup %6612 }
0x2793   : > { %4846 = vrot.lane.b32.xlu1 %v6613_v21, %s6665_s17 }
0x2796   : > { %v6615_v23 = vpop.eup %6614 }
0x2797   : > { %4848 = vrot.lane.b32.xlu0 %v6615_v23, %s6665_s17  ;;  %4870 = vrot.lane.b32.xlu1 %v5565_v60, %s6664_s13 }
0x279b   : > { %4885 = vrot.lane.b32.xlu0 %v5566_v27, %s6664_s13  ;;  %s612_s13 = scalar_lea.vmem %s8177_s11, %s6749_s23 }
0x2805   : > { %v4847_v61 = vpop.permute.xlu1 %4846 }
0x2806   : > { %v4852_v58 = vmul.f32 %v4847_v61, %v4842_v43  ;;  %v5129_v61 = vld [vmem:[%s612_s13 + $0x18] sm:$0xff] }
0x2808   : > { %v4856_v15 = vadd.f32 %v4854_v42, %v4852_v58  ;;  %v5128_v42 = vld [vmem:[%s612_s13 + $0x10] sm:$0xff]  ;;  %v5127_v58 = vld [vmem:[%s612_s13 + $0x8] sm:$0xff] }
0x2809   : > { %v4849_v35 = vpop.permute.xlu0 %4848  ;;  %v4871_v3 = vpop.permute.xlu1 %4870 }
0x280a   : > { %v8097_v7 = vsel %vm1245_vm8, %v4856_v15, %v8029_v45  ;;  %v4853_v33 = vmul.f32 %v4849_v35, %v4843_v52  ;;  %v4874_v30 = vsel %vm668_vm1, %v4860_v53, %v4871_v3  ;;  %v5126_v52 = vld [vmem:[%s612_s13] sm:$0xff] }
0x280b   : > { %6357 = vmatmul.mubr.msk.bf16.vlgmr.msra.gmra.mxu0 %vm2975_vm7, %v4874_v30  ;;  %v4974_v56 = vpack.c.bf16 %v8097_v7, %v8097_v7 }
0x280c   : > { %v4857_v11 = vadd.f32 %v4855_v38, %v4853_v33  ;;  %6373 = vmatpush3.bf16.msra.mxu0 %v7960_v19  ;;  %6376 = vmatprep.mubr.msk.bf16.mxu0 %vm6661_vm0, %v6660_v0 }
0x280d   : > { %v4886_v36 = vpop.permute.xlu0 %4885  ;;  %4977 = vrot.lane.b32.xlu1 %v4974_v56, %s6665_s17  ;;  %6374 = vmatprep.subr.bf16.mxu0 %v6660_v0 }
0x280e   : > { %v8112_v45 = vsel %vm1244_vm9, %v4857_v11, %v8044_v51  ;;  %v4889_v63 = vsel %vm668_vm1, %v4875_v18, %v4886_v36 }
0x280f   : > { %6369 = vmatmul.mubr.msk.bf16.vlgmr.msra.gmra.mxu1 %vm2975_vm7, %v4889_v63  ;;  %v4975_v19 = vpack.c.bf16 %v8112_v45, %v8112_v45 }
0x2810   : > { %6375 = vmatpush3.bf16.msra.mxu0 %v7977_v40  ;;  %6381 = vmatpush3.bf16.msra.mxu1 %v7872_v34 }
0x2811   : > { %5023 = vrot.lane.b32.xlu0 %v4975_v19, %s6665_s17  ;;  %6382 = vmatprep.subr.bf16.mxu1 %v6660_v0 }
0x2812   : > { %6384 = vmatprep.mubr.msk.bf16.mxu1 %vm6661_vm0, %v6660_v0  ;;  %6388 = vmatprep.subr.mxu0 %v6660_v0 }
0x2814   : > { %6383 = vmatpush3.bf16.msra.mxu1 %v7881_v4 }
0x287f   : > { %v4978_v46 = vpop.permute.xlu1 %4977 }
0x2880   : > { %6377 = vmatmul.mubr.msk.bf16.vlgmr.msra.gmra.mxu0 %vm668_vm1, %v4978_v46 }
0x2881   : > { %6396 = vmatprep.mubr.msk.f32.mxu0 %vm6661_vm0, %v6660_v0  ;;  %6389 = vmatpush3.msra.mxu0 %v5129_v61  ;;  %vm5205_vm0 = vcmask 257024  }
0x2882   : > { %6390 = vmatprep.subr.mxu0 %v6660_v0 }
0x2883   : > { %v5024_v40 = vpop.permute.xlu0 %5023  ;;  %6391 = vmatpush3.msra.mxu0 %v5128_v42 }
0x2884   : > { %6385 = vmatmul.mubr.msk.bf16.vlgmr.msra.gmra.mxu1 %vm668_vm1, %v5024_v40  ;;  %6392 = vmatprep.subr.mxu0 %v6660_v0 }
0x2885   : > { %6393 = vmatpush3.msra.mxu0 %v5127_v58 }
0x2886   : > { %6394 = vmatprep.subr.mxu0 %v6660_v0 }
0x2887   : > { %6395 = vmatpush3.msra.mxu0 %v5126_v52 }
0x28cb   : > { %v4926_v34 = vpop.f32.mrf.mxu0 }
0x28cc   : > { %v4927_v47 = vadd.f32 %v8015_v16, %v4926_v34 }
0x28cd   : > { %v6358_v51 = vpop.f32.mrf.mxu0 }
0x28cf   : > { %v4929_v28 = vpop.f32.mrf.mxu0  ;;  %v4968_v9 = vpop.f32.mrf.mxu1 }
0x28d0   : > { %v4969_v57 = vadd.f32 %v7937_v5, %v4968_v9 }
0x28d1   : > { %v6359_v49 = vpop.f32.mrf.mxu0  ;;  %v6370_v31 = vpop.f32.mrf.mxu1 }
0x28d3   : > { %v4971_v54 = vpop.f32.mrf.mxu1 }
0x28d5   : > { %v6371_v55 = vpop.f32.mrf.mxu1 }
0x2940   : > { %v5016_v8 = vpop.f32.mrf.mxu0 }
0x2941   : > { %v5082_v4 = vadd.f32 %v5016_v8, %v7561_v39  ;;  %v5068_v1 = vadd.f32 %v5016_v8, %v4927_v47 }
0x2942   : > { %v6378_v6 = vpop.f32.mrf.mxu0 }
0x2943   : > { %5086 = vrot.lane.b32.xlu1 %v5082_v4, %s6662_s27  ;;  %v5571_v24 = vmul.f32 -1.442695, %v5068_v1 }
0x2944   : > { %v5019_v50 = vpop.f32.mrf.mxu0  ;;  %v5062_v29 = vpop.f32.mrf.mxu1 }
0x2945   : > { %v5083_v62 = vadd.f32 %v5062_v29, %v7547_v25  ;;  %v5069_v39 = vadd.f32 %v5062_v29, %v4969_v57  ;;  %6616 = vpow2.f32 %v5571_v24 }
0x2946   : > { %v6379_v41 = vpop.f32.mrf.mxu0  ;;  %v6386_v2 = vpop.f32.mrf.mxu1 }
0x2947   : > { %5088 = vrot.lane.b32.xlu0 %v5083_v62, %s6662_s27  ;;  %v5572_v44 = vmul.f32 -1.442695, %v5069_v39 }
0x2948   : > { %v5065_v32 = vpop.f32.mrf.mxu1 }
0x2949   : > { %6618 = vpow2.f32 %v5572_v44 }
0x294a   : > { %v6387_v48 = vpop.f32.mrf.mxu1 }
0x2952   : > { %v6617_v26 = vpop.eup %6616 }
0x2953   : > { %v5076_v59 = vadd.f32 1.0, %v6617_v26 }
0x2955   : > { %6620 = vrcp.f32 %v5076_v59 }
0x2956   : > { %v6619_v37 = vpop.eup %6618 }
0x2957   : > { %v5077_v25 = vadd.f32 1.0, %v6619_v37 }
0x2959   : > { %6622 = vrcp.f32 %v5077_v25 }
0x2962   : > { %v6621_v20 = vpop.eup %6620 }
0x2963   : > { %v5106_v35 = vsub.f32 1.0, %v6621_v20  ;;  %v5118_v3 = vmul.f32 %v6621_v20, %v8097_v7 }
0x2966   : > { %v6623_v16 = vpop.eup %6622 }
0x2967   : > { %v5107_v30 = vsub.f32 1.0, %v6623_v16  ;;  %v5119_v18 = vmul.f32 %v6623_v16, %v8112_v45 }
0x29b5   : > { %v5087_v14 = vpop.permute.xlu1 %5086 }
0x29b6   : > { %v5092_v17 = vmul.f32 %v6621_v20, %v5087_v14 }
0x29b8   : > { %5096 = vrot.lane.b32.xlu1 %v5092_v17, %s6662_s27 }
0x29b9   : > { %v5089_v12 = vpop.permute.xlu0 %5088 }
0x29ba   : > { %v5093_v5 = vmul.f32 %v6623_v16, %v5089_v12 }
0x29bc   : > { %5098 = vrot.lane.b32.xlu0 %v5093_v5, %s6662_s27 }
0x2a2a   : > { %v5097_v21 = vpop.permute.xlu1 %5096 }
0x2a2b   : > { %v5102_v23 = vadd.f32 %v5097_v21, %v4927_v47 }
0x2a2d   : > { %6624 = vtanh.f32 %v5102_v23 }
0x2a2e   : > { %v5099_v60 = vpop.permute.xlu0 %5098 }
0x2a2f   : > { %v5103_v27 = vadd.f32 %v5099_v60, %v4969_v57 }
0x2a31   : > { %6626 = vtanh.f32 %v5103_v27 }
0x2a3a   : > { %v6625_v43 = vpop.eup %6624 }
0x2a3b   : > { %5110 = vrot.lane.b32.xlu1 %v6625_v43, %s6665_s17 }
0x2a3e   : > { %v6627_v15 = vpop.eup %6626 }
0x2a3f   : > { %5112 = vrot.lane.b32.xlu0 %v6627_v15, %s6665_s17 }
0x2aad   : > { %v5111_v53 = vpop.permute.xlu1 %5110 }
0x2aae   : > { %v5116_v38 = vmul.f32 %v5111_v53, %v5106_v35 }
0x2ab0   : > { %v5120_v33 = vadd.f32 %v5118_v3, %v5116_v38 }
0x2ab1   : > { %v5113_v56 = vpop.permute.xlu0 %5112 }
0x2ab2   : > { %v5122_v11 = vsel %vm968_vm4, %v5120_v33, %v8097_v7  ;;  %v5117_v36 = vmul.f32 %v5113_v56, %v5107_v30 }
0x2ab3   : > { %v5124_v0 = vadd.f32 %v5122_v11, %v7449_v22 }
0x2ab4   : > { %v5121_v63 = vadd.f32 %v5119_v18, %v5117_v36 }
0x2ab6   : > { %v5123_v19 = vsel %vm967_vm5, %v5121_v63, %v8112_v45 }
0x2ab7   : > { %v5125_v46 = vadd.f32 %v5124_v0, %v5123_v19 }
0x2ab9   : > { %5131 = vrot.lane.b32.xlu1 %v5125_v46, %s6665_s17 }
0x2b2b   : > { %v5132_v40 = vpop.permute.xlu1 %5131 }
0x2b2c   : > { %6397 = vmatmul.mubr.msk.f32.vlgmr.msra.gmra.mxu0 %vm668_vm1, %v5132_v40 }
0x2bec   : > { %v5201_v10 = vpop.f32.mrf.mxu0 }
0x2bed   : > { %5206 = vst.msk [vmem:[%s616_s26] sm:$0xf] %vm5205_vm0, %v5201_v10 }
0x2bee   : > { %v6398_v7 = vpop.f32.mrf.mxu0 }
0x2bef PF: > { %s22_s21 = sadd.s32 1, %s6658_s21  }
0x2bf0   : > { %p19_p4 = scmp.ge.s32.totalorder %s22_s21, 4  }
0x2bf2   :  { %21 = sbr.rel (!%p19_p4) target bundleno = 1 (0x1), region = 155 }

</bundles_post_ra>
